<compile_context>
chip_gen: v6e
topology: v6e:2x2x1
jax: 0.10.0
libtpu: 0.0.40
codegen_flags: <defaults>
</compile_context>

<pallas_src>
import functools

import jax
import jax.numpy as jnp
from jax import lax
from jax.experimental import pallas as pl
from jax.experimental.pallas import tpu as pltpu

HEADS = 4
DIM_HEAD = 32
HIDDEN = HEADS * DIM_HEAD          # 128
EPS = 1e-5                         # nn.GroupNorm default
SCALE = DIM_HEAD ** (-0.5)

_VMEM_TARGET = 40 * 1024 * 1024    # per-step working-set target (fits v7x's 64 MiB)


def _cdiv(a, b):
    return -(-a // b)


def _step_vmem_bytes(tb, channels, n_pad, stack):
    """Rough per-grid-step VMEM footprint (double-buffered blocks + temps)."""
    in_b = 2 * tb * channels * n_pad * 2            # bf16 x, double buffered
    out_b = 2 * tb * channels * n_pad * 4           # f32 y, double buffered
    wts = 2 * (3 * HIDDEN * channels * 2            # w_qkv bf16
               + channels * HIDDEN * 2              # w_out bf16
               + channels * 3 * 4                   # b|gamma|beta f32
               + (stack * HIDDEN) ** 2 * 4)         # block-diag mask f32
    scr = 3 * stack * HIDDEN * n_pad * 2            # bf16 k/v/q row-stacks
    tmp = (3 * HIDDEN * n_pad * 4                   # qkv f32
           + stack * HIDDEN * n_pad * 4             # out f32
           + 2 * channels * n_pad * 4)              # y + epilogue temporaries
    return in_b + out_b + wts + scr + tmp


def _linear_attention_kernel(x_ref, wqkv_ref, wout_ref, params_ref, mask_ref,
                             o_ref, kstk_ref, vstk_ref, qstk_ref,
                             *, channels, n_valid, n_pad, stack, tb):
    """One grid step = `tb` batch elements (tb // stack groups of `stack`)."""
    needs_mask = n_valid != n_pad
    if needs_mask:
        lane = lax.broadcasted_iota(jnp.int32, (1, n_pad), 1)
        valid = lane < n_valid                                   # (1, Np) bool

    wqkv = wqkv_ref[...]                                         # (384, C)  bf16
    wout = wout_ref[...]                                         # (C, 128)  bf16
    mask = mask_ref[...]                                         # (S*128, S*128) f32
    b_out = params_ref[:, 0:1]                                   # (C, 1)
    gamma = params_ref[:, 1:2]
    beta = params_ref[:, 2:3]
    inv_cn = 1.0 / float(channels * n_valid)

    for g in range(tb // stack):
        # ---- per-element to_qkv projection + softmaxes; bf16 results are
        #      written straight into the row-stacked scratch buffers.
        for e in range(stack):
            t = g * stack + e
            x = x_ref[t]                                          # (C, Np) bf16
            qkv = jnp.dot(wqkv, x,
                          preferred_element_type=jnp.float32)     # (384, Np) f32

            # k softmax over the spatial axis; pad mask folded into the
            # exponent (exp(-inf)=0), max taken over valid columns only.
            k = qkv[HIDDEN:2 * HIDDEN]                            # (128, Np)
            if needs_mask:
                k = jnp.where(valid, k, -jnp.inf)
            ek = jnp.exp(k - jnp.max(k, axis=-1, keepdims=True))
            k_inv = pl.reciprocal(jnp.sum(ek, axis=-1, keepdims=True),
                                  approx=True)                    # (128, 1)
            kstk_ref[e * HIDDEN:(e + 1) * HIDDEN, :] = (ek * k_inv).astype(jnp.bfloat16)
            vstk_ref[e * HIDDEN:(e + 1) * HIDDEN, :] = (
                qkv[2 * HIDDEN:3 * HIDDEN].astype(jnp.bfloat16))

            # q softmax over the dim_head axis (per head); SCALE folded into
            # the reciprocal multiply.
            q = qkv[0:HIDDEN].reshape(HEADS, DIM_HEAD, n_pad)
            eq = jnp.exp(q - jnp.max(q, axis=-2, keepdims=True))
            q_inv = pl.reciprocal(jnp.sum(eq, axis=-2, keepdims=True), approx=True)
            qstk_ref[e * HIDDEN:(e + 1) * HIDDEN, :] = (
                (eq * (q_inv * SCALE)).astype(jnp.bfloat16).reshape(HIDDEN, n_pad))

        # ---- stacked (stack*128)-wide block-diagonal attention matmuls:
        #   vk[i, j] = sum_n v_stack[i, n] * k_stack[j, n]; only blocks where
        #   (batch, head) match survive the mask (i // 32 == j // 32).
        vk = lax.dot_general(vstk_ref[...], kstk_ref[...],
                             (((1,), (1,)), ((), ())),
                             preferred_element_type=jnp.float32)  # (S*128, S*128)
        vk_bf = (vk * mask).astype(jnp.bfloat16)
        out = jnp.dot(vk_bf, qstk_ref[...],
                      preferred_element_type=jnp.float32)         # (S*128, Np)

        # ---- per-element to_out (1x1 conv + bias) and GroupNorm(1, C)
        for e in range(stack):
            t = g * stack + e
            hid = out[e * HIDDEN:(e + 1) * HIDDEN].astype(jnp.bfloat16)
            y = jnp.dot(wout, hid,
                        preferred_element_type=jnp.float32) + b_out      # (C, Np)

            # two-pass statistics (mean, then centered variance) in f32 over
            # the valid (C, n_valid) slab; biased variance (PyTorch semantics)
            ym = jnp.where(valid, y, 0.0) if needs_mask else y
            mean = jnp.sum(ym) * inv_cn
            d = jnp.where(valid, y - mean, 0.0) if needs_mask else (y - mean)
            var = jnp.sum(d * d) * inv_cn
            a = gamma * lax.rsqrt(var + EPS)        # (C, 1)
            b = beta - mean * a                     # (C, 1)
            o_ref[t] = (y * a + b).astype(o_ref.dtype)


def linear_attention(x, w_qkv, w_out, b_out, gamma, beta, *,
                     stack=2, max_groups_per_step=4):
    """x: (B, C, H, W) float32 (NCHW, matching the PyTorch module).

    stack: batch elements fused into one block-diagonal attention matmul
           (2 fills the 256x256 MXU on v6e/v7x; use 1 on v5e).
    """
    B, C, H, W = x.shape
    N = H * W
    N_pad = max(128, _cdiv(N, 128) * 128)           # lane-dense stores

    # ---- batch tiling: TB = stack * groups_per_step; keep >=2 grid steps
    # (both v7x TensorCores) when possible and stay inside the VMEM budget.
    groups_total = _cdiv(B, stack)
    gp = 1 if groups_total < 2 else max(1, min(max_groups_per_step, groups_total // 2))
    while gp > 1 and _step_vmem_bytes(gp * stack, C, N_pad, stack) > _VMEM_TARGET:
        gp -= 1
    tb = gp * stack
    n_steps = _cdiv(groups_total, gp)
    B_pad = n_steps * tb

    # ---- bf16 activations/weights in the wrapper: halves the x DMA and
    # removes per-step casts (MXU operands were bf16 already).
    x3 = x.reshape(B, C, N).astype(jnp.bfloat16)
    if (B_pad, N_pad) != (B, N):
        x3 = jnp.pad(x3, ((0, B_pad - B), (0, 0), (0, N_pad - N)))
    wqkv_bf = w_qkv.astype(jnp.bfloat16)
    wout_bf = w_out.astype(jnp.bfloat16)
    params = jnp.stack([b_out, gamma, beta], axis=1).astype(jnp.float32)   # (C, 3)

    # Hoisted block-diagonal (batch, head) mask: i // DIM_HEAD == j // DIM_HEAD.
    blk = jnp.arange(stack * HIDDEN) // DIM_HEAD
    head_mask = (blk[:, None] == blk[None, :]).astype(jnp.float32)

    vmem_need = _step_vmem_bytes(tb, C, N_pad, stack)
    vmem_limit = int(min(64 * 2**20, max(32 * 2**20, int(1.3 * vmem_need))))

    flops = 2 * N_pad * (3 * HIDDEN * C + 2 * HIDDEN * HIDDEN + C * HIDDEN) * B_pad
    cost = pl.CostEstimate(
        flops=int(flops),
        transcendentals=int(2 * HIDDEN * N_pad * B_pad),
        bytes_accessed=int(B_pad * C * N_pad * (2 + 4)
                           + (3 * HIDDEN * C + C * HIDDEN) * 2
                           + C * 3 * 4 + (stack * HIDDEN) ** 2 * 4),
    )

    kernel = functools.partial(_linear_attention_kernel,
                               channels=C, n_valid=N, n_pad=N_pad,
                               stack=stack, tb=tb)

    out3 = pl.pallas_call(
        kernel,
        out_shape=jax.ShapeDtypeStruct((B_pad, C, N_pad), jnp.float32),
        grid_spec=pltpu.PrefetchScalarGridSpec(
            num_scalar_prefetch=0,
            grid=(n_steps,),
            in_specs=[
                pl.BlockSpec((tb, C, N_pad), lambda i: (i, 0, 0)),          # x (bf16)
                pl.BlockSpec((3 * HIDDEN, C), lambda i: (0, 0)),            # w_qkv
                pl.BlockSpec((C, HIDDEN), lambda i: (0, 0)),                # w_out
                pl.BlockSpec((C, 3), lambda i: (0, 0)),                     # b|gamma|beta
                pl.BlockSpec((stack * HIDDEN, stack * HIDDEN),
                             lambda i: (0, 0)),                             # head mask
            ],
            out_specs=pl.BlockSpec((tb, C, N_pad), lambda i: (i, 0, 0)),
            scratch_shapes=[
                pltpu.VMEM((stack * HIDDEN, N_pad), jnp.bfloat16),   # k row-stack
                pltpu.VMEM((stack * HIDDEN, N_pad), jnp.bfloat16),   # v row-stack
                pltpu.VMEM((stack * HIDDEN, N_pad), jnp.bfloat16),   # q row-stack
            ]),
        compiler_params=pltpu.CompilerParams(
            dimension_semantics=("parallel",),
            vmem_limit_bytes=vmem_limit),
        cost_estimate=cost,
    )(x3, wqkv_bf, wout_bf, params, head_mask)

    out3 = out3[:B, :, :N]
    return out3.reshape(B, C, H, W)


def linear_attention_ref(x, w_qkv, w_out, b_out, gamma, beta):
    """Pure-JAX f32 reference of the PyTorch forward, for validation."""
    B, C, H, W = x.shape
    N = H * W
    xf = x.reshape(B, C, N)
    qkv = jnp.einsum('oc,bcn->bon', w_qkv, xf)
    q, k, v = jnp.split(qkv, 3, axis=1)

    def to_heads(t):
        return t.reshape(B, HEADS, DIM_HEAD, N)

    q, k, v = map(to_heads, (q, k, v))
    q = jax.nn.softmax(q, axis=-2) * SCALE
    k = jax.nn.softmax(k, axis=-1)
    context = jnp.einsum('bhdn,bhen->bhde', k, v)
    out = jnp.einsum('bhde,bhdn->bhen', context, q)
    out = out.reshape(B, HIDDEN, N)
    y = jnp.einsum('oc,bcn->bon', w_out, out) + b_out[None, :, None]
    mean = jnp.mean(y, axis=(1, 2), keepdims=True)
    var = jnp.mean((y - mean) ** 2, axis=(1, 2), keepdims=True)
    y = (y - mean) / jnp.sqrt(var + EPS)
    y = y * gamma[None, :, None] + beta[None, :, None]
    return y.reshape(B, C, H, W)


if __name__ == "__main__":
    B, DIM = 2, 8
    key = jax.random.PRNGKey(0)
    kx, kq, ko, kb, kx2 = jax.random.split(key, 5)

    # 1x1 conv kernels stored as plain (out_ch, in_ch) matrices.
    w_qkv = 0.05 * jax.random.normal(kq, (3 * HIDDEN, DIM), dtype=jnp.float32)
    w_out = 0.05 * jax.random.normal(ko, (DIM, HIDDEN), dtype=jnp.float32)
    b_out = 0.01 * jax.random.normal(kb, (DIM,), dtype=jnp.float32)
    gamma = jnp.ones((DIM,), dtype=jnp.float32)    # GroupNorm default affine
    beta = jnp.zeros((DIM,), dtype=jnp.float32)

    # Case 1: 16x16 (N = 256, already lane-aligned).
    x = jax.random.normal(kx, (B, DIM, 16, 16), dtype=jnp.float32)
    y = jax.block_until_ready(linear_attention(x, w_qkv, w_out, b_out, gamma, beta))
    y_ref = linear_attention_ref(x, w_qkv, w_out, b_out, gamma, beta)
    assert y.shape == x.shape
    # bf16 MXU operands + approx reciprocals -> compare at bf16-level tolerance
    assert jnp.allclose(y, y_ref, atol=3e-2, rtol=3e-2), "mismatch (16x16)"

    # Case 2: 10x10 (N = 100 -> padded to 128, exercises the masked path).
    x2 = jax.random.normal(kx2, (B, DIM, 10, 10), dtype=jnp.float32)
    y2 = jax.block_until_ready(linear_attention(x2, w_qkv, w_out, b_out, gamma, beta))
    y2_ref = linear_attention_ref(x2, w_qkv, w_out, b_out, gamma, beta)
    assert y2.shape == x2.shape
    assert jnp.allclose(y2, y2_ref, atol=3e-2, rtol=3e-2), "mismatch (10x10)"

    print("KERNEL_OK")
</pallas_src>

<mosaic_0001>
module attributes {stable_mosaic.version = 11 : i64} {
  func.func @_linear_attention_kernel(%arg0: i32, %arg1: memref<2x8x256xbf16, #tpu.memory_space<vmem>>, %arg2: memref<384x8xbf16, #tpu.memory_space<vmem>>, %arg3: memref<8x128xbf16, #tpu.memory_space<vmem>>, %arg4: memref<8x3xf32, #tpu.memory_space<vmem>>, %arg5: memref<256x256xf32, #tpu.memory_space<vmem>>, %arg6: memref<2x8x256xf32, #tpu.memory_space<vmem>>, %arg7: memref<256x256xbf16, #tpu.memory_space<vmem>>, %arg8: memref<256x256xbf16, #tpu.memory_space<vmem>>, %arg9: memref<256x256xbf16, #tpu.memory_space<vmem>>) attributes {dimension_semantics = [#tpu.dimension_semantics<parallel>], iteration_bounds = array<i64: 1>, scalar_prefetch = 0 : i64, scratch_operands = 3 : i64, tpu.core_type = #tpu.core_type<tc>, window_params = [{transform_indices = @transform_0, window_bounds = array<i64: 2, 8, 256>}, {pipeline_mode = #tpu.pipeline_mode<synchronous>, transform_indices = @transform_1, window_bounds = array<i64: 384, 8>}, {pipeline_mode = #tpu.pipeline_mode<synchronous>, transform_indices = @transform_2, window_bounds = array<i64: 8, 128>}, {pipeline_mode = #tpu.pipeline_mode<synchronous>, transform_indices = @transform_3, window_bounds = array<i64: 8, 3>}, {pipeline_mode = #tpu.pipeline_mode<synchronous>, transform_indices = @transform_4, window_bounds = array<i64: 256, 256>}, {transform_indices = @transform_5, window_bounds = array<i64: 2, 8, 256>}]} {
    %c0 = arith.constant 0 : index
    %c0_0 = arith.constant 0 : index
    %0 = vector.load %arg2[%c0, %c0_0] : memref<384x8xbf16, #tpu.memory_space<vmem>>, vector<384x8xbf16>
    %c0_1 = arith.constant 0 : index
    %c0_2 = arith.constant 0 : index
    %1 = vector.load %arg3[%c0_1, %c0_2] : memref<8x128xbf16, #tpu.memory_space<vmem>>, vector<8x128xbf16>
    %c0_3 = arith.constant 0 : index
    %c0_4 = arith.constant 0 : index
    %2 = vector.load %arg5[%c0_3, %c0_4] : memref<256x256xf32, #tpu.memory_space<vmem>>, vector<256x256xf32>
    %c0_5 = arith.constant 0 : index
    %c0_6 = arith.constant 0 : index
    %3 = vector.load %arg4[%c0_5, %c0_6] : memref<8x3xf32, #tpu.memory_space<vmem>>, vector<8x1xf32>
    %c0_7 = arith.constant 0 : index
    %c1 = arith.constant 1 : index
    %4 = vector.load %arg4[%c0_7, %c1] : memref<8x3xf32, #tpu.memory_space<vmem>>, vector<8x1xf32>
    %c0_8 = arith.constant 0 : index
    %c2 = arith.constant 2 : index
    %5 = vector.load %arg4[%c0_8, %c2] : memref<8x3xf32, #tpu.memory_space<vmem>>, vector<8x1xf32>
    %c0_9 = arith.constant 0 : index
    %c0_10 = arith.constant 0 : index
    %c0_11 = arith.constant 0 : index
    %6 = vector.load %arg1[%c0_9, %c0_10, %c0_11] : memref<2x8x256xbf16, #tpu.memory_space<vmem>>, vector<1x8x256xbf16>
    %7 = vector.shape_cast %6 : vector<1x8x256xbf16> to vector<8x256xbf16>
    %cst = arith.constant dense<0.000000e+00> : vector<384x256xf32>
    %8 = tpu.matmul %0, %7, %cst {dimension_numbers = #tpu.dot_dimension_numbers<[1], [0], [0], [1], [0, 0, 1, 1], [], []>} : vector<384x8xbf16>, vector<8x256xbf16>, vector<384x256xf32> -> vector<384x256xf32>
    %9 = vector.extract_strided_slice %8 {offsets = [128, 0], sizes = [128, 256], strides = [1, 1]} : vector<384x256xf32> to vector<128x256xf32>
    %cst_12 = arith.constant dense<0xFF800000> : vector<128xf32>
    %10 = vector.multi_reduction <maximumf>, %9, %cst_12 [1] : vector<128x256xf32> to vector<128xf32>
    %11 = vector.shape_cast %10 : vector<128xf32> to vector<128x1xf32>
    %12 = vector.broadcast %11 : vector<128x1xf32> to vector<128x256xf32>
    %13 = arith.subf %9, %12 : vector<128x256xf32>
    %14 = math.exp %13 : vector<128x256xf32>
    %cst_13 = arith.constant dense<0.000000e+00> : vector<128xf32>
    %15 = vector.multi_reduction <add>, %14, %cst_13 [1] : vector<128x256xf32> to vector<128xf32>
    %16 = vector.shape_cast %15 : vector<128xf32> to vector<128x1xf32>
    %17 = tpu.reciprocal %16 {approx = true} : vector<128x1xf32> -> vector<128x1xf32>
    %18 = vector.broadcast %17 : vector<128x1xf32> to vector<128x256xf32>
    %19 = arith.mulf %14, %18 : vector<128x256xf32>
    %20 = arith.truncf %19 : vector<128x256xf32> to vector<128x256xbf16>
    %c0_14 = arith.constant 0 : index
    %c0_15 = arith.constant 0 : index
    %21 = vector.load %arg7[%c0_14, %c0_15] : memref<256x256xbf16, #tpu.memory_space<vmem>>, vector<128x256xbf16>
    tpu.vector_store %arg7[%c0_14, %c0_15], %20 {strides = array<i32>} : memref<256x256xbf16, #tpu.memory_space<vmem>>, vector<128x256xbf16>,
    %22 = vector.extract_strided_slice %8 {offsets = [256, 0], sizes = [128, 256], strides = [1, 1]} : vector<384x256xf32> to vector<128x256xf32>
    %23 = arith.truncf %22 : vector<128x256xf32> to vector<128x256xbf16>
    %c0_16 = arith.constant 0 : index
    %c0_17 = arith.constant 0 : index
    %24 = vector.load %arg8[%c0_16, %c0_17] : memref<256x256xbf16, #tpu.memory_space<vmem>>, vector<128x256xbf16>
    tpu.vector_store %arg8[%c0_16, %c0_17], %23 {strides = array<i32>} : memref<256x256xbf16, #tpu.memory_space<vmem>>, vector<128x256xbf16>,
    %25 = vector.extract_strided_slice %8 {offsets = [0, 0], sizes = [128, 256], strides = [1, 1]} : vector<384x256xf32> to vector<128x256xf32>
    %26 = vector.shape_cast %25 : vector<128x256xf32> to vector<4x32x256xf32>
    %cst_18 = arith.constant dense<0xFF800000> : vector<4x256xf32>
    %27 = vector.multi_reduction <maximumf>, %26, %cst_18 [1] : vector<4x32x256xf32> to vector<4x256xf32>
    %28 = vector.shape_cast %27 : vector<4x256xf32> to vector<4x1x256xf32>
    %29 = vector.broadcast %28 : vector<4x1x256xf32> to vector<4x32x256xf32>
    %30 = arith.subf %26, %29 : vector<4x32x256xf32>
    %31 = math.exp %30 : vector<4x32x256xf32>
    %cst_19 = arith.constant dense<0.000000e+00> : vector<4x256xf32>
    %32 = vector.multi_reduction <add>, %31, %cst_19 [1] : vector<4x32x256xf32> to vector<4x256xf32>
    %33 = vector.shape_cast %32 : vector<4x256xf32> to vector<4x1x256xf32>
    %34 = tpu.reciprocal %33 {approx = true} : vector<4x1x256xf32> -> vector<4x1x256xf32>
    %cst_20 = arith.constant 0.176776692 : f32
    %35 = vector.broadcast %cst_20 : f32 to vector<4x1x256xf32>
    %36 = arith.mulf %34, %35 : vector<4x1x256xf32>
    %37 = vector.broadcast %36 : vector<4x1x256xf32> to vector<4x32x256xf32>
    %38 = arith.mulf %31, %37 : vector<4x32x256xf32>
    %39 = arith.truncf %38 : vector<4x32x256xf32> to vector<4x32x256xbf16>
    %40 = vector.shape_cast %39 : vector<4x32x256xbf16> to vector<128x256xbf16>
    %c0_21 = arith.constant 0 : index
    %c0_22 = arith.constant 0 : index
    %41 = vector.load %arg9[%c0_21, %c0_22] : memref<256x256xbf16, #tpu.memory_space<vmem>>, vector<128x256xbf16>
    tpu.vector_store %arg9[%c0_21, %c0_22], %40 {strides = array<i32>} : memref<256x256xbf16, #tpu.memory_space<vmem>>, vector<128x256xbf16>,
    %c1_23 = arith.constant 1 : index
    %c0_24 = arith.constant 0 : index
    %c0_25 = arith.constant 0 : index
    %42 = vector.load %arg1[%c1_23, %c0_24, %c0_25] : memref<2x8x256xbf16, #tpu.memory_space<vmem>>, vector<1x8x256xbf16>
    %43 = vector.shape_cast %42 : vector<1x8x256xbf16> to vector<8x256xbf16>
    %cst_26 = arith.constant dense<0.000000e+00> : vector<384x256xf32>
    %44 = tpu.matmul %0, %43, %cst_26 {dimension_numbers = #tpu.dot_dimension_numbers<[1], [0], [0], [1], [0, 0, 1, 1], [], []>} : vector<384x8xbf16>, vector<8x256xbf16>, vector<384x256xf32> -> vector<384x256xf32>
    %45 = vector.extract_strided_slice %44 {offsets = [128, 0], sizes = [128, 256], strides = [1, 1]} : vector<384x256xf32> to vector<128x256xf32>
    %cst_27 = arith.constant dense<0xFF800000> : vector<128xf32>
    %46 = vector.multi_reduction <maximumf>, %45, %cst_27 [1] : vector<128x256xf32> to vector<128xf32>
    %47 = vector.shape_cast %46 : vector<128xf32> to vector<128x1xf32>
    %48 = vector.broadcast %47 : vector<128x1xf32> to vector<128x256xf32>
    %49 = arith.subf %45, %48 : vector<128x256xf32>
    %50 = math.exp %49 : vector<128x256xf32>
    %cst_28 = arith.constant dense<0.000000e+00> : vector<128xf32>
    %51 = vector.multi_reduction <add>, %50, %cst_28 [1] : vector<128x256xf32> to vector<128xf32>
    %52 = vector.shape_cast %51 : vector<128xf32> to vector<128x1xf32>
    %53 = tpu.reciprocal %52 {approx = true} : vector<128x1xf32> -> vector<128x1xf32>
    %54 = vector.broadcast %53 : vector<128x1xf32> to vector<128x256xf32>
    %55 = arith.mulf %50, %54 : vector<128x256xf32>
    %56 = arith.truncf %55 : vector<128x256xf32> to vector<128x256xbf16>
    %c128 = arith.constant 128 : index
    %c0_29 = arith.constant 0 : index
    %57 = vector.load %arg7[%c128, %c0_29] : memref<256x256xbf16, #tpu.memory_space<vmem>>, vector<128x256xbf16>
    tpu.vector_store %arg7[%c128, %c0_29], %56 {strides = array<i32>} : memref<256x256xbf16, #tpu.memory_space<vmem>>, vector<128x256xbf16>,
    %58 = vector.extract_strided_slice %44 {offsets = [256, 0], sizes = [128, 256], strides = [1, 1]} : vector<384x256xf32> to vector<128x256xf32>
    %59 = arith.truncf %58 : vector<128x256xf32> to vector<128x256xbf16>
    %c128_30 = arith.constant 128 : index
    %c0_31 = arith.constant 0 : index
    %60 = vector.load %arg8[%c128_30, %c0_31] : memref<256x256xbf16, #tpu.memory_space<vmem>>, vector<128x256xbf16>
    tpu.vector_store %arg8[%c128_30, %c0_31], %59 {strides = array<i32>} : memref<256x256xbf16, #tpu.memory_space<vmem>>, vector<128x256xbf16>,
    %61 = vector.extract_strided_slice %44 {offsets = [0, 0], sizes = [128, 256], strides = [1, 1]} : vector<384x256xf32> to vector<128x256xf32>
    %62 = vector.shape_cast %61 : vector<128x256xf32> to vector<4x32x256xf32>
    %cst_32 = arith.constant dense<0xFF800000> : vector<4x256xf32>
    %63 = vector.multi_reduction <maximumf>, %62, %cst_32 [1] : vector<4x32x256xf32> to vector<4x256xf32>
    %64 = vector.shape_cast %63 : vector<4x256xf32> to vector<4x1x256xf32>
    %65 = vector.broadcast %64 : vector<4x1x256xf32> to vector<4x32x256xf32>
    %66 = arith.subf %62, %65 : vector<4x32x256xf32>
    %67 = math.exp %66 : vector<4x32x256xf32>
    %cst_33 = arith.constant dense<0.000000e+00> : vector<4x256xf32>
    %68 = vector.multi_reduction <add>, %67, %cst_33 [1] : vector<4x32x256xf32> to vector<4x256xf32>
    %69 = vector.shape_cast %68 : vector<4x256xf32> to vector<4x1x256xf32>
    %70 = tpu.reciprocal %69 {approx = true} : vector<4x1x256xf32> -> vector<4x1x256xf32>
    %cst_34 = arith.constant 0.176776692 : f32
    %71 = vector.broadcast %cst_34 : f32 to vector<4x1x256xf32>
    %72 = arith.mulf %70, %71 : vector<4x1x256xf32>
    %73 = vector.broadcast %72 : vector<4x1x256xf32> to vector<4x32x256xf32>
    %74 = arith.mulf %67, %73 : vector<4x32x256xf32>
    %75 = arith.truncf %74 : vector<4x32x256xf32> to vector<4x32x256xbf16>
    %76 = vector.shape_cast %75 : vector<4x32x256xbf16> to vector<128x256xbf16>
    %c128_35 = arith.constant 128 : index
    %c0_36 = arith.constant 0 : index
    %77 = vector.load %arg9[%c128_35, %c0_36] : memref<256x256xbf16, #tpu.memory_space<vmem>>, vector<128x256xbf16>
    tpu.vector_store %arg9[%c128_35, %c0_36], %76 {strides = array<i32>} : memref<256x256xbf16, #tpu.memory_space<vmem>>, vector<128x256xbf16>,
    %c0_37 = arith.constant 0 : index
    %c0_38 = arith.constant 0 : index
    %78 = vector.load %arg8[%c0_37, %c0_38] : memref<256x256xbf16, #tpu.memory_space<vmem>>, vector<256x256xbf16>
    %c0_39 = arith.constant 0 : index
    %c0_40 = arith.constant 0 : index
    %79 = vector.load %arg7[%c0_39, %c0_40] : memref<256x256xbf16, #tpu.memory_space<vmem>>, vector<256x256xbf16>
    %cst_41 = arith.constant dense<0.000000e+00> : vector<256x256xf32>
    %80 = tpu.matmul %78, %79, %cst_41 {dimension_numbers = #tpu.dot_dimension_numbers<[1], [1], [0], [0], [0, 0, 1, 0], [], []>} : vector<256x256xbf16>, vector<256x256xbf16>, vector<256x256xf32> -> vector<256x256xf32>
    %81 = arith.mulf %80, %2 : vector<256x256xf32>
    %82 = arith.truncf %81 : vector<256x256xf32> to vector<256x256xbf16>
    %c0_42 = arith.constant 0 : index
    %c0_43 = arith.constant 0 : index
    %83 = vector.load %arg9[%c0_42, %c0_43] : memref<256x256xbf16, #tpu.memory_space<vmem>>, vector<256x256xbf16>
    %cst_44 = arith.constant dense<0.000000e+00> : vector<256x256xf32>
    %84 = tpu.matmul %82, %83, %cst_44 {dimension_numbers = #tpu.dot_dimension_numbers<[1], [0], [0], [1], [0, 0, 1, 1], [], []>} : vector<256x256xbf16>, vector<256x256xbf16>, vector<256x256xf32> -> vector<256x256xf32>
    %85 = vector.extract_strided_slice %84 {offsets = [0, 0], sizes = [128, 256], strides = [1, 1]} : vector<256x256xf32> to vector<128x256xf32>
    %86 = arith.truncf %85 : vector<128x256xf32> to vector<128x256xbf16>
    %cst_45 = arith.constant dense<0.000000e+00> : vector<8x256xf32>
    %87 = tpu.matmul %1, %86, %cst_45 {dimension_numbers = #tpu.dot_dimension_numbers<[1], [0], [0], [1], [0, 0, 1, 1], [], []>} : vector<8x128xbf16>, vector<128x256xbf16>, vector<8x256xf32> -> vector<8x256xf32>
    %88 = vector.broadcast %3 : vector<8x1xf32> to vector<8x256xf32>
    %89 = arith.addf %87, %88 : vector<8x256xf32>
    %90 = vector.shape_cast %89 : vector<8x256xf32> to vector<1x8x256xf32>
    %cst_46 = arith.constant dense<0.000000e+00> : vector<1xf32>
    %91 = vector.multi_reduction <add>, %90, %cst_46 [1, 2] : vector<1x8x256xf32> to vector<1xf32>
    %92 = vector.shape_cast %91 : vector<1xf32> to vector<1x1x1xf32>
    %93 = vector.extract %92[0, 0, 0] : f32 from vector<1x1x1xf32>
    %cst_47 = arith.constant 4.8828125E-4 : f32
    %94 = arith.mulf %93, %cst_47 : f32
    %95 = vector.broadcast %94 : f32 to vector<8x256xf32>
    %96 = arith.subf %89, %95 : vector<8x256xf32>
    %97 = arith.mulf %96, %96 : vector<8x256xf32>
    %98 = vector.shape_cast %97 : vector<8x256xf32> to vector<1x8x256xf32>
    %cst_48 = arith.constant dense<0.000000e+00> : vector<1xf32>
    %99 = vector.multi_reduction <add>, %98, %cst_48 [1, 2] : vector<1x8x256xf32> to vector<1xf32>
    %100 = vector.shape_cast %99 : vector<1xf32> to vector<1x1x1xf32>
    %101 = vector.extract %100[0, 0, 0] : f32 from vector<1x1x1xf32>
    %cst_49 = arith.constant 4.8828125E-4 : f32
    %102 = arith.mulf %101, %cst_49 : f32
    %cst_50 = arith.constant 9.99999974E-6 : f32
    %103 = arith.addf %102, %cst_50 : f32
    %104 = math.rsqrt %103 : f32
    %105 = vector.broadcast %104 : f32 to vector<8x1xf32>
    %106 = arith.mulf %4, %105 : vector<8x1xf32>
    %107 = vector.broadcast %94 : f32 to vector<8x1xf32>
    %108 = arith.mulf %107, %106 : vector<8x1xf32>
    %109 = arith.subf %5, %108 : vector<8x1xf32>
    %110 = vector.broadcast %106 : vector<8x1xf32> to vector<8x256xf32>
    %111 = arith.mulf %89, %110 : vector<8x256xf32>
    %112 = vector.broadcast %109 : vector<8x1xf32> to vector<8x256xf32>
    %113 = arith.addf %111, %112 : vector<8x256xf32>
    %c0_51 = arith.constant 0 : index
    %c0_52 = arith.constant 0 : index
    %c0_53 = arith.constant 0 : index
    %114 = vector.load %arg6[%c0_51, %c0_52, %c0_53] : memref<2x8x256xf32, #tpu.memory_space<vmem>>, vector<1x8x256xf32>
    %115 = vector.shape_cast %114 : vector<1x8x256xf32> to vector<8x256xf32>
    %116 = vector.shape_cast %113 : vector<8x256xf32> to vector<1x8x256xf32>
    tpu.vector_store %arg6[%c0_51, %c0_52, %c0_53], %116 {strides = array<i32>} : memref<2x8x256xf32, #tpu.memory_space<vmem>>, vector<1x8x256xf32>,
    %117 = vector.extract_strided_slice %84 {offsets = [128, 0], sizes = [128, 256], strides = [1, 1]} : vector<256x256xf32> to vector<128x256xf32>
    %118 = arith.truncf %117 : vector<128x256xf32> to vector<128x256xbf16>
    %cst_54 = arith.constant dense<0.000000e+00> : vector<8x256xf32>
    %119 = tpu.matmul %1, %118, %cst_54 {dimension_numbers = #tpu.dot_dimension_numbers<[1], [0], [0], [1], [0, 0, 1, 1], [], []>} : vector<8x128xbf16>, vector<128x256xbf16>, vector<8x256xf32> -> vector<8x256xf32>
    %120 = vector.broadcast %3 : vector<8x1xf32> to vector<8x256xf32>
    %121 = arith.addf %119, %120 : vector<8x256xf32>
    %122 = vector.shape_cast %121 : vector<8x256xf32> to vector<1x8x256xf32>
    %cst_55 = arith.constant dense<0.000000e+00> : vector<1xf32>
    %123 = vector.multi_reduction <add>, %122, %cst_55 [1, 2] : vector<1x8x256xf32> to vector<1xf32>
    %124 = vector.shape_cast %123 : vector<1xf32> to vector<1x1x1xf32>
    %125 = vector.extract %124[0, 0, 0] : f32 from vector<1x1x1xf32>
    %cst_56 = arith.constant 4.8828125E-4 : f32
    %126 = arith.mulf %125, %cst_56 : f32
    %127 = vector.broadcast %126 : f32 to vector<8x256xf32>
    %128 = arith.subf %121, %127 : vector<8x256xf32>
    %129 = arith.mulf %128, %128 : vector<8x256xf32>
    %130 = vector.shape_cast %129 : vector<8x256xf32> to vector<1x8x256xf32>
    %cst_57 = arith.constant dense<0.000000e+00> : vector<1xf32>
    %131 = vector.multi_reduction <add>, %130, %cst_57 [1, 2] : vector<1x8x256xf32> to vector<1xf32>
    %132 = vector.shape_cast %131 : vector<1xf32> to vector<1x1x1xf32>
    %133 = vector.extract %132[0, 0, 0] : f32 from vector<1x1x1xf32>
    %cst_58 = arith.constant 4.8828125E-4 : f32
    %134 = arith.mulf %133, %cst_58 : f32
    %cst_59 = arith.constant 9.99999974E-6 : f32
    %135 = arith.addf %134, %cst_59 : f32
    %136 = math.rsqrt %135 : f32
    %137 = vector.broadcast %136 : f32 to vector<8x1xf32>
    %138 = arith.mulf %4, %137 : vector<8x1xf32>
    %139 = vector.broadcast %126 : f32 to vector<8x1xf32>
    %140 = arith.mulf %139, %138 : vector<8x1xf32>
    %141 = arith.subf %5, %140 : vector<8x1xf32>
    %142 = vector.broadcast %138 : vector<8x1xf32> to vector<8x256xf32>
    %143 = arith.mulf %121, %142 : vector<8x256xf32>
    %144 = vector.broadcast %141 : vector<8x1xf32> to vector<8x256xf32>
    %145 = arith.addf %143, %144 : vector<8x256xf32>
    %c1_60 = arith.constant 1 : index
    %c0_61 = arith.constant 0 : index
    %c0_62 = arith.constant 0 : index
    %146 = vector.load %arg6[%c1_60, %c0_61, %c0_62] : memref<2x8x256xf32, #tpu.memory_space<vmem>>, vector<1x8x256xf32>
    %147 = vector.shape_cast %146 : vector<1x8x256xf32> to vector<8x256xf32>
    %148 = vector.shape_cast %145 : vector<8x256xf32> to vector<1x8x256xf32>
    tpu.vector_store %arg6[%c1_60, %c0_61, %c0_62], %148 {strides = array<i32>} : memref<2x8x256xf32, #tpu.memory_space<vmem>>, vector<1x8x256xf32>,
    return
  }
  func.func @transform_0(%arg0: i32) -> (i32, i32, i32) {
    %c0_i32 = arith.constant 0 : i32
    %c0_i32_0 = arith.constant 0 : i32
    %c0_i32_1 = arith.constant 0 : i32
    return %arg0, %c0_i32, %c0_i32_0 : i32, i32, i32
  }
  func.func @transform_1(%arg0: i32) -> (i32, i32) {
    %c0_i32 = arith.constant 0 : i32
    %c0_i32_0 = arith.constant 0 : i32
    %c0_i32_1 = arith.constant 0 : i32
    return %c0_i32, %c0_i32_0 : i32, i32
  }
  func.func @transform_2(%arg0: i32) -> (i32, i32) {
    %c0_i32 = arith.constant 0 : i32
    %c0_i32_0 = arith.constant 0 : i32
    %c0_i32_1 = arith.constant 0 : i32
    return %c0_i32, %c0_i32_0 : i32, i32
  }
  func.func @transform_3(%arg0: i32) -> (i32, i32) {
    %c0_i32 = arith.constant 0 : i32
    %c0_i32_0 = arith.constant 0 : i32
    %c0_i32_1 = arith.constant 0 : i32
    return %c0_i32, %c0_i32_0 : i32, i32
  }
  func.func @transform_4(%arg0: i32) -> (i32, i32) {
    %c0_i32 = arith.constant 0 : i32
    %c0_i32_0 = arith.constant 0 : i32
    %c0_i32_1 = arith.constant 0 : i32
    return %c0_i32, %c0_i32_0 : i32, i32
  }
  func.func @transform_5(%arg0: i32) -> (i32, i32, i32) {
    %c0_i32 = arith.constant 0 : i32
    %c0_i32_0 = arith.constant 0 : i32
    %c0_i32_1 = arith.constant 0 : i32
    return %arg0, %c0_i32, %c0_i32_0 : i32, i32, i32
  }
}

</mosaic_0001>

<bundles_post_ra>
// kernel: tpu_custom_call.1
= control target key start
LH: loop header
LB: loop body
LE: loop exit
PB: predicated region body
PF: predicated region fallthrough
CT: control target
= control target key end

     0   :  { %10 = vsyncpa [#allocation6], 0  ;;  %s6597_s0 = inlined_call_operand.vmem [shape: bf16[2,8,256], index: 0, kind: input, shape index: {}]   ;;  %s6598_s1 = inlined_call_operand.vmem [shape: bf16[384,8], index: 1, kind: input, shape index: {}]   ;;  %s6599_s2 = inlined_call_operand.vmem [shape: bf16[8,128], index: 2, kind: input, shape index: {}]   ;;  %s6600_s3 = inlined_call_operand.vmem [shape: f32[8,3], index: 3, kind: input, shape index: {}]   ;;  %s6601_s4 = inlined_call_operand.hbm [shape: f32[256,256], index: 4, kind: input, shape index: {}]   ;;  %s6602_s5 = inlined_call_operand.hbm [shape: f32[2,8,256], index: 5, kind: output, shape index: {}]  }
   0x1   :  { %11 = vsyncpa [#allocation7], 0  ;;  %s4863_s18 = smov [#allocation5]  }
   0x2   :  { %s25_s19 = sshll.u32 %s4863_s18, 4  ;;  %s26_s19 = int_to_ptr.vmem [resolvable:$true] %s25_s19 }
   0x3   :  { %s4827_s20 = scalar_lea.vmem %s26_s19, 8192  ;;  %p4832_p1 = scmp.lt.s32.totalorder %s26_s19, %s26_s19 }
   0x4   :  { %p4828_p0 = scmp.ne.s32.totalorder %s26_s19, %s4827_s20  ;;  %p4833_p2 = scmp.lt.s32.totalorder %s4827_s20, %s4827_s20 }
   0x6   :  { %p4834_p3 = por %p4833_p2, %p4832_p1 }
   0x8   :  { %p4835_p4 = pnand %p4834_p3, %p4828_p0 }
   0xa   :  { %4838 = shalt.err (!%p4835_p4)
}
   0xb   :  { %s4864_s21 = smov 256   ;;  %s4865_s22 = smov 16  }
   0xc   :  { %31 = dma.hbm_to_vmem [thread:$0]  %s6601_s4, 8192, %s26_s19, [#allocation6], %s4864_s21, %s4864_s21, %s4865_s22  }
   0xd   :  { %4859 = dma.done.wait [#allocation6], 8192  }
   0xe   :  { %4860 = vsyncadd [#allocation6], 4294959104  ;;  %v6603_v0 = vmov 0   ;;  %v150_v1 = vld [vmem:[%s6597_s0] sm:$0xff]  ;;  %vm349_vm0 = vcmask 1043456   ;;  %v4047_v6 = vld [vmem:[%s6597_s0 + $0x8] sm:$0xff] }
   0xf   :  { %388 = vmatprep.mubr.bf16.mxu0 %v6603_v0  ;;  %1538 = vmatprep.mubr.bf16.mxu1 %v6603_v0  ;;  %v3973_v2 = vcombine.high %v150_v1, %v150_v1  ;;  %v3972_v3 = vcombine.low %v150_v1, %v150_v1  ;;  %v4437_v5 = vld [vmem:[%s6598_s1] sm:$0xff]   ;;  %vm276_vm1 = vcmask 64512   ;;  %v4049_v7 = vcombine.high %v4047_v6, %v4047_v6  ;;  %v4438_v10 = vld [vmem:[%s6598_s1 + $0x8] sm:$0xff]   ;;  %v4439_v11 = vld [vmem:[%s6598_s1 + $0x10] sm:$0xff]   ;;  %s4868_s9 = smov 1   ;;  %s4870_s14 = smov [#allocation8]  }
  0x10   :  { %4431 = vset.pattern.permute.xlu0 %v6603_v0  ;;  %v4048_v8 = vcombine.low %v4047_v6, %v4047_v6  ;;  %v4442_v12 = vld [vmem:[%s6598_s1 + $0x18] sm:$0xff]   ;;  %v4443_v13 = vld [vmem:[%s6598_s1 + $0x20] sm:$0xff]   ;;  %v4444_v14 = vld [vmem:[%s6598_s1 + $0x28] sm:$0xff]   ;;  %s3936_s15 = sshll.u32 %s4870_s14, 4  ;;  %s3937_s15 = int_to_ptr.vmem [resolvable:$true] %s3936_s15 }
  0x11   :  { %3974 = vmatprep.subr.msk.bf16.mxu0 %vm349_vm0, %v3973_v2  ;;  %v351_v4 = vsel %vm349_vm0, %v3972_v3, 0  ;;  %4050 = vmatprep.subr.msk.bf16.mxu1 %vm349_vm0, %v4049_v7  ;;  %v4445_v15 = vld [vmem:[%s6598_s1 + $0x30] sm:$0xff]   ;;  %v4446_v16 = vld [vmem:[%s6598_s1 + $0x38] sm:$0xff]   ;;  %v4447_v17 = vld [vmem:[%s6598_s1 + $0x40] sm:$0xff]   ;;  %s4839_s16 = scalar_lea.vmem %s3937_s15, 512  ;;  %p4844_p6 = scmp.lt.s32.totalorder %s3937_s15, %s3937_s15 }
  0x12   :  { %371 = vmatpush1.bf16.msra.mxu0 %v351_v4  ;;  %v1501_v9 = vsel %vm349_vm0, %v4048_v8, 0  ;;  %v4448_v18 = vld [vmem:[%s6598_s1 + $0x48] sm:$0xff]   ;;  %v4449_v19 = vld [vmem:[%s6598_s1 + $0x50] sm:$0xff]   ;;  %v4450_v20 = vld [vmem:[%s6598_s1 + $0x58] sm:$0xff]   ;;  %p4840_p5 = scmp.ne.s32.totalorder %s3937_s15, %s4839_s16  ;;  %p4845_p7 = scmp.lt.s32.totalorder %s4839_s16, %s4839_s16 }
  0x13   :  { %1521 = vmatpush1.bf16.msra.mxu1 %v1501_v9  ;;  %v4451_v21 = vld [vmem:[%s6598_s1 + $0x60] sm:$0xff]   ;;  %v4452_v22 = vld [vmem:[%s6598_s1 + $0x68] sm:$0xff]   ;;  %v4453_v23 = vld [vmem:[%s6598_s1 + $0x70] sm:$0xff]  }
  0x14   :  { %v4454_v24 = vld [vmem:[%s6598_s1 + $0x78] sm:$0xff]   ;;  %p4846_p8 = por %p4845_p7, %p4844_p6 }
  0x15   :  { %3975 = vmatmul.mubr.msk.bf16.vlgmr.msra.gmra.mxu0 %vm276_vm1, %v4437_v5 }
  0x16   :  { %398 = vmatprep.mubr.bf16.mxu0 %v6603_v0  ;;  %4051 = vmatmul.mubr.msk.bf16.vlgmr.msra.gmra.mxu1 %vm276_vm1, %v4437_v5  ;;  %p4847_p9 = pnand %p4846_p8, %p4840_p5 }
  0x17   :  { %1548 = vmatprep.mubr.bf16.mxu1 %v6603_v0 }
  0x1d   :  { %3976 = vmatmul.mubr.msk.bf16.gmra.mxu0 %vm276_vm1, %v4438_v10 }
  0x1e   :  { %408 = vmatprep.mubr.bf16.mxu0 %v6603_v0  ;;  %4052 = vmatmul.mubr.msk.bf16.gmra.mxu1 %vm276_vm1, %v4438_v10 }
  0x1f   :  { %1558 = vmatprep.mubr.bf16.mxu1 %v6603_v0 }
  0x25   :  { %3977 = vmatmul.mubr.msk.bf16.gmra.mxu0 %vm276_vm1, %v4439_v11 }
  0x26   :  { %418 = vmatprep.mubr.bf16.mxu0 %v6603_v0  ;;  %4053 = vmatmul.mubr.msk.bf16.gmra.mxu1 %vm276_vm1, %v4439_v11 }
  0x27   :  { %1568 = vmatprep.mubr.bf16.mxu1 %v6603_v0 }
  0x2d   :  { %3978 = vmatmul.mubr.msk.bf16.gmra.mxu0 %vm276_vm1, %v4442_v12 }
  0x2e   :  { %428 = vmatprep.mubr.bf16.mxu0 %v6603_v0  ;;  %4054 = vmatmul.mubr.msk.bf16.gmra.mxu1 %vm276_vm1, %v4442_v12 }
  0x2f   :  { %1578 = vmatprep.mubr.bf16.mxu1 %v6603_v0 }
  0x35   :  { %3979 = vmatmul.mubr.msk.bf16.gmra.mxu0 %vm276_vm1, %v4443_v13 }
  0x36   :  { %438 = vmatprep.mubr.bf16.mxu0 %v6603_v0  ;;  %4055 = vmatmul.mubr.msk.bf16.gmra.mxu1 %vm276_vm1, %v4443_v13 }
  0x37   :  { %1588 = vmatprep.mubr.bf16.mxu1 %v6603_v0 }
  0x3d   :  { %3980 = vmatmul.mubr.msk.bf16.gmra.mxu0 %vm276_vm1, %v4444_v14 }
  0x3e   :  { %448 = vmatprep.mubr.bf16.mxu0 %v6603_v0  ;;  %4056 = vmatmul.mubr.msk.bf16.gmra.mxu1 %vm276_vm1, %v4444_v14 }
  0x3f   :  { %1598 = vmatprep.mubr.bf16.mxu1 %v6603_v0 }
  0x45   :  { %3981 = vmatmul.mubr.msk.bf16.gmra.mxu0 %vm276_vm1, %v4445_v15 }
  0x46   :  { %458 = vmatprep.mubr.bf16.mxu0 %v6603_v0  ;;  %4057 = vmatmul.mubr.msk.bf16.gmra.mxu1 %vm276_vm1, %v4445_v15 }
  0x47   :  { %1608 = vmatprep.mubr.bf16.mxu1 %v6603_v0 }
  0x4d   :  { %3982 = vmatmul.mubr.msk.bf16.gmra.mxu0 %vm276_vm1, %v4446_v16 }
  0x4e   :  { %468 = vmatprep.mubr.bf16.mxu0 %v6603_v0  ;;  %4058 = vmatmul.mubr.msk.bf16.gmra.mxu1 %vm276_vm1, %v4446_v16 }
  0x4f   :  { %1618 = vmatprep.mubr.bf16.mxu1 %v6603_v0 }
  0x55   :  { %3983 = vmatmul.mubr.msk.bf16.gmra.mxu0 %vm276_vm1, %v4447_v17 }
  0x56   :  { %478 = vmatprep.mubr.bf16.mxu0 %v6603_v0  ;;  %4059 = vmatmul.mubr.msk.bf16.gmra.mxu1 %vm276_vm1, %v4447_v17 }
  0x57   :  { %1628 = vmatprep.mubr.bf16.mxu1 %v6603_v0 }
  0x5d   :  { %3984 = vmatmul.mubr.msk.bf16.gmra.mxu0 %vm276_vm1, %v4448_v18 }
  0x5e   :  { %488 = vmatprep.mubr.bf16.mxu0 %v6603_v0  ;;  %4060 = vmatmul.mubr.msk.bf16.gmra.mxu1 %vm276_vm1, %v4448_v18 }
  0x5f   :  { %1638 = vmatprep.mubr.bf16.mxu1 %v6603_v0 }
  0x65   :  { %3985 = vmatmul.mubr.msk.bf16.gmra.mxu0 %vm276_vm1, %v4449_v19 }
  0x66   :  { %498 = vmatprep.mubr.bf16.mxu0 %v6603_v0  ;;  %4061 = vmatmul.mubr.msk.bf16.gmra.mxu1 %vm276_vm1, %v4449_v19 }
  0x67   :  { %1648 = vmatprep.mubr.bf16.mxu1 %v6603_v0 }
  0x6d   :  { %3986 = vmatmul.mubr.msk.bf16.gmra.mxu0 %vm276_vm1, %v4450_v20 }
  0x6e   :  { %508 = vmatprep.mubr.bf16.mxu0 %v6603_v0  ;;  %4062 = vmatmul.mubr.msk.bf16.gmra.mxu1 %vm276_vm1, %v4450_v20 }
  0x6f   :  { %1658 = vmatprep.mubr.bf16.mxu1 %v6603_v0 }
  0x75   :  { %3987 = vmatmul.mubr.msk.bf16.gmra.mxu0 %vm276_vm1, %v4451_v21 }
  0x76   :  { %518 = vmatprep.mubr.bf16.mxu0 %v6603_v0  ;;  %4063 = vmatmul.mubr.msk.bf16.gmra.mxu1 %vm276_vm1, %v4451_v21 }
  0x77   :  { %1668 = vmatprep.mubr.bf16.mxu1 %v6603_v0 }
  0x7d   :  { %3988 = vmatmul.mubr.msk.bf16.gmra.mxu0 %vm276_vm1, %v4452_v22 }
  0x7e   :  { %528 = vmatprep.mubr.bf16.mxu0 %v6603_v0  ;;  %4064 = vmatmul.mubr.msk.bf16.gmra.mxu1 %vm276_vm1, %v4452_v22 }
  0x7f   :  { %1678 = vmatprep.mubr.bf16.mxu1 %v6603_v0 }
  0x85   :  { %3989 = vmatmul.mubr.msk.bf16.gmra.mxu0 %vm276_vm1, %v4453_v23 }
  0x86   :  { %538 = vmatprep.mubr.bf16.mxu0 %v6603_v0  ;;  %4065 = vmatmul.mubr.msk.bf16.gmra.mxu1 %vm276_vm1, %v4453_v23 }
  0x87   :  { %1688 = vmatprep.mubr.bf16.mxu1 %v6603_v0 }
  0x8d   :  { %3990 = vmatmul.mubr.msk.bf16.gmra.mxu0 %vm276_vm1, %v4454_v24 }
  0x8e   :  { %548 = vmatprep.mubr.bf16.mxu0 %v6603_v0  ;;  %4066 = vmatmul.mubr.msk.bf16.gmra.mxu1 %vm276_vm1, %v4454_v24 }
  0x8f   :  { %1698 = vmatprep.mubr.bf16.mxu1 %v6603_v0 }
  0xd5   :  { %v5028_v25 = vpop.f32.mrf.mxu0 }
  0xd6   :  { %v5032_v27 = vpop.f32.mrf.mxu1 }
  0xd7   :  { %v5030_v26 = vpop.f32.mrf.mxu0 }
  0xd8   :  { %v5038_v30 = vpop.f32.mrf.mxu1 }
  0xd9   :  { %v5034_v28 = vpop.f32.mrf.mxu0 }
  0xda   :  { %v1093_v29 = vmax.f32 %v5028_v25, %v5034_v28  ;;  %v5042_v32 = vpop.f32.mrf.mxu1 }
  0xdb   :  { %v5040_v31 = vpop.f32.mrf.mxu0  ;;  %v2243_v34 = vmax.f32 %v5032_v27, %v5042_v32 }
  0xdc   :  { %v1102_v35 = vmax.f32 %v5030_v26, %v5040_v31  ;;  %v5051_v37 = vpop.f32.mrf.mxu1 }
  0xdd   :  { %v5044_v33 = vpop.f32.mrf.mxu0  ;;  %v2252_v39 = vmax.f32 %v5038_v30, %v5051_v37 }
  0xde   :  { %v1094_v36 = vmax.f32 %v1093_v29, %v5044_v33  ;;  %v5058_v41 = vpop.f32.mrf.mxu1 }
  0xdf   :  { %v5053_v38 = vpop.f32.mrf.mxu0  ;;  %v2244_v43 = vmax.f32 %v2243_v34, %v5058_v41 }
  0xe0   :  { %v1103_v40 = vmax.f32 %v1102_v35, %v5053_v38  ;;  %v5061_v45 = vpop.f32.mrf.mxu1 }
  0xe1   :  { %v404_v42 = vpop.f32.mrf.mxu0  ;;  %v2253_v47 = vmax.f32 %v2252_v39, %v5061_v45 }
  0xe2   :  { %v1095_v44 = vmax.f32 %v1094_v36, %v404_v42  ;;  %v5067_v50 = vpop.f32.mrf.mxu1 }
  0xe3   :  { %v5063_v46 = vpop.f32.mrf.mxu0  ;;  %v2245_v52 = vmax.f32 %v2244_v43, %v5067_v50 }
  0xe4   :  { %v1096_v48 = vrot.slane %v1095_v44, 4  ;;  %v1104_v49 = vmax.f32 %v1103_v40, %v5063_v46  ;;  %v5072_v55 = vpop.f32.mrf.mxu1 }
  0xe5   :  { %v5069_v51 = vpop.f32.mrf.mxu0  ;;  %v2246_v57 = vrot.slane %v2245_v52, 4  ;;  %v2254_v58 = vmax.f32 %v2253_v47, %v5072_v55 }
  0xe6   :  { %v1097_v53 = vmax.f32 %v1095_v44, %v1096_v48  ;;  %v1105_v54 = vrot.slane %v1104_v49, 4  ;;  %v5077_v61 = vpop.f32.mrf.mxu1 }
  0xe7   :  { %v5074_v56 = vpop.f32.mrf.mxu0  ;;  %v2247_v63 = vmax.f32 %v2245_v52, %v2246_v57  ;;  %v2255_v1 = vrot.slane %v2254_v58, 4 }
  0xe8   :  { %v1098_v59 = vrot.slane %v1097_v53, 2  ;;  %v1106_v60 = vmax.f32 %v1104_v49, %v1105_v54  ;;  %v5083_v5 = vpop.f32.mrf.mxu1 }
  0xe9   :  { %v5079_v62 = vpop.f32.mrf.mxu0  ;;  %v2248_v7 = vrot.slane %v2247_v63, 2  ;;  %v2256_v8 = vmax.f32 %v2254_v58, %v2255_v1 }
  0xea   :  { %v1099_v2 = vmax.f32 %v1097_v53, %v1098_v59  ;;  %v1107_v3 = vrot.slane %v1106_v60, 2  ;;  %v1111_v4 = vmax.f32 %v5069_v51, %v5079_v62  ;;  %v5087_v11 = vpop.f32.mrf.mxu1 }
  0xeb   :  { %v5085_v6 = vpop.f32.mrf.mxu0  ;;  %v2249_v13 = vmax.f32 %v2247_v63, %v2248_v7  ;;  %v2257_v14 = vrot.slane %v2256_v8, 2  ;;  %v2261_v15 = vmax.f32 %v5077_v61, %v5087_v11 }
  0xec   :  { %v1100_v9 = vrot.slane %v1099_v2, 1  ;;  %v1108_v10 = vmax.f32 %v1106_v60, %v1107_v3  ;;  %v5094_v19 = vpop.f32.mrf.mxu1  ;;  %v1120_v20 = vmax.f32 %v5074_v56, %v5085_v6 }
  0xed   :  { %v5089_v12 = vpop.f32.mrf.mxu0  ;;  %v2250_v22 = vrot.slane %v2249_v13, 1  ;;  %v2258_v23 = vmax.f32 %v2256_v8, %v2257_v14  ;;  %v2270_v24 = vmax.f32 %v5083_v5, %v5094_v19 }
  0xee   :  { %v1101_v16 = vmax.f32 %v1099_v2, %v1100_v9  ;;  %v1109_v17 = vrot.slane %v1108_v10, 1  ;;  %v1112_v18 = vmax.f32 %v1111_v4, %v5089_v12  ;;  %v5105_v39 = vpop.f32.mrf.mxu1 }
  0xef   :  { %v5098_v21 = vpop.f32.mrf.mxu0  ;;  %v2251_v47 = vmax.f32 %v2249_v13, %v2250_v22  ;;  %v2259_v48 = vrot.slane %v2258_v23, 1 }
  0xf0   :  { %v1165_v29 = vsub.f32 %v5028_v25, %v1101_v16  ;;  %v1167_v34 = vsub.f32 %v5034_v28, %v1101_v16  ;;  %v1169_v35 = vsub.f32 %v5044_v33, %v1101_v16  ;;  %v1171_v36 = vsub.f32 %v404_v42, %v1101_v16  ;;  %v5111_v25 = vpop.f32.mrf.mxu1 }
  0xf1   :  { %v1110_v40 = vmax.f32 %v1108_v10, %v1109_v17  ;;  %v1121_v43 = vmax.f32 %v1120_v20, %v5098_v21  ;;  %v5108_v44 = vpop.f32.mrf.mxu0  ;;  %v2317_v9 = vsub.f32 %v5042_v32, %v2251_v47  ;;  %v2319_v10 = vsub.f32 %v5058_v41, %v2251_v47 }
  0xf2   :  { %v1197_v49 = vmul.f32 1.442695, %v1165_v29  ;;  %v1201_v52 = vmul.f32 1.442695, %v1167_v34  ;;  %v1205_v53 = vmul.f32 1.442695, %v1169_v35  ;;  %v1113_v54 = vmax.f32 %v1112_v18, %v5108_v44  ;;  %v5120_v1 = vpop.f32.mrf.mxu1 }
  0xf3   :  { %v1209_v28 = vmul.f32 1.442695, %v1171_v36  ;;  %v1166_v33 = vsub.f32 %v5030_v26, %v1110_v40  ;;  %v1168_v42 = vsub.f32 %v5040_v31, %v1110_v40  ;;  %v1170_v57 = vsub.f32 %v5053_v38, %v1110_v40  ;;  %v5116_v58 = vpop.f32.mrf.mxu0 }
  0xf4   :  { %4463 = vpow2.f32 %v1197_v49  ;;  %v1172_v59 = vsub.f32 %v5063_v46, %v1110_v40  ;;  %v1114_v60 = vrot.slane %v1113_v54, 4  ;;  %v1122_v63 = vmax.f32 %v1121_v43, %v5116_v58  ;;  %v5124_v8 = vpop.f32.mrf.mxu1 }
  0xf5   :  { %4465 = vpow2.f32 %v1201_v52  ;;  %v1199_v2 = vmul.f32 1.442695, %v1166_v33  ;;  %v1203_v3 = vmul.f32 1.442695, %v1168_v42  ;;  %v1207_v4 = vmul.f32 1.442695, %v1170_v57  ;;  %v5122_v7 = vpop.f32.mrf.mxu0 }
  0xf6   :  { %4467 = vpow2.f32 %v1205_v53  ;;  %v1211_v26 = vmul.f32 1.442695, %v1172_v59  ;;  %v1115_v31 = vmax.f32 %v1113_v54, %v1114_v60  ;;  %v1123_v38 = vrot.slane %v1122_v63, 4  ;;  %v5132_v18 = vpop.f32.mrf.mxu1 }
  0xf7   :  { %4469 = vpow2.f32 %v1209_v28  ;;  %v2315_v46 = vsub.f32 %v5032_v27, %v2251_v47  ;;  %v5129_v13 = vpop.f32.mrf.mxu0  ;;  %v2321_v17 = vsub.f32 %v5067_v50, %v2251_v47  ;;  %v2351_v22 = vmul.f32 1.442695, %v2317_v9 }
  0xf8   :  { %4471 = vpow2.f32 %v1199_v2  ;;  %v1116_v14 = vrot.slane %v1115_v31, 2  ;;  %v1124_v16 = vmax.f32 %v1122_v63, %v1123_v38  ;;  %v2355_v29 = vmul.f32 1.442695, %v2319_v10  ;;  %v5136_v41 = vpop.f32.mrf.mxu1 }
  0xf9   :  { %4473 = vpow2.f32 %v1203_v3  ;;  %v2347_v20 = vmul.f32 1.442695, %v2315_v46  ;;  %v5134_v34 = vpop.f32.mrf.mxu0  ;;  %v2359_v35 = vmul.f32 1.442695, %v2321_v17  ;;  %v2260_v36 = vmax.f32 %v2258_v23, %v2259_v48 }
  0xfa   :  { %4475 = vpow2.f32 %v1207_v4  ;;  %v1117_v27 = vmax.f32 %v1115_v31, %v1116_v14  ;;  %v1125_v32 = vrot.slane %v1124_v16, 2  ;;  %v1129_v40 = vmax.f32 %v5122_v7, %v5134_v34  ;;  %v5150_v53 = vpop.f32.mrf.mxu1 }
  0xfb   :  { %4477 = vpow2.f32 %v1211_v26  ;;  %v5140_v50 = vpop.f32.mrf.mxu0  ;;  %v5146_v43 = vmax.f32 %v2261_v15, %v5105_v39  ;;  %v2316_v23 = vsub.f32 %v5038_v30, %v2260_v36  ;;  %v2318_v48 = vsub.f32 %v5051_v37, %v2260_v36 }
  0xfc   :  { %v1118_v47 = vrot.slane %v1117_v27, 1  ;;  %v1126_v49 = vmax.f32 %v1124_v16, %v1125_v32  ;;  %4479 = vpow2.f32 %v2347_v20  ;;  %v1138_v52 = vmax.f32 %v5129_v13, %v5140_v50  ;;  %v5158_v57 = vpop.f32.mrf.mxu1 }
  0xfd   :  { %4481 = vpow2.f32 %v2351_v22  ;;  %v2320_v54 = vsub.f32 %v5061_v45, %v2260_v36  ;;  %v5155_v28 = vpop.f32.mrf.mxu0  ;;  %v2322_v42 = vsub.f32 %v5072_v55, %v2260_v36  ;;  %v2349_v59 = vmul.f32 1.442695, %v2316_v23 }
  0xfe   :  { %v1119_v33 = vmax.f32 %v1117_v27, %v1118_v47  ;;  %v1127_v15 = vrot.slane %v1126_v49, 1  ;;  %4483 = vpow2.f32 %v2355_v29  ;;  %v2353_v60 = vmul.f32 1.442695, %v2318_v48  ;;  %v5168_v4 = vpop.f32.mrf.mxu1 }
  0xff   :  { %4485 = vpow2.f32 %v2359_v35  ;;  %v5160_v63 = vmul.f32 1.442695, %v2320_v54  ;;  %v5162_v2 = vpop.f32.mrf.mxu0  ;;  %v5172_v31 = vmul.f32 1.442695, %v2322_v42  ;;  %v1130_v38 = vmax.f32 %v1129_v40, %v5155_v28 }
 0x100   :  { %v1173_v30 = vsub.f32 %v5069_v51, %v1119_v33  ;;  %v1175_v37 = vsub.f32 %v5079_v62, %v1119_v33  ;;  %v1177_v45 = vsub.f32 %v5089_v12, %v1119_v33  ;;  %v1179_v3 = vsub.f32 %v5108_v44, %v1119_v33  ;;  %v5179_v12 = vpop.f32.mrf.mxu1 }
 0x101   :  { %v5170_v55 = vpop.eup %4463  ;;  %v1128_v26 = vmax.f32 %v1126_v49, %v1127_v15  ;;  %4487 = vpow2.f32 %v2349_v59  ;;  %v5175_v46 = vpop.f32.mrf.mxu0  ;;  %v1139_v35 = vmax.f32 %v1138_v52, %v5162_v2 }
 0x102   :  { %6732 = vst [vmem:[#allocation11_spill] sm:$0xff] %v5170_v55  ;;  %v5177_v9 = vpop.eup %4465  ;;  %v1213_v51 = vmul.f32 1.442695, %v1173_v30  ;;  %v1217_v62 = vmul.f32 1.442695, %v1175_v37  ;;  %4489 = vpow2.f32 %v2353_v60  ;;  %v5194_v36 = vpop.f32.mrf.mxu1  ;;  %v2271_v37 = vmax.f32 %v2270_v24, %v5111_v25 }
 0x103   :  { %6733 = vst [vmem:[#allocation12_spill] sm:$0xff] %v5177_v9  ;;  %v1221_v10 = vmul.f32 1.442695, %v1177_v45  ;;  %v5181_v44 = vpop.eup %4467  ;;  %v1261_v14 = vadd.f32 %v5177_v9, %v5170_v55  ;;  %v1225_v16 = vmul.f32 1.442695, %v1179_v3  ;;  %v1174_v17 = vsub.f32 %v5074_v56, %v1128_v26  ;;  %v5187_v22 = vpop.f32.mrf.mxu0 }
 0x104   :  { %6734 = vst [vmem:[#allocation13_spill] sm:$0xff] %v5181_v44  ;;  %v1176_v20 = vsub.f32 %v5085_v6, %v1128_v26  ;;  %v5189_v29 = vpop.eup %4469  ;;  %4491 = vpow2.f32 %v1213_v51  ;;  %v1178_v27 = vsub.f32 %v5098_v21, %v1128_v26  ;;  %v1180_v32 = vsub.f32 %v5116_v58, %v1128_v26  ;;  %v5204_v54 = vpop.f32.mrf.mxu1 }
 0x105   :  { %6735 = vst [vmem:[#allocation14_spill] sm:$0xff] %v5189_v29  ;;  %v5196_v40 = vpop.eup %4471  ;;  %v1262_v47 = vadd.f32 %v5181_v44, %v1261_v14  ;;  %4493 = vpow2.f32 %v1217_v62  ;;  %v1215_v56 = vmul.f32 1.442695, %v1174_v17  ;;  %v5199_v49 = vpop.f32.mrf.mxu0  ;;  %v1131_v58 = vmax.f32 %v1130_v38, %v5175_v46 }
 0x106   :  { %6736 = vst [vmem:[#allocation15_spill] sm:$0xff] %v5196_v40  ;;  %v1219_v6 = vmul.f32 1.442695, %v1176_v20  ;;  %v5201_v23 = vpop.eup %4473  ;;  %4495 = vpow2.f32 %v1221_v10  ;;  %v1223_v48 = vmul.f32 1.442695, %v1178_v27  ;;  %v1140_v42 = vmax.f32 %v1139_v35, %v5187_v22  ;;  %v5222_v3 = vpop.f32.mrf.mxu1 }
 0x107   :  { %6737 = vst [vmem:[#allocation16_spill] sm:$0xff] %v5201_v23  ;;  %v1227_v21 = vmul.f32 1.442695, %v1180_v32  ;;  %v5206_v52 = vpop.eup %4475  ;;  %v1263_v33 = vadd.f32 %v5189_v29, %v1262_v47  ;;  %v1270_v15 = vadd.f32 %v5201_v23, %v5196_v40  ;;  %4497 = vpow2.f32 %v1225_v16  ;;  %v5212_v59 = vpop.f32.mrf.mxu0 }
 0x108   :  { %6738 = vst [vmem:[#allocation17_spill] sm:$0xff] %v5206_v52  ;;  %v5214_v60 = vpop.eup %4477  ;;  %4499 = vpow2.f32 %v1215_v56  ;;  %v1132_v30 = vrot.slane %v1131_v58, 4  ;;  %v2263_v45 = vmax.f32 %v5146_v43, %v5120_v1  ;;  %v1141_v62 = vrot.slane %v1140_v42, 4  ;;  %v5232_v20 = vpop.f32.mrf.mxu1 }
 0x109   :  { %6739 = vst [vmem:[#allocation18_spill] sm:$0xff] %v5214_v60  ;;  %v5224_v26 = vpop.eup %4479  ;;  %v1264_v38 = vrot.slane %v1263_v33, 4  ;;  %v1271_v51 = vadd.f32 %v5206_v52, %v1270_v15  ;;  %4501 = vpow2.f32 %v1219_v6  ;;  %v5227_v10 = vpop.f32.mrf.mxu0  ;;  %v2272_v24 = vmax.f32 %v2271_v37, %v5124_v8 }
 0x10a   :  { %6740 = vst [vmem:[#allocation19_spill] sm:$0xff] %v5224_v26  ;;  %v5229_v14 = vpop.eup %4481  ;;  %4503 = vpow2.f32 %v1223_v48  ;;  %v1133_v16 = vmax.f32 %v1131_v58, %v1132_v30  ;;  %v2264_v17 = vrot.slane %v2263_v45, 4  ;;  %v1142_v48 = vmax.f32 %v1140_v42, %v1141_v62  ;;  %v5244_v15 = vpop.f32.mrf.mxu1 }
 0x10b   :  { %6741 = vst [vmem:[#allocation20_spill] sm:$0xff] %v5229_v14  ;;  %v5234_v43 = vpop.eup %4483  ;;  %v1265_v27 = vadd.f32 %v1264_v38, %v1263_v33  ;;  %v1272_v32 = vadd.f32 %v5214_v60, %v1271_v51  ;;  %4505 = vpow2.f32 %v1227_v21  ;;  %v2411_v35 = vadd.f32 %v5229_v14, %v5224_v26  ;;  %v5239_v47 = vpop.f32.mrf.mxu0 }
 0x10c   :  { %6742 = vst [vmem:[#allocation21_spill] sm:$0xff] %v5234_v43  ;;  %v5241_v56 = vpop.eup %4485  ;;  %4507 = vpow2.f32 %v5160_v63  ;;  %v1134_v6 = vrot.slane %v1133_v16, 2  ;;  %v2265_v58 = vmax.f32 %v2263_v45, %v2264_v17  ;;  %v1143_v0 = vrot.slane %v1142_v48, 2  ;;  %v5252_v63 = vpop.f32.mrf.mxu1 }
 0x10d   :  { %6743 = vst [vmem:[#allocation22_spill] sm:$0xff] %v5241_v56  ;;  %v1266_v30 = vrot.slane %v1265_v27, 2  ;;  %v1273_v37 = vrot.slane %v1272_v32, 4  ;;  %v2412_v33 = vadd.f32 %v5234_v43, %v2411_v35  ;;  %4509 = vpow2.f32 %v5172_v31  ;;  %v5248_v21 = vpop.f32.mrf.mxu0 }
 0x10e   :  { %v5250_v38 = vpop.eup %4487  ;;  %v1135_v51 = vmax.f32 %v1133_v16, %v1134_v6  ;;  %v2266_v14 = vrot.slane %v2265_v58, 2  ;;  %v2273_v26 = vrot.slane %v2272_v24, 4  ;;  %v1144_v16 = vmax.f32 %v1142_v48, %v1143_v0  ;;  %v5265_v9 = vpop.f32.mrf.mxu1 }
 0x10f   :  { %6744 = vst [vmem:[#allocation23_spill] sm:$0xff] %v5250_v38  ;;  %v5254_v42 = vpop.eup %4489  ;;  %v5256_v45 = vadd.f32 %v1266_v30, %v1265_v27  ;;  %v5258_v62 = vadd.f32 %v1273_v37, %v1272_v32  ;;  %v2413_v17 = vadd.f32 %v5241_v56, %v2412_v33  ;;  %v5261_v35 = vpop.f32.mrf.mxu0  ;;  %v1147_v32 = vmax.f32 %v5199_v49, %v5227_v10 }
 0x110   :  { %6745 = vst [vmem:[#allocation24_spill] sm:$0xff] %v5254_v42  ;;  %v2420_v31 = vadd.f32 %v5254_v42, %v5250_v38  ;;  %v1136_v43 = vrot.slane %v1135_v51, 1  ;;  %v2267_v6 = vmax.f32 %v2265_v58, %v2266_v14  ;;  %v2274_v30 = vmax.f32 %v2272_v24, %v2273_v26  ;;  %v5278_v14 = vpop.f32.mrf.mxu1 }
 0x111   :  { %6746 = vst [vmem:[#allocation25_spill] sm:$0xff] %v5256_v45  ;;  %6747 = vst [vmem:[#allocation26_spill] sm:$0xff] %v5258_v62  ;;  %v5267_v55 = vpop.eup %4491  ;;  %v2414_v27 = vrot.slane %v2413_v17, 4  ;;  %v5272_v37 = vpop.f32.mrf.mxu0  ;;  %v1145_v42 = vrot.slane %v1144_v16, 1  ;;  %v5285_v23 = vmax.f32 %v1147_v32, %v5248_v21 }
 0x112   :  { %6748 = vst [vmem:[#allocation27_spill] sm:$0xff] %v5267_v55  ;;  %v5274_v33 = vpop.eup %4493  ;;  %v1137_v56 = vmax.f32 %v1135_v51, %v1136_v43  ;;  %v2268_v38 = vrot.slane %v2267_v6, 1  ;;  %v2275_v58 = vrot.slane %v2274_v30, 2  ;;  %v5295_v52 = vpop.f32.mrf.mxu1 }
 0x113   :  { %6749 = vst [vmem:[#allocation28_spill] sm:$0xff] %v5274_v33  ;;  %v5280_v48 = vpop.eup %4495  ;;  %v1279_v26 = vadd.f32 %v5274_v33, %v5267_v55  ;;  %v2415_v24 = vadd.f32 %v2414_v27, %v2413_v17  ;;  %v5287_v40 = vpop.f32.mrf.mxu0  ;;  %6752 = vst [vmem:[#allocation31_spill] sm:$0xff] %v5295_v52  ;;  %v1146_v32 = vmax.f32 %v1144_v16, %v1145_v42 }
 0x114   :  { %6750 = vst [vmem:[#allocation29_spill] sm:$0xff] %v5280_v48  ;;  %v5289_v43 = vpop.eup %4497  ;;  %v1181_v51 = vsub.f32 %v5122_v7, %v1137_v56  ;;  %v1183_v0 = vsub.f32 %v5134_v34, %v1137_v56  ;;  %v1185_v29 = vsub.f32 %v5155_v28, %v1137_v56  ;;  %v1187_v60 = vsub.f32 %v5175_v46, %v1137_v56  ;;  %v5306_v46 = vpop.f32.mrf.mxu1 }
 0x115   :  { %6751 = vst [vmem:[#allocation30_spill] sm:$0xff] %v5289_v43  ;;  %v5297_v44 = vpop.eup %4499  ;;  %v1280_v17 = vadd.f32 %v5280_v48, %v1279_v26  ;;  %v2416_v27 = vrot.slane %v2415_v24, 2  ;;  %v5302_v55 = vpop.f32.mrf.mxu0  ;;  %v2269_v62 = vmax.f32 %v2267_v6, %v2268_v38  ;;  %v2276_v26 = vmax.f32 %v2274_v30, %v2275_v58 }
 0x116   :  { %6753 = vst [vmem:[#allocation32_spill] sm:$0xff] %v5297_v44  ;;  %6754 = vst [vmem:[#allocation33_spill] sm:$0xff] %v5302_v55  ;;  %v5304_v7 = vpop.eup %4501  ;;  %v1229_v34 = vmul.f32 1.442695, %v1181_v51  ;;  %v1233_v45 = vmul.f32 1.442695, %v1183_v0  ;;  %v1182_v0 = vsub.f32 %v5129_v13, %v1146_v32  ;;  %v1186_v38 = vsub.f32 %v5162_v2, %v1146_v32  ;;  %v5320_v6 = vpop.f32.mrf.mxu1 }
 0x117   :  { %6755 = vst [vmem:[#allocation34_spill] sm:$0xff] %v5304_v7  ;;  %v1237_v28 = vmul.f32 1.442695, %v1185_v29  ;;  %v5308_v56 = vpop.eup %4503  ;;  %v1281_v52 = vadd.f32 %v5289_v43, %v1280_v17  ;;  %v1288_v42 = vadd.f32 %v5304_v7, %v5297_v44  ;;  %v1241_v16 = vmul.f32 1.442695, %v1187_v60  ;;  %v5313_v33 = vpop.f32.mrf.mxu0  ;;  %6759 = vst [vmem:[#allocation38_spill] sm:$0xff] %v5320_v6 }
 0x118   :  { %6756 = vst [vmem:[#allocation35_spill] sm:$0xff] %v5308_v56  ;;  %6757 = vst [vmem:[#allocation36_spill] sm:$0xff] %v5313_v33  ;;  %v5315_v48 = vpop.eup %4505  ;;  %4511 = vpow2.f32 %v1229_v34  ;;  %v1184_v29 = vsub.f32 %v5140_v50, %v1146_v32  ;;  %v5325_v60 = vadd.f32 %v2416_v27, %v2415_v24  ;;  %v1188_v50 = vsub.f32 %v5187_v22, %v1146_v32  ;;  %v5333_v34 = vpop.f32.mrf.mxu1 }
 0x119   :  { %6758 = vst [vmem:[#allocation37_spill] sm:$0xff] %v5315_v48  ;;  %v5322_v51 = vpop.eup %4507  ;;  %v1282_v17 = vrot.slane %v1281_v52, 4  ;;  %v1289_v7 = vadd.f32 %v5308_v56, %v1288_v42  ;;  %4513 = vpow2.f32 %v1233_v45  ;;  %v5327_v30 = vpop.f32.mrf.mxu0  ;;  %v1231_v2 = vmul.f32 1.442695, %v1182_v0  ;;  %6764 = vst [vmem:[#allocation43_spill] sm:$0xff] %v5333_v34 }
 0x11a   :  { %6760 = vst [vmem:[#allocation39_spill] sm:$0xff] %v5322_v51  ;;  %6761 = vst [vmem:[#allocation40_spill] sm:$0xff] %v5325_v60  ;;  %v5329_v58 = vpop.eup %4509  ;;  %v2421_v13 = vadd.f32 %v5322_v51, %v2420_v31  ;;  %4515 = vpow2.f32 %v1237_v28  ;;  %v1235_v42 = vmul.f32 1.442695, %v1184_v29  ;;  %v1239_v27 = vmul.f32 1.442695, %v1186_v38  ;;  %v5339_v56 = vpop.f32.mrf.mxu1 }
 0x11b   :  { %6762 = vst [vmem:[#allocation41_spill] sm:$0xff] %v5327_v30  ;;  %6763 = vst [vmem:[#allocation42_spill] sm:$0xff] %v5329_v58  ;;  %v1283_v6 = vadd.f32 %v1282_v17, %v1281_v52  ;;  %v1290_v44 = vadd.f32 %v5315_v48, %v1289_v7  ;;  %4517 = vpow2.f32 %v1241_v16  ;;  %v5336_v24 = vpop.f32.mrf.mxu0  ;;  %v1243_v43 = vmul.f32 1.442695, %v1188_v50 }
 0x11c   :  { %6765 = vst [vmem:[#allocation44_spill] sm:$0xff] %v5336_v24  ;;  %v2422_v45 = vadd.f32 %v5329_v58, %v2421_v13  ;;  %4519 = vpow2.f32 %v1231_v2  ;;  %6766 = vst [vmem:[#allocation45_spill] sm:$0xff] %v5339_v56  ;;  %v2323_v22 = vsub.f32 %v5077_v61, %v2269_v62  ;;  %v2325_v16 = vsub.f32 %v5087_v11, %v2269_v62  ;;  %v5347_v29 = vpop.f32.mrf.mxu1 }
 0x11d   :  { %v1284_v31 = vrot.slane %v1283_v6, 2  ;;  %v1291_v28 = vrot.slane %v1290_v44, 4  ;;  %4521 = vpow2.f32 %v1235_v42  ;;  %v5342_v32 = vpop.f32.mrf.mxu0  ;;  %v2327_v0 = vsub.f32 %v5105_v39, %v2269_v62  ;;  %6767 = vst [vmem:[#allocation46_spill] sm:$0xff] %v5347_v29 }
 0x11e   :  { %v2423_v7 = vrot.slane %v2422_v45, 4  ;;  %4523 = vpow2.f32 %v1239_v27  ;;  %v2329_v13 = vsub.f32 %v5120_v1, %v2269_v62  ;;  %v2363_v61 = vmul.f32 1.442695, %v2323_v22  ;;  %v5356_v52 = vpop.f32.mrf.mxu1 }
 0x11f   :  { %v5349_v38 = vadd.f32 %v1284_v31, %v1283_v6  ;;  %v5351_v17 = vadd.f32 %v1291_v28, %v1290_v44  ;;  %v5354_v50 = vpop.f32.mrf.mxu0  ;;  %4525 = vpow2.f32 %v1243_v43  ;;  %v2367_v2 = vmul.f32 1.442695, %v2325_v16  ;;  %6770 = vst [vmem:[#allocation49_spill] sm:$0xff] %v5356_v52 }
 0x120   :  { %6769 = vst [vmem:[#allocation48_spill] sm:$0xff] %v5354_v50  ;;  %v2371_v42 = vmul.f32 1.442695, %v2327_v0  ;;  %v5358_v11 = vadd.f32 %v2423_v7, %v2422_v45  ;;  %v2375_v39 = vmul.f32 1.442695, %v2329_v13  ;;  %v2277_v56 = vrot.slane %v2276_v26, 1  ;;  %v5374_v31 = vpop.f32.mrf.mxu1 }
 0x121   :  { %6768 = vst [vmem:[#allocation47_spill] sm:$0xff] %v5349_v38  ;;  %v6772_v44 = vmax.f32 %v5212_v59, %v5239_v47  ;;  %v5364_v27 = vpop.f32.mrf.mxu0  ;;  %4527 = vpow2.f32 %v2363_v61  ;;  %v2288_v1 = vmax.f32 %v5136_v41, %v5158_v57  ;;  %v1149_v62 = vmax.f32 %v5285_v23, %v5272_v37  ;;  %6775 = vst [vmem:[#allocation52_spill] sm:$0xff] %v5374_v31 }
 0x122   :  { %6771 = vst [vmem:[#allocation50_spill] sm:$0xff] %v5358_v11  ;;  %6773 = vst [vmem:[#allocation51_spill] sm:$0xff] %v5364_v27  ;;  %v6774_v43 = vmax.f32 %v5132_v18, %v5150_v53  ;;  %4529 = vpow2.f32 %v2367_v2  ;;  %v2278_v28 = vmax.f32 %v2276_v26, %v2277_v56  ;;  %v5383_v61 = vpop.f32.mrf.mxu1 }
 0x123   :  { %v1157_v6 = vmax.f32 %v6772_v44, %v5261_v35  ;;  %v5379_v16 = vpop.f32.mrf.mxu0  ;;  %4531 = vpow2.f32 %v2371_v42  ;;  %v1150_v0 = vrot.slane %v1149_v62, 4  ;;  %v2289_v23 = vmax.f32 %v2288_v1, %v5179_v12  ;;  %6777 = vst [vmem:[#allocation54_spill] sm:$0xff] %v5383_v61 }
 0x124   :  { %v2280_v45 = vmax.f32 %v6774_v43, %v5168_v4  ;;  %6776 = vst [vmem:[#allocation53_spill] sm:$0xff] %v5379_v16  ;;  %4533 = vpow2.f32 %v2375_v39  ;;  %v2324_v56 = vsub.f32 %v5083_v5, %v2278_v28  ;;  %v2326_v26 = vsub.f32 %v5094_v19, %v2278_v28  ;;  %v5395_v29 = vpop.f32.mrf.mxu1 }
 0x125   :  { %v1158_v22 = vmax.f32 %v1157_v6, %v5287_v40  ;;  %v5385_v44 = vpop.eup %4511  ;;  %v2328_v2 = vsub.f32 %v5111_v25, %v2278_v28  ;;  %v5390_v6 = vpop.f32.mrf.mxu0  ;;  %v2330_v42 = vsub.f32 %v5124_v8, %v2278_v28  ;;  %v1151_v1 = vmax.f32 %v1149_v62, %v1150_v0  ;;  %6781 = vst [vmem:[#allocation58_spill] sm:$0xff] %v5395_v29 }
 0x126   :  { %v2281_v13 = vmax.f32 %v2280_v45, %v5194_v36  ;;  %6778 = vst [vmem:[#allocation55_spill] sm:$0xff] %v5385_v44  ;;  %6779 = vst [vmem:[#allocation56_spill] sm:$0xff] %v5390_v6  ;;  %v5392_v43 = vpop.eup %4513  ;;  %v2365_v39 = vmul.f32 1.442695, %v2324_v56  ;;  %v2369_v19 = vmul.f32 1.442695, %v2326_v26  ;;  %v5405_v28 = vpop.f32.mrf.mxu1  ;;  %v2290_v51 = vmax.f32 %v2289_v23, %v5204_v54 }
 0x127   :  { %6780 = vst [vmem:[#allocation57_spill] sm:$0xff] %v5392_v43  ;;  %v1159_v7 = vrot.slane %v1158_v22, 4  ;;  %v5397_v34 = vpop.eup %4515  ;;  %v1297_v5 = vadd.f32 %v5392_v43, %v5385_v44  ;;  %v2373_v61 = vmul.f32 1.442695, %v2328_v2  ;;  %v5401_v25 = vpop.f32.mrf.mxu0  ;;  %v2377_v31 = vmul.f32 1.442695, %v2330_v42 }
 0x128   :  { %v2282_v45 = vrot.slane %v2281_v13, 4  ;;  %6782 = vst [vmem:[#allocation59_spill] sm:$0xff] %v5397_v34  ;;  %6783 = vst [vmem:[#allocation60_spill] sm:$0xff] %v5401_v25  ;;  %v5403_v52 = vpop.eup %4517  ;;  %v1152_v58 = vrot.slane %v1151_v1, 2  ;;  %4535 = vpow2.f32 %v2365_v39  ;;  %v2306_v56 = vmax.f32 %v5232_v20, %v5252_v63 }
 0x129   :  { %6784 = vst [vmem:[#allocation61_spill] sm:$0xff] %v5403_v52  ;;  %v1160_v8 = vmax.f32 %v1158_v22, %v1159_v7  ;;  %6785 = vst [vmem:[#allocation62_spill] sm:$0xff] %v5405_v28  ;;  %v5407_v0 = vpop.eup %4519  ;;  %v1298_v29 = vadd.f32 %v5397_v34, %v1297_v5  ;;  %v5413_v26 = vpop.f32.mrf.mxu0  ;;  %4537 = vpow2.f32 %v2369_v19  ;;  %v2291_v23 = vrot.slane %v2290_v51, 4 }
 0x12a   :  { %v2283_v62 = vmax.f32 %v2281_v13, %v2282_v45  ;;  %6786 = vst [vmem:[#allocation63_spill] sm:$0xff] %v5407_v0  ;;  %6787 = vst [vmem:[#allocation64_spill] sm:$0xff] %v5413_v26  ;;  %v5415_v2 = vpop.eup %4521  ;;  %v1153_v42 = vmax.f32 %v1151_v1, %v1152_v58  ;;  %v5417_v13 = vpop.f32.mrf.mxu1  ;;  %4539 = vpow2.f32 %v2373_v61 }
 0x12b   :  { %6788 = vst [vmem:[#allocation65_spill] sm:$0xff] %v5415_v2  ;;  %v1161_v22 = vrot.slane %v1160_v8, 2  ;;  %6789 = vst [vmem:[#allocation66_spill] sm:$0xff] %v5417_v13  ;;  %v1299_v45 = vadd.f32 %v5403_v52, %v1298_v29  ;;  %v1306_v5 = vadd.f32 %v5415_v2, %v5407_v0  ;;  %v5422_v39 = vpop.f32.mrf.mxu0  ;;  %v5424_v28 = vpop.eup %4523  ;;  %4541 = vpow2.f32 %v2377_v31 }
 0x12c   :  { %v2284_v7 = vrot.slane %v2283_v62, 2  ;;  %6790 = vst [vmem:[#allocation67_spill] sm:$0xff] %v5422_v39  ;;  %6791 = vst [vmem:[#allocation68_spill] sm:$0xff] %v5424_v28  ;;  %v1154_v48 = vrot.slane %v1153_v42, 1  ;;  %v5426_v58 = vpop.f32.mrf.mxu1  ;;  %v5428_v1 = vpop.eup %4525  ;;  %v5432_v2 = vmax.f32 %v2290_v51, %v2291_v23  ;;  %v6795_v31 = vmax.f32 %v5222_v3, %v5244_v15 }
 0x12d   :  { %v1162_v43 = vmax.f32 %v1160_v8, %v1161_v22  ;;  %6792 = vst [vmem:[#allocation69_spill] sm:$0xff] %v5426_v58  ;;  %6793 = vst [vmem:[#allocation70_spill] sm:$0xff] %v5428_v1  ;;  %v1300_v29 = vrot.slane %v1299_v45, 4  ;;  %v1307_v44 = vadd.f32 %v5424_v28, %v1306_v5  ;;  %v5434_v61 = vpop.f32.mrf.mxu0  ;;  %v5447_v5 = vmax.f32 %v2306_v56, %v5278_v14 }
 0x12e   :  { %v2285_v19 = vmax.f32 %v2283_v62, %v2284_v7  ;;  %6794 = vst [vmem:[#allocation71_spill] sm:$0xff] %v5434_v61  ;;  %v1155_v52 = vmax.f32 %v1153_v42, %v1154_v48  ;;  %v2298_v8 = vmax.f32 %v6795_v31, %v5265_v9  ;;  %v5440_v62 = vpop.f32.mrf.mxu1  ;;  %v5442_v22 = vpop.eup %4527 }
 0x12f   :  { %v1163_v34 = vrot.slane %v1162_v43, 1  ;;  %6796 = vst [vmem:[#allocation72_spill] sm:$0xff] %v5440_v62  ;;  %6797 = vst [vmem:[#allocation73_spill] sm:$0xff] %v5442_v22  ;;  %v1301_v7 = vadd.f32 %v1300_v29, %v1299_v45  ;;  %v1308_v13 = vadd.f32 %v5428_v1, %v1307_v44  ;;  %v5449_v48 = vpop.f32.mrf.mxu0  ;;  %v5451_v42 = vpop.eup %4529 }
 0x130   :  { %v2286_v0 = vrot.slane %v2285_v19, 1  ;;  %6798 = vst [vmem:[#allocation74_spill] sm:$0xff] %v5449_v48  ;;  %6799 = vst [vmem:[#allocation75_spill] sm:$0xff] %v5451_v42  ;;  %v1189_v23 = vsub.f32 %v5199_v49, %v1155_v52  ;;  %v1191_v31 = vsub.f32 %v5227_v10, %v1155_v52  ;;  %v1193_v58 = vsub.f32 %v5248_v21, %v1155_v52  ;;  %v5457_v45 = vpop.f32.mrf.mxu1  ;;  %v5459_v44 = vpop.eup %4531  ;;  %v6804_v21 = vld [vmem:[#allocation31_spill] sm:$0xff] }
 0x131   :  { %v1195_v62 = vsub.f32 %v5272_v37, %v1155_v52  ;;  %6800 = vst [vmem:[#allocation76_spill] sm:$0xff] %v5457_v45  ;;  %6801 = vst [vmem:[#allocation77_spill] sm:$0xff] %v5459_v44  ;;  %v1302_v29 = vrot.slane %v1301_v7, 2  ;;  %v1309_v51 = vrot.slane %v1308_v13, 4  ;;  %v2429_v56 = vadd.f32 %v5451_v42, %v5442_v22  ;;  %v5463_v28 = vpop.f32.mrf.mxu0  ;;  %v5465_v60 = vpop.eup %4533 }
 0x132   :  { %v1164_v1 = vmax.f32 %v1162_v43, %v1163_v34  ;;  %6802 = vst [vmem:[#allocation78_spill] sm:$0xff] %v5463_v28  ;;  %6803 = vst [vmem:[#allocation79_spill] sm:$0xff] %v5465_v60  ;;  %v1245_v49 = vmul.f32 1.442695, %v1189_v23  ;;  %v1249_v10 = vmul.f32 1.442695, %v1191_v31  ;;  %v5468_v55 = vmax.f32 %v2298_v8, %v6804_v21  ;;  %v5470_v37 = vpop.f32.mrf.mxu1 }
 0x133   :  { %v1253_v11 = vmul.f32 1.442695, %v1193_v58  ;;  %6805 = vst [vmem:[#allocation31_spill] sm:$0xff] %v5470_v37  ;;  %v5472_v52 = vadd.f32 %v1302_v29, %v1301_v7  ;;  %v2430_v45 = vadd.f32 %v5459_v44, %v2429_v56  ;;  %v1257_v33 = vmul.f32 1.442695, %v1195_v62  ;;  %v5475_v42 = vpop.f32.mrf.mxu0 }
 0x134   :  { %v2287_v38 = vmax.f32 %v2285_v19, %v2286_v0  ;;  %6806 = vst [vmem:[#allocation80_spill] sm:$0xff] %v5475_v42  ;;  %4543 = vpow2.f32 %v1245_v49  ;;  %v1190_v34 = vsub.f32 %v5212_v59, %v1164_v1  ;;  %v1192_v43 = vsub.f32 %v5239_v47, %v1164_v1  ;;  %v5480_v23 = vpop.f32.mrf.mxu1 }
 0x135   :  { %v1194_v58 = vsub.f32 %v5261_v35, %v1164_v1  ;;  %6807 = vst [vmem:[#allocation81_spill] sm:$0xff] %v5480_v23  ;;  %v5482_v8 = vadd.f32 %v1309_v51, %v1308_v13  ;;  %v2431_v7 = vadd.f32 %v5465_v60, %v2430_v45  ;;  %4545 = vpow2.f32 %v1249_v10  ;;  %v5486_v62 = vpop.f32.mrf.mxu0  ;;  %v5488_v0 = vpop.eup %4535 }
 0x136   :  { %v1196_v31 = vsub.f32 %v5287_v40, %v1164_v1  ;;  %6808 = vst [vmem:[#allocation82_spill] sm:$0xff] %v5486_v62  ;;  %6809 = vst [vmem:[#allocation83_spill] sm:$0xff] %v5488_v0  ;;  %4547 = vpow2.f32 %v1253_v11  ;;  %v1247_v19 = vmul.f32 1.442695, %v1190_v34  ;;  %v1251_v59 = vmul.f32 1.442695, %v1192_v43  ;;  %v5490_v47 = vpop.f32.mrf.mxu1  ;;  %v5492_v35 = vpop.eup %4537 }
 0x137   :  { %v1255_v29 = vmul.f32 1.442695, %v1194_v58  ;;  %6810 = vst [vmem:[#allocation84_spill] sm:$0xff] %v5490_v47  ;;  %6811 = vst [vmem:[#allocation85_spill] sm:$0xff] %v5492_v35  ;;  %v2432_v56 = vrot.slane %v2431_v7, 4  ;;  %4549 = vpow2.f32 %v1257_v33  ;;  %v2331_v51 = vsub.f32 %v5132_v18, %v2287_v38  ;;  %v5495_v45 = vpop.f32.mrf.mxu0  ;;  %v5497_v40 = vpop.eup %4539 }
 0x138   :  { %v1259_v13 = vmul.f32 1.442695, %v1196_v31  ;;  %6812 = vst [vmem:[#allocation86_spill] sm:$0xff] %v5495_v45  ;;  %6813 = vst [vmem:[#allocation87_spill] sm:$0xff] %v5497_v40  ;;  %v2438_v1 = vadd.f32 %v5492_v35, %v5488_v0  ;;  %4551 = vpow2.f32 %v1247_v19  ;;  %v2333_v11 = vsub.f32 %v5150_v53, %v2287_v38  ;;  %v5503_v10 = vpop.f32.mrf.mxu1  ;;  %v5505_v34 = vpop.eup %4541 }
 0x139   :  { %v2335_v49 = vsub.f32 %v5168_v4, %v2287_v38  ;;  %6814 = vst [vmem:[#allocation88_spill] sm:$0xff] %v5503_v10  ;;  %6815 = vst [vmem:[#allocation89_spill] sm:$0xff] %v5505_v34  ;;  %v2433_v33 = vadd.f32 %v2432_v56, %v2431_v7  ;;  %4553 = vpow2.f32 %v1251_v59  ;;  %v2337_v18 = vsub.f32 %v5194_v36, %v2287_v38  ;;  %v5508_v58 = vpop.f32.mrf.mxu0 }
 0x13a   :  { %v2379_v43 = vmul.f32 1.442695, %v2331_v51  ;;  %6816 = vst [vmem:[#allocation90_spill] sm:$0xff] %v5508_v58  ;;  %v2439_v31 = vadd.f32 %v5497_v40, %v2438_v1  ;;  %4555 = vpow2.f32 %v1255_v29  ;;  %v2383_v23 = vmul.f32 1.442695, %v2333_v11  ;;  %v5511_v47 = vpop.f32.mrf.mxu1 }
 0x13b   :  { %v2387_v19 = vmul.f32 1.442695, %v2335_v49  ;;  %6817 = vst [vmem:[#allocation91_spill] sm:$0xff] %v5511_v47  ;;  %v2434_v53 = vrot.slane %v2433_v33, 2  ;;  %4557 = vpow2.f32 %v1259_v13  ;;  %v2391_v4 = vmul.f32 1.442695, %v2337_v18  ;;  %v5516_v59 = vpop.f32.mrf.mxu0 }
 0x13c   :  { %v6818_v37 = vrot.slane %v5432_v2, 2  ;;  %6819 = vst [vmem:[#allocation92_spill] sm:$0xff] %v5516_v59  ;;  %v2440_v36 = vadd.f32 %v5505_v34, %v2439_v31  ;;  %4559 = vpow2.f32 %v2379_v43  ;;  %v2300_v38 = vrot.slane %v5468_v55, 4  ;;  %v5522_v56 = vpop.f32.mrf.mxu1 }
 0x13d   :  { %v2308_v29 = vmax.f32 %v5447_v5, %v5306_v46  ;;  %v5525_v13 = vadd.f32 %v2434_v53, %v2433_v33  ;;  %4561 = vpow2.f32 %v2383_v23  ;;  %v5527_v11 = vpop.f32.mrf.mxu0 }
 0x13e   :  { %v2294_v7 = vmax.f32 %v5432_v2, %v6818_v37  ;;  %6820 = vst [vmem:[#allocation93_spill] sm:$0xff] %v5527_v11  ;;  %v2441_v2 = vrot.slane %v2440_v36, 4  ;;  %4563 = vpow2.f32 %v2387_v19  ;;  %v2301_v37 = vmax.f32 %v5468_v55, %v2300_v38  ;;  %v5530_v18 = vpop.f32.mrf.mxu1 }
 0x13f   :  { %v2309_v49 = vrot.slane %v2308_v29, 4  ;;  %4565 = vpow2.f32 %v2391_v4  ;;  %v5533_v31 = vpop.f32.mrf.mxu0 }
 0x140   :  { %v2295_v1 = vrot.slane %v2294_v7, 1  ;;  %6821 = vst [vmem:[#allocation94_spill] sm:$0xff] %v5533_v31  ;;  %v5537_v23 = vadd.f32 %v2441_v2, %v2440_v36  ;;  %v2302_v53 = vrot.slane %v2301_v37, 2  ;;  %v5539_v35 = vpop.f32.mrf.mxu1 }
 0x141   :  { %v2310_v51 = vmax.f32 %v2308_v29, %v2309_v49  ;;  %v5543_v19 = vpop.eup %4543  ;;  %v5549_v43 = vpop.f32.mrf.mxu0 }
 0x142   :  { %v2296_v5 = vmax.f32 %v2294_v7, %v2295_v1  ;;  %6822 = vst [vmem:[#allocation95_spill] sm:$0xff] %v5543_v19  ;;  %6823 = vst [vmem:[#allocation96_spill] sm:$0xff] %v5549_v43  ;;  %v5551_v36 = vpop.eup %4545  ;;  %v2303_v29 = vmax.f32 %v2301_v37, %v2302_v53  ;;  %v5553_v49 = vpop.f32.mrf.mxu1 }
 0x143   :  { %6824 = vst [vmem:[#allocation97_spill] sm:$0xff] %v5551_v36  ;;  %v2311_v2 = vrot.slane %v2310_v51, 2  ;;  %v5559_v33 = vpop.eup %4547  ;;  %v5563_v0 = vpop.f32.mrf.mxu0 }
 0x144   :  { %v2332_v38 = vsub.f32 %v5136_v41, %v2296_v5  ;;  %v2334_v4 = vsub.f32 %v5158_v57, %v2296_v5  ;;  %v2336_v7 = vsub.f32 %v5179_v12, %v2296_v5  ;;  %v2338_v1 = vsub.f32 %v5204_v54, %v2296_v5  ;;  %6825 = vst [vmem:[#allocation98_spill] sm:$0xff] %v5563_v0  ;;  %v5565_v37 = vpop.eup %4549  ;;  %v5567_v10 = vpop.f32.mrf.mxu1 }
 0x145   :  { %v1315_v57 = vadd.f32 %v5551_v36, %v5543_v19  ;;  %6826 = vst [vmem:[#allocation99_spill] sm:$0xff] %v5565_v37  ;;  %v2304_v34 = vrot.slane %v2303_v29, 1  ;;  %v2312_v40 = vmax.f32 %v2310_v51, %v2311_v2  ;;  %v5571_v55 = vpop.eup %4551 }
 0x146   :  { %v2381_v12 = vmul.f32 1.442695, %v2332_v38  ;;  %v2385_v54 = vmul.f32 1.442695, %v2334_v4  ;;  %v2389_v5 = vmul.f32 1.442695, %v2336_v7  ;;  %v5574_v38 = vpop.f32.mrf.mxu0  ;;  %v5581_v22 = vpop.f32.mrf.mxu1 }
 0x147   :  { %v2393_v53 = vmul.f32 1.442695, %v2338_v1  ;;  %6827 = vst [vmem:[#allocation100_spill] sm:$0xff] %v5571_v55  ;;  %v1316_v47 = vadd.f32 %v5559_v33, %v1315_v57  ;;  %6828 = vst [vmem:[#allocation101_spill] sm:$0xff] %v5574_v38  ;;  %v1311_v7 = vrot.slane %v5482_v8, 2  ;;  %v5579_v1 = vpop.eup %4553  ;;  %v2305_v51 = vmax.f32 %v2303_v29, %v2304_v34 }
 0x148   :  { %4567 = vpow2.f32 %v2381_v12  ;;  %6829 = vst [vmem:[#allocation102_spill] sm:$0xff] %v5579_v1  ;;  %v2313_v2 = vrot.slane %v2312_v40, 1  ;;  %v5585_v60 = vpop.eup %4555  ;;  %v1324_v12 = vadd.f32 %v5579_v1, %v5571_v55  ;;  %v5590_v4 = vpop.f32.mrf.mxu0 }
 0x149   :  { %4569 = vpow2.f32 %v2385_v54  ;;  %v1317_v57 = vadd.f32 %v5565_v37, %v1316_v47  ;;  %6830 = vst [vmem:[#allocation103_spill] sm:$0xff] %v5590_v4  ;;  %v5593_v44 = vadd.f32 %v1311_v7, %v5482_v8  ;;  %v5595_v34 = vpop.eup %4557  ;;  %v2339_v29 = vsub.f32 %v5222_v3, %v2305_v51  ;;  %v5600_v16 = vpop.f32.mrf.mxu1 }
 0x14a   :  { %4571 = vpow2.f32 %v2389_v5  ;;  %6831 = vst [vmem:[#allocation104_spill] sm:$0xff] %v5595_v34  ;;  %v2341_v54 = vsub.f32 %v5244_v15, %v2305_v51  ;;  %v2343_v41 = vsub.f32 %v5265_v9, %v2305_v51  ;;  %v5602_v47 = vpop.eup %4559  ;;  %v1325_v5 = vadd.f32 %v5585_v60, %v1324_v12  ;;  %v5606_v7 = vpop.f32.mrf.mxu0 }
 0x14b   :  { %4573 = vpow2.f32 %v2393_v53  ;;  %6832 = vst [vmem:[#allocation105_spill] sm:$0xff] %v5602_v47  ;;  %v1318_v1 = vrot.slane %v1317_v57, 4  ;;  %v2345_v55 = vsub.f32 %v6804_v21, %v2305_v51  ;;  %v2314_v8 = vmax.f32 %v2312_v40, %v2313_v2  ;;  %6833 = vst [vmem:[#allocation106_spill] sm:$0xff] %v5606_v7  ;;  %v5608_v27 = vpop.eup %4561  ;;  %v5612_v15 = vpop.f32.mrf.mxu1 }
 0x14c   :  { %6834 = vst [vmem:[#allocation107_spill] sm:$0xff] %v5608_v27  ;;  %v2395_v53 = vmul.f32 1.442695, %v2339_v29  ;;  %v2399_v3 = vmul.f32 1.442695, %v2341_v54  ;;  %v665_v9 = vmax.f32 %v5574_v38, %v5590_v4  ;;  %v5614_v19 = vpop.eup %4563  ;;  %v1326_v12 = vadd.f32 %v5595_v34, %v1325_v5  ;;  %v5619_v51 = vpop.f32.mrf.mxu0 }
 0x14d   :  { %v2403_v36 = vmul.f32 1.442695, %v2343_v41  ;;  %v1319_v37 = vadd.f32 %v1318_v1, %v1317_v57  ;;  %v2447_v21 = vadd.f32 %v5608_v27, %v5602_v47  ;;  %v2407_v40 = vmul.f32 1.442695, %v2345_v55  ;;  %6835 = vst [vmem:[#allocation108_spill] sm:$0xff] %v5619_v51  ;;  %v5621_v2 = vpop.eup %4565  ;;  %v5626_v4 = vpop.f32.mrf.mxu1 }
 0x14e   :  { %4575 = vpow2.f32 %v2395_v53  ;;  %v2340_v41 = vsub.f32 %v5232_v20, %v2314_v8  ;;  %v2342_v29 = vsub.f32 %v5252_v63, %v2314_v8  ;;  %v2344_v54 = vsub.f32 %v5278_v14, %v2314_v8  ;;  %666 = vmax.xlane.f32.xlu1 %v665_v9  ;;  %v5629_v55 = vpop.f32.mrf.mxu0 }
 0x14f   :  { %v1320_v1 = vrot.slane %v1319_v37, 2  ;;  %v1327_v57 = vrot.slane %v1326_v12, 4  ;;  %v2448_v5 = vadd.f32 %v5614_v19, %v2447_v21  ;;  %4577 = vpow2.f32 %v2399_v3  ;;  %6836 = vst [vmem:[#allocation109_spill] sm:$0xff] %v5629_v55  ;;  %v5632_v20 = vpop.f32.mrf.mxu1 }
 0x150   :  { %4579 = vpow2.f32 %v2403_v36  ;;  %v2346_v38 = vsub.f32 %v5306_v46, %v2314_v8  ;;  %v2397_v53 = vmul.f32 1.442695, %v2340_v41  ;;  %v2401_v27 = vmul.f32 1.442695, %v2342_v29  ;;  %v5635_v9 = vpop.f32.mrf.mxu0 }
 0x151   :  { %v1321_v63 = vadd.f32 %v1320_v1, %v1319_v37  ;;  %v1328_v47 = vadd.f32 %v1327_v57, %v1326_v12  ;;  %v2449_v14 = vadd.f32 %v5621_v2, %v2448_v5  ;;  %4581 = vpow2.f32 %v2407_v40  ;;  %6837 = vst [vmem:[#allocation110_spill] sm:$0xff] %v5635_v9  ;;  %v5639_v36 = vpop.f32.mrf.mxu1 }
 0x152   :  { %4583 = vpow2.f32 %v2397_v53  ;;  %v2405_v34 = vmul.f32 1.442695, %v2344_v54  ;;  %v2409_v21 = vmul.f32 1.442695, %v2346_v38  ;;  %v668_v3 = vmax.f32 %v5606_v7, %v5619_v51  ;;  %v5641_v41 = vpop.f32.mrf.mxu0 }
 0x153   :  { %v1322_v46 = vrot.slane %v1321_v63, 1  ;;  %v2450_v8 = vrot.slane %v2449_v14, 4  ;;  %4585 = vpow2.f32 %v2401_v27  ;;  %6838 = vst [vmem:[#allocation111_spill] sm:$0xff] %v5641_v41  ;;  %v671_v37 = vmax.f32 %v5629_v55, %v5635_v9  ;;  %v5650_v54 = vpop.f32.mrf.mxu1 }
 0x154   :  { %4587 = vpow2.f32 %v2405_v34  ;;  %669 = vmax.xlane.f32.xlu1 %v668_v3  ;;  %v1329_v40 = vrot.slane %v1328_v47, 2  ;;  %v1313_v38 = vrot.slane %v5593_v44, 1  ;;  %v5654_v57 = vpop.f32.mrf.mxu0  ;;  %v6842_v34 = vrot.slane %v5472_v52, 1 }
 0x155   :  { %v5645_v12 = vpop.eup %4567  ;;  %v2451_v27 = vadd.f32 %v2450_v8, %v2449_v14  ;;  %4589 = vpow2.f32 %v2409_v21  ;;  %672 = vmax.xlane.f32.xlu0 %v671_v37  ;;  %6841 = vst [vmem:[#allocation114_spill] sm:$0xff] %v5654_v57  ;;  %v1323_v5 = vadd.f32 %v1322_v46, %v1321_v63  ;;  %v674_v29 = vmax.f32 %v5641_v41, %v5654_v57  ;;  %v5666_v21 = vpop.f32.mrf.mxu1 }
 0x156   :  { %6839 = vst [vmem:[#allocation112_spill] sm:$0xff] %v5645_v12  ;;  %v5652_v1 = vpop.eup %4569  ;;  %v1305_v53 = vadd.f32 %v6842_v34, %v5472_v52  ;;  %v1330_v7 = vadd.f32 %v1329_v40, %v1328_v47  ;;  %v1314_v14 = vadd.f32 %v1313_v38, %v5593_v44  ;;  %v1293_v46 = vrot.slane %v5351_v17, 2 }
 0x157   :  { %6840 = vst [vmem:[#allocation113_spill] sm:$0xff] %v5652_v1  ;;  %v5659_v3 = vpop.eup %4571  ;;  %v2456_v51 = vadd.f32 %v5652_v1, %v5645_v12  ;;  %v2452_v63 = vrot.slane %v2451_v27, 2  ;;  %4591 = vrcp.f32 %v1323_v5  ;;  %v6845_v34 = vmax.f32 %v5549_v43, %v5563_v0  ;;  %v5679_v40 = vpop.f32.mrf.mxu1 }
 0x158   :  { %6843 = vst [vmem:[#allocation115_spill] sm:$0xff] %v5659_v3  ;;  %v5668_v8 = vpop.eup %4573  ;;  %v1331_v47 = vrot.slane %v1330_v7, 1  ;;  %4593 = vrcp.f32 %v1314_v14  ;;  %v1294_v5 = vadd.f32 %v1293_v46, %v5351_v17  ;;  %v6846_v14 = vld [vmem:[#allocation47_spill] sm:$0xff]  ;;  %v6852_v41 = vmax.f32 %v5527_v11, %v5533_v31 }
 0x159   :  { %6844 = vst [vmem:[#allocation116_spill] sm:$0xff] %v5668_v8  ;;  %v2457_v37 = vadd.f32 %v5659_v3, %v2456_v51  ;;  %663 = vmax.xlane.f32.xlu1 %v6845_v34  ;;  %v2453_v38 = vadd.f32 %v2452_v63, %v2451_v27  ;;  %675 = vmax.xlane.f32.xlu0 %v674_v29  ;;  %4595 = vrcp.f32 %v1305_v53  ;;  %v6847_v0 = vrot.slane %v6846_v14, 1  ;;  %v6848_v53 = vld [vmem:[#allocation26_spill] sm:$0xff]  ;;  %v6851_v34 = vld [vmem:[#allocation33_spill] sm:$0xff]  ;;  %v6872_v31 = vld [vmem:[#allocation63_spill] sm:$0xff] }
 0x15a   :  { %v1332_v57 = vadd.f32 %v1331_v47, %v1330_v7  ;;  %v1295_v29 = vrot.slane %v1294_v5, 1  ;;  %v1275_v63 = vrot.slane %v6848_v53, 2  ;;  %v6849_v7 = vmax.f32 %v5508_v58, %v5516_v59  ;;  %v6850_v47 = vld [vmem:[#allocation36_spill] sm:$0xff]  ;;  %v6884_v3 = vld [vmem:[#allocation37_spill] sm:$0xff] }
 0x15b   :  { %v2458_v51 = vadd.f32 %v5668_v8, %v2457_v37  ;;  %v1287_v44 = vadd.f32 %v6847_v0, %v6846_v14  ;;  %v5690_v43 = vpop.eup %4575  ;;  %v2454_v27 = vrot.slane %v2453_v38, 1  ;;  %v6853_v14 = vld [vmem:[#allocation25_spill] sm:$0xff] }
 0x15c   :  { %v5695_v46 = vpop.eup %4577  ;;  %4597 = vrcp.f32 %v1332_v57  ;;  %v1296_v9 = vadd.f32 %v1295_v29, %v1294_v5  ;;  %v1276_v59 = vadd.f32 %v1275_v63, %v6848_v53  ;;  %v6854_v58 = vrot.slane %v6853_v14, 1 }
 0x15d   :  { %v2459_v37 = vrot.slane %v2458_v51, 4  ;;  %657 = vmax.xlane.f32.xlu1 %v6849_v7  ;;  %v5704_v52 = vpop.eup %4579  ;;  %v2465_v17 = vadd.f32 %v5695_v46, %v5690_v43  ;;  %660 = vmax.xlane.f32.xlu0 %v6852_v41  ;;  %4599 = vrcp.f32 %v1287_v44  ;;  %v6855_v44 = vmax.f32 %v5463_v28, %v5475_v42 }
 0x15e   :  { %v5714_v7 = vpop.eup %4581  ;;  %v1269_v55 = vadd.f32 %v6854_v58, %v6853_v14  ;;  %4601 = vrcp.f32 %v1296_v9  ;;  %v1277_v5 = vrot.slane %v1276_v59, 1  ;;  %v2455_v63 = vadd.f32 %v2454_v27, %v2453_v38  ;;  %v6858_v58 = vld [vmem:[#allocation50_spill] sm:$0xff] }
 0x15f   :  { %v2460_v0 = vadd.f32 %v2459_v37, %v2458_v51  ;;  %v5721_v12 = vpop.eup %4583  ;;  %v2466_v41 = vadd.f32 %v5704_v52, %v2465_v17  ;;  %v6856_v14 = vmax.f32 %v5486_v62, %v5495_v45  ;;  %v6857_v38 = vrot.slane %v5525_v13, 1 }
 0x160   :  { %v5726_v53 = vpop.eup %4585  ;;  %4603 = vrcp.f32 %v1269_v55  ;;  %v1278_v1 = vadd.f32 %v1277_v5, %v1276_v59  ;;  %v6859_v5 = vmax.f32 %v5413_v26, %v5422_v39 }
 0x161   :  { %651 = vmax.xlane.f32.xlu1 %v6855_v44  ;;  %v2461_v51 = vrot.slane %v2460_v0, 2  ;;  %v5733_v37 = vpop.eup %4587  ;;  %v2467_v9 = vadd.f32 %v5714_v7, %v2466_v41  ;;  %v2474_v17 = vadd.f32 %v5726_v53, %v5721_v12  ;;  %654 = vmax.xlane.f32.xlu0 %v6856_v14  ;;  %v2443_v44 = vrot.slane %v5537_v23, 2 }
 0x162   :  { %v5742_v55 = vpop.eup %4589  ;;  %4605 = vrcp.f32 %v2455_v63  ;;  %v2437_v27 = vadd.f32 %v6857_v38, %v5525_v13  ;;  %v2425_v41 = vrot.slane %v6858_v58, 2  ;;  %v6860_v13 = vld [vmem:[#allocation40_spill] sm:$0xff] }
 0x163   :  { %v2462_v29 = vadd.f32 %v2461_v51, %v2460_v0  ;;  %v2468_v57 = vrot.slane %v2467_v9, 4  ;;  %v2475_v42 = vadd.f32 %v5733_v37, %v2474_v17  ;;  %4607 = vrcp.f32 %v1278_v1 }
 0x164   :  { %v5750_v28 = vadd.f32 %v2443_v44, %v5537_v23  ;;  %v4592_v59 = vpop.eup %4591  ;;  %4609 = vrcp.f32 %v2437_v27  ;;  %v5756_v51 = vadd.f32 %v2425_v41, %v6858_v58  ;;  %v6861_v63 = vrot.slane %v6860_v13, 1 }
 0x165   :  { %645 = vmax.xlane.f32.xlu1 %v6859_v5  ;;  %v2463_v0 = vrot.slane %v2462_v29, 1  ;;  %v4594_v38 = vpop.eup %4593  ;;  %v2469_v17 = vadd.f32 %v2468_v57, %v2467_v9  ;;  %v2476_v1 = vadd.f32 %v5742_v55, %v2475_v42  ;;  %v1347_v23 = vmul.f32 0.17677669, %v4592_v59  ;;  %v6863_v57 = vld [vmem:[#allocation99_spill] sm:$0xff] }
 0x166   :  { %v2419_v14 = vadd.f32 %v6861_v63, %v6860_v13  ;;  %v6862_v44 = vmax.f32 %v5434_v61, %v5449_v48  ;;  %v4596_v39 = vpop.eup %4595  ;;  %v1346_v27 = vmul.f32 0.17677669, %v4594_v38  ;;  %v6864_v42 = vld [vmem:[#allocation95_spill] sm:$0xff]  ;;  %v6865_v63 = vld [vmem:[#allocation97_spill] sm:$0xff]  ;;  %v6867_v38 = vld [vmem:[#allocation70_spill] sm:$0xff] }
 0x167   :  { %v2464_v26 = vadd.f32 %v2463_v0, %v2462_v29  ;;  %v2470_v41 = vrot.slane %v2469_v17, 2  ;;  %v2477_v45 = vrot.slane %v2476_v1, 4  ;;  %v1377_v13 = vmul.f32 %v5559_v33, %v1347_v23  ;;  %v6868_v0 = vld [vmem:[#allocation51_spill] sm:$0xff] }
 0x168   :  { %648 = vmax.xlane.f32.xlu0 %v6862_v44  ;;  %4611 = vrcp.f32 %v2419_v14  ;;  %v1379_v9 = vmul.f32 %v6863_v57, %v1347_v23  ;;  %v5770_v59 = vmul.f32 %v6864_v42, %v1347_v23  ;;  %v5773_v48 = vmul.f32 %v6865_v63, %v1347_v23  ;;  %v6866_v44 = vld [vmem:[#allocation68_spill] sm:$0xff]  ;;  %v6869_v14 = vld [vmem:[#allocation53_spill] sm:$0xff] }
 0x169   :  { %v5776_v5 = vmul.f32 %v6866_v44, %v1346_v27  ;;  %v5779_v29 = vmul.f32 %v6867_v38, %v1346_v27  ;;  %v6870_v58 = vmax.f32 %v6868_v0, %v6869_v14  ;;  %v4598_v61 = vpop.eup %4597  ;;  %v2471_v33 = vadd.f32 %v2470_v41, %v2469_v17 }
 0x16a   :  { %v5784_v62 = vadd.f32 %v2477_v45, %v2476_v1  ;;  %v4393_v57 = vpack.c.bf16 %v1379_v9, %v1377_v13  ;;  %v1345_v42 = vmul.f32 0.17677669, %v4596_v39  ;;  %v6871_v23 = vmax.f32 %v5390_v6, %v5401_v25  ;;  %v6873_v45 = vld [vmem:[#allocation59_spill] sm:$0xff]  ;;  %v6874_v39 = vld [vmem:[#allocation61_spill] sm:$0xff] }
 0x16b   :  { %639 = vmax.xlane.f32.xlu1 %v6870_v58  ;;  %v1348_v63 = vmul.f32 0.17677669, %v4598_v61  ;;  %v4391_v44 = vpack.c.bf16 %v5773_v48, %v5770_v59  ;;  %v4390_v38 = vpack.c.bf16 %v5779_v29, %v5776_v5  ;;  %v5794_v14 = vmul.f32 %v6872_v31, %v1346_v27  ;;  %v4600_v58 = vpop.eup %4599  ;;  %v6875_v13 = vld [vmem:[#allocation65_spill] sm:$0xff]  ;;  %v6876_v59 = vld [vmem:[#allocation104_spill] sm:$0xff]  ;;  %v6878_v31 = vld [vmem:[#allocation102_spill] sm:$0xff] }
 0x16c   :  { %642 = vmax.xlane.f32.xlu0 %v6871_v23  ;;  %v2472_v17 = vrot.slane %v2471_v33, 1  ;;  %v5797_v1 = vmul.f32 %v6873_v45, %v1345_v42  ;;  %v5800_v41 = vmul.f32 %v6874_v39, %v1345_v42  ;;  %v5803_v9 = vmul.f32 %v6875_v13, %v1346_v27  ;;  %v4602_v61 = vpop.eup %4601  ;;  %v6877_v5 = vld [vmem:[#allocation100_spill] sm:$0xff]  ;;  %v6880_v13 = vld [vmem:[#allocation55_spill] sm:$0xff] }
 0x16d   :  { %v1378_v48 = vmul.f32 %v5585_v60, %v1348_v63  ;;  %v1380_v23 = vmul.f32 %v6876_v59, %v1348_v63  ;;  %v1374_v29 = vmul.f32 %v6877_v5, %v1348_v63  ;;  %v1376_v0 = vmul.f32 %v6878_v31, %v1348_v63  ;;  %v4604_v45 = vpop.eup %4603  ;;  %v6881_v60 = vld [vmem:[#allocation57_spill] sm:$0xff]  ;;  %v6898_v39 = vld [vmem:[#allocation15_spill] sm:$0xff] }
 0x16e   :  { %v6879_v25 = vmax.f32 %v5327_v30, %v5336_v24  ;;  %v5817_v6 = vmul.f32 %v6880_v13, %v1345_v42  ;;  %v5820_v59 = vmul.f32 %v6881_v60, %v1345_v42  ;;  %v6882_v63 = vmax.f32 %v5342_v32, %v5354_v50  ;;  %v6883_v42 = vld [vmem:[#allocation35_spill] sm:$0xff] }
 0x16f   :  { %v4394_v5 = vpack.c.bf16 %v1380_v23, %v1378_v48  ;;  %v4392_v31 = vpack.c.bf16 %v1376_v0, %v1374_v29  ;;  %v1343_v24 = vmul.f32 0.17677669, %v4600_v58  ;;  %v4606_v30 = vpop.eup %4605  ;;  %v1341_v11 = vmul.f32 0.17677669, %v4604_v45  ;;  %v6886_v58 = vld [vmem:[#allocation29_spill] sm:$0xff]  ;;  %v6887_v23 = vld [vmem:[#allocation30_spill] sm:$0xff] }
 0x170   :  { %633 = vmax.xlane.f32.xlu1 %v6879_v25  ;;  %636 = vmax.xlane.f32.xlu0 %v6882_v63  ;;  %v1344_v25 = vmul.f32 0.17677669, %v4602_v61  ;;  %v2479_v27 = vrot.slane %v5784_v62, 2  ;;  %v2473_v13 = vadd.f32 %v2472_v17, %v2471_v33  ;;  %v4608_v8 = vpop.eup %4607  ;;  %v6885_v0 = vmax.f32 %v5666_v21, %v5679_v40  ;;  %v6888_v17 = vld [vmem:[#allocation32_spill] sm:$0xff]  ;;  %v6889_v45 = vld [vmem:[#allocation34_spill] sm:$0xff] }
 0x171   :  { %3508 = vmatprep.subr.bf16.mxu1 %v4394_v5  ;;  %v5838_v61 = vmul.f32 %v6886_v58, %v1343_v24  ;;  %4613 = vrcp.f32 %v2464_v26  ;;  %v4610_v48 = vpop.eup %4609  ;;  %v5841_v33 = vmul.f32 %v6887_v23, %v1343_v24  ;;  %v1342_v5 = vmul.f32 0.17677669, %v4608_v8  ;;  %v6893_v23 = vld [vmem:[#allocation13_spill] sm:$0xff] }
 0x172   :  { %v5829_v60 = vmul.f32 %v6883_v42, %v1344_v25  ;;  %v5832_v50 = vmul.f32 %v6884_v3, %v1344_v25  ;;  %3509 = vmatpush1.bf16.msra.mxu1 %v4393_v57  ;;  %v5844_v29 = vmul.f32 %v6888_v17, %v1344_v25  ;;  %v5847_v63 = vmul.f32 %v6889_v45, %v1344_v25  ;;  %v6891_v42 = vld [vmem:[#allocation27_spill] sm:$0xff] }
 0x173   :  { %v6890_v3 = vmax.f32 %v6851_v34, %v6850_v47  ;;  %3510 = vmatprep.subr.bf16.mxu1 %v4392_v31  ;;  %v5855_v57 = vmul.f32 %v6891_v42, %v1343_v24  ;;  %v5861_v17 = vmul.f32 %v6893_v23, %v1341_v11  ;;  %v4385_v45 = vpack.c.bf16 %v5841_v33, %v5838_v61  ;;  %v6894_v31 = vld [vmem:[#allocation17_spill] sm:$0xff]  ;;  %v6899_v33 = vld [vmem:[#allocation16_spill] sm:$0xff] }
 0x174   :  { %1825 = vmax.xlane.f32.xlu1 %v6885_v0  ;;  %v4386_v26 = vpack.c.bf16 %v5832_v50, %v5829_v60  ;;  %v6892_v0 = vld [vmem:[#allocation28_spill] sm:$0xff]  ;;  %v4384_v8 = vpack.c.bf16 %v5847_v63, %v5844_v29  ;;  %v6895_v50 = vld [vmem:[#allocation18_spill] sm:$0xff]  ;;  %v6896_v42 = vmax.f32 %v5626_v4, %v5632_v20  ;;  %v5880_v61 = vmul.f32 %v6898_v39, %v1342_v5 }
 0x175   :  { %630 = vmax.xlane.f32.xlu0 %v6890_v3  ;;  %v5858_v58 = vmul.f32 %v6892_v0, %v1343_v24  ;;  %v4612_v25 = vpop.eup %4611  ;;  %v5868_v3 = vmul.f32 %v6894_v31, %v1342_v5  ;;  %v1356_v60 = vmul.f32 %v6895_v50, %v1342_v5  ;;  %v6897_v0 = vld [vmem:[#allocation14_spill] sm:$0xff]  ;;  %v5883_v29 = vmul.f32 %v6899_v33, %v1342_v5  ;;  %v6901_v50 = vld [vmem:[#allocation11_spill] sm:$0xff] }
 0x176   :  { %v5877_v23 = vmul.f32 %v6897_v0, %v1341_v11  ;;  %3511 = vmatpush1.bf16.msra.mxu1 %v4391_v44  ;;  %v6900_v31 = vmax.f32 %v5639_v36, %v5650_v54  ;;  %4615 = vrcp.f32 %v2473_v13  ;;  %v2480_v5 = vadd.f32 %v2479_v27, %v5784_v62  ;;  %v6906_v27 = vld [vmem:[#allocation105_spill] sm:$0xff] }
 0x177   :  { %v4383_v24 = vpack.c.bf16 %v5858_v58, %v5855_v57  ;;  %v4382_v63 = vpack.c.bf16 %v1356_v60, %v5868_v3  ;;  %v6902_v57 = vld [vmem:[#allocation12_spill] sm:$0xff]  ;;  %3512 = vmatprep.subr.bf16.mxu1 %v4390_v38  ;;  %v4380_v44 = vpack.c.bf16 %v5883_v29, %v5880_v61  ;;  %v2495_v3 = vmul.f32 0.17677669, %v4606_v30 }
 0x178   :  { %1819 = vmax.xlane.f32.xlu1 %v6896_v42  ;;  %v5890_v42 = vmul.f32 %v6901_v50, %v1341_v11  ;;  %v5893_v58 = vmul.f32 %v6902_v57, %v1341_v11  ;;  %v4381_v39 = vpack.c.bf16 %v5877_v23, %v5861_v17  ;;  %v6903_v0 = vrot.slane %v5750_v28, 1 }
 0x179   :  { %1822 = vmax.xlane.f32.xlu0 %v6900_v31  ;;  %v2493_v11 = vmul.f32 0.17677669, %v4610_v48  ;;  %v6904_v38 = vrot.slane %v5756_v51, 1  ;;  %v6905_v17 = vmax.f32 %v5567_v10, %v5581_v22  ;;  %v2481_v23 = vrot.slane %v2480_v5, 1  ;;  %v6909_v48 = vld [vmem:[#allocation107_spill] sm:$0xff] }
 0x17a   :  { %v4379_v60 = vpack.c.bf16 %v5893_v58, %v5890_v42  ;;  %v2446_v33 = vadd.f32 %v6903_v0, %v5750_v28  ;;  %v5912_v62 = vmul.f32 %v5614_v19, %v2495_v3  ;;  %v5915_v30 = vmul.f32 %v5621_v2, %v2495_v3  ;;  %v6910_v19 = vld [vmem:[#allocation77_spill] sm:$0xff]  ;;  %v6911_v2 = vld [vmem:[#allocation79_spill] sm:$0xff] }
 0x17b   :  { %v2428_v13 = vadd.f32 %v6904_v38, %v5756_v51  ;;  %v5918_v61 = vmul.f32 %v6906_v27, %v2495_v3  ;;  %v6907_v28 = vpack.c.bf16 %v5800_v41, %v5797_v1  ;;  %v6908_v51 = vmax.f32 %v5600_v16, %v5612_v15  ;;  %v6913_v0 = vld [vmem:[#allocation73_spill] sm:$0xff] }
 0x17c   :  { %1813 = vmax.xlane.f32.xlu1 %v6905_v17  ;;  %v5927_v29 = vmul.f32 %v6909_v48, %v2495_v3  ;;  %4617 = vrcp.f32 %v2446_v33  ;;  %v5930_v31 = vmul.f32 %v6910_v19, %v2493_v11  ;;  %v5933_v50 = vmul.f32 %v6911_v2, %v2493_v11  ;;  %v6914_v3 = vld [vmem:[#allocation75_spill] sm:$0xff]  ;;  %v6921_v2 = vld [vmem:[#allocation22_spill] sm:$0xff] }
 0x17d   :  { %3513 = vmatpush1.bf16.msra.mxu1 %v6907_v28  ;;  %1816 = vmax.xlane.f32.xlu0 %v6908_v51  ;;  %v6912_v57 = vpack.c.bf16 %v5803_v9, %v5794_v14  ;;  %v2482_v1 = vadd.f32 %v2481_v23, %v2480_v5  ;;  %v4405_v41 = vpack.c.bf16 %v5915_v30, %v5912_v62  ;;  %4619 = vrcp.f32 %v2428_v13  ;;  %v6916_v9 = vld [vmem:[#allocation91_spill] sm:$0xff]  ;;  %v6917_v5 = vld [vmem:[#allocation88_spill] sm:$0xff] }
 0x17e   :  { %v5941_v38 = vmul.f32 %v6913_v0, %v2493_v11  ;;  %v5944_v17 = vmul.f32 %v6914_v3, %v2493_v11  ;;  %v2491_v28 = vmul.f32 0.17677669, %v4612_v25  ;;  %v6915_v14 = vmax.f32 %v5522_v56, %v5530_v18  ;;  %v4614_v51 = vpop.eup %4613  ;;  %v6920_v25 = vld [vmem:[#allocation21_spill] sm:$0xff]  ;;  %v6923_v3 = vld [vmem:[#allocation20_spill] sm:$0xff]  ;;  %v6926_v11 = vld [vmem:[#allocation83_spill] sm:$0xff] }
 0x17f   :  { %3514 = vmatprep.subr.bf16.mxu1 %v6912_v57  ;;  %4621 = vrcp.f32 %v2482_v1  ;;  %v1803_v23 = vmax.f32 %v6917_v5, %v6916_v9  ;;  %v6918_v48 = vpack.c.bf16 %v5820_v59, %v5817_v6  ;;  %v6919_v13 = vmax.f32 %v5539_v35, %v5553_v49  ;;  %v6922_v1 = vld [vmem:[#allocation19_spill] sm:$0xff] }
 0x180   :  { %1807 = vmax.xlane.f32.xlu1 %v6915_v14  ;;  %v5964_v19 = vmul.f32 %v6920_v25, %v2491_v28  ;;  %v5967_v57 = vmul.f32 %v6921_v2, %v2491_v28  ;;  %v5970_v0 = vmul.f32 %v6922_v1, %v2491_v28  ;;  %v5973_v14 = vmul.f32 %v6923_v3, %v2491_v28 }
 0x181   :  { %3515 = vmatpush1.bf16.msra.mxu1 %v6918_v48  ;;  %1810 = vmax.xlane.f32.xlu0 %v6919_v13 }
 0x182   :  { %3516 = vmatprep.subr.bf16.mxu1 %v4386_v26  ;;  %v4397_v6 = vpack.c.bf16 %v5967_v57, %v5964_v19  ;;  %v4395_v59 = vpack.c.bf16 %v5973_v14, %v5970_v0  ;;  %v6924_v19 = vld [vmem:[#allocation87_spill] sm:$0xff]  ;;  %v6927_v14 = vld [vmem:[#allocation85_spill] sm:$0xff] }
 0x183   :  { %v4616_v48 = vpop.eup %4615 }
 0x184   :  { %v2497_v13 = vmul.f32 0.17677669, %v4616_v48  ;;  %v2496_v48 = vmul.f32 0.17677669, %v4614_v51  ;;  %v6929_v51 = vld [vmem:[#allocation42_spill] sm:$0xff] }
 0x185   :  { %3517 = vmatpush1.bf16.msra.mxu1 %v4385_v45  ;;  %1804 = vmax.xlane.f32.xlu0 %v1803_v23  ;;  %v6925_v23 = vld [vmem:[#allocation89_spill] sm:$0xff] }
 0x186   :  { %3518 = vmatprep.subr.bf16.mxu1 %v4384_v8  ;;  %v2527_v2 = vmul.f32 %v5704_v52, %v2497_v13  ;;  %v2529_v26 = vmul.f32 %v5714_v7, %v2497_v13  ;;  %v2525_v7 = vmul.f32 %v5695_v46, %v2497_v13 }
 0x188   :  { %v4409_v27 = vpack.c.bf16 %v2529_v26, %v2527_v2  ;;  %v6930_v26 = vld [vmem:[#allocation23_spill] sm:$0xff] }
 0x189   :  { %3519 = vmatpush1.bf16.msra.mxu1 %v4383_v24  ;;  %v4618_v25 = vpop.eup %4617 }
 0x18a   :  { %3520 = vmatprep.subr.bf16.mxu1 %v4382_v63  ;;  %v2494_v28 = vmul.f32 0.17677669, %v4618_v25  ;;  %v4620_v1 = vpop.eup %4619  ;;  %v2523_v63 = vmul.f32 %v5690_v43, %v2497_v13  ;;  %v6928_v43 = vld [vmem:[#allocation39_spill] sm:$0xff]  ;;  %v6931_v13 = vld [vmem:[#allocation24_spill] sm:$0xff] }
 0x18b   :  { %v2492_v52 = vmul.f32 0.17677669, %v4620_v1 }
 0x18c   :  { %v4622_v3 = vpop.eup %4621  ;;  %v2512_v45 = vmul.f32 %v6924_v19, %v2494_v28  ;;  %v2514_v57 = vmul.f32 %v6925_v23, %v2494_v28  ;;  %v2508_v0 = vmul.f32 %v6926_v11, %v2494_v28  ;;  %v2510_v8 = vmul.f32 %v6927_v14, %v2494_v28  ;;  %v6935_v14 = vld [vmem:[#allocation113_spill] sm:$0xff] }
 0x18d   :  { %3521 = vmatpush1.bf16.msra.mxu1 %v4381_v39  ;;  %v2498_v24 = vmul.f32 0.17677669, %v4622_v3  ;;  %v2506_v2 = vmul.f32 %v6929_v51, %v2492_v52  ;;  %v2500_v46 = vmul.f32 %v6930_v26, %v2492_v52  ;;  %v2502_v28 = vmul.f32 %v6931_v13, %v2492_v52  ;;  %v6932_v3 = vld [vmem:[#allocation115_spill] sm:$0xff] }
 0x18e   :  { %3522 = vmatprep.subr.bf16.mxu1 %v4380_v44  ;;  %v4402_v25 = vpack.c.bf16 %v2514_v57, %v2512_v45  ;;  %v4400_v33 = vpack.c.bf16 %v2510_v8, %v2508_v0  ;;  %v2504_v44 = vmul.f32 %v6928_v43, %v2492_v52  ;;  %v6933_v45 = vld [vmem:[#allocation116_spill] sm:$0xff]  ;;  %v4407_v42 = vpack.c.bf16 %v2525_v7, %v2523_v63 }
 0x18f   :  { %v2528_v39 = vmul.f32 %v5733_v37, %v2498_v24  ;;  %v2530_v19 = vmul.f32 %v5742_v55, %v2498_v24  ;;  %v2524_v23 = vmul.f32 %v5721_v12, %v2498_v24  ;;  %v2526_v11 = vmul.f32 %v5726_v53, %v2498_v24 }
 0x190   :  { %v2520_v55 = vmul.f32 %v6932_v3, %v2496_v48  ;;  %v2522_v12 = vmul.f32 %v6933_v45, %v2496_v48  ;;  %v4398_v57 = vpack.c.bf16 %v2506_v2, %v2504_v44  ;;  %v4396_v53 = vpack.c.bf16 %v2502_v28, %v2500_v46  ;;  %v6945_v2 = vld [vmem:[#allocation106_spill] sm:$0xff]  ;;  %v6946_v28 = vld [vmem:[#allocation108_spill] sm:$0xff] }
 0x191   :  { %3523 = vmatpush1.bf16.msra.mxu1 %v4379_v60  ;;  %v4410_v1 = vpack.c.bf16 %v2530_v19, %v2528_v39  ;;  %v4408_v37 = vpack.c.bf16 %v2526_v11, %v2524_v23  ;;  %v6934_v60 = vld [vmem:[#allocation112_spill] sm:$0xff]  ;;  %v2518_v8 = vmul.f32 %v6935_v14, %v2496_v48  ;;  %v6936_v52 = vpack.c.bf16 %v5927_v29, %v5918_v61  ;;  %v6940_v29 = vld [vmem:[#allocation110_spill] sm:$0xff]  ;;  %v6942_v23 = vld [vmem:[#allocation103_spill] sm:$0xff] }
 0x192   :  { %v4406_v58 = vpack.c.bf16 %v2522_v12, %v2520_v55  ;;  %v2516_v0 = vmul.f32 %v6934_v60, %v2496_v48  ;;  %v6938_v63 = vpack.c.bf16 %v5944_v17, %v5941_v38  ;;  %v6939_v48 = vld [vmem:[#allocation109_spill] sm:$0xff]  ;;  %v6943_v17 = vld [vmem:[#allocation111_spill] sm:$0xff]  ;;  %v6949_v60 = vld [vmem:[#allocation96_spill] sm:$0xff] }
 0x193   :  { %3524 = vmatprep.subr.bf16.mxu1 %v4410_v1  ;;  %v6947_v55 = vld [vmem:[#allocation93_spill] sm:$0xff] }
 0x194   :  { %v4404_v24 = vpack.c.bf16 %v2518_v8, %v2516_v0 }
 0x195   :  { %3525 = vmatpush2.bf16.msra.mxu1 %v4409_v27  ;;  %v6937_v27 = vpack.c.bf16 %v5933_v50, %v5930_v31  ;;  %v6941_v50 = vld [vmem:[#allocation101_spill] sm:$0xff] }
 0x196   :  { %3526 = vmatprep.subr.bf16.mxu1 %v4408_v37 }
 0x199   :  { %3527 = vmatpush2.bf16.msra.mxu1 %v4407_v42 }
 0x19a   :  { %3528 = vmatprep.subr.bf16.mxu1 %v4406_v58 }
 0x19d   :  { %3529 = vmatpush2.bf16.msra.mxu1 %v4405_v41 }
 0x19e   :  { %3530 = vmatprep.subr.bf16.mxu1 %v4404_v24  ;;  %v6950_v24 = vld [vmem:[#allocation98_spill] sm:$0xff] }
 0x1a1   :  { %3531 = vmatpush2.bf16.msra.mxu1 %v6936_v52 }
 0x1a2   :  { %3532 = vmatprep.subr.bf16.mxu1 %v4402_v25 }
 0x1a5   :  { %3533 = vmatpush2.bf16.msra.mxu1 %v6937_v27 }
 0x1a6   :  { %3534 = vmatprep.subr.bf16.mxu1 %v4400_v33 }
 0x1a9   :  { %3535 = vmatpush2.bf16.msra.mxu1 %v6938_v63 }
 0x1aa   :  { %3536 = vmatprep.subr.bf16.mxu1 %v4398_v57 }
 0x1ad   :  { %3537 = vmatpush2.bf16.msra.mxu1 %v4397_v6  ;;  %v6944_v6 = vld [vmem:[#allocation114_spill] sm:$0xff] }
 0x1ae   :  { %3538 = vmatprep.subr.bf16.mxu1 %v4396_v53  ;;  %v6948_v53 = vld [vmem:[#allocation94_spill] sm:$0xff] }
 0x1b1   :  { %3539 = vmatpush2.bf16.msra.mxu1 %v4395_v59 }
 0x1d7   :  { %v667_v62 = vpop.xlane.xlu1 %666 }
 0x1d8   :  { %v701_v33 = vsub.f32 %v6941_v50, %v667_v62  ;;  %v702_v38 = vsub.f32 %v6942_v23, %v667_v62 }
 0x1da   :  { %v757_v51 = vmul.f32 1.442695, %v701_v33  ;;  %v759_v13 = vmul.f32 1.442695, %v702_v38 }
 0x1dd   :  { %v670_v30 = vpop.xlane.xlu1 %669 }
 0x1de   :  { %v673_v41 = vpop.xlane.xlu0 %672  ;;  %v703_v26 = vsub.f32 %v6945_v2, %v670_v30  ;;  %v704_v1 = vsub.f32 %v6946_v28, %v670_v30 }
 0x1df   :  { %v705_v61 = vsub.f32 %v6939_v48, %v673_v41  ;;  %v706_v7 = vsub.f32 %v6940_v29, %v673_v41  ;;  %v6951_v41 = vld [vmem:[#allocation82_spill] sm:$0xff] }
 0x1e0   :  { %v761_v3 = vmul.f32 1.442695, %v703_v26  ;;  %v763_v57 = vmul.f32 1.442695, %v704_v1  ;;  %v6957_v1 = vld [vmem:[#allocation71_spill] sm:$0xff] }
 0x1e1   :  { %v765_v39 = vmul.f32 1.442695, %v705_v61  ;;  %v767_v31 = vmul.f32 1.442695, %v706_v7 }
 0x1e2   :  { %v664_v25 = vpop.xlane.xlu1 %663  ;;  %v676_v19 = vpop.xlane.xlu0 %675 }
 0x1e3   :  { %v707_v11 = vsub.f32 %v6943_v17, %v676_v19  ;;  %v708_v43 = vsub.f32 %v6944_v6, %v676_v19  ;;  %4623 = vpow2.f32 %v765_v39  ;;  %v699_v0 = vsub.f32 %v6949_v60, %v664_v25  ;;  %v6952_v39 = vld [vmem:[#allocation86_spill] sm:$0xff]  ;;  %v6955_v6 = vld [vmem:[#allocation76_spill] sm:$0xff] }
 0x1e4   :  { %4625 = vpow2.f32 %v767_v31  ;;  %v700_v52 = vsub.f32 %v6950_v24, %v664_v25  ;;  %v6953_v19 = vld [vmem:[#allocation90_spill] sm:$0xff] }
 0x1e5   :  { %v769_v59 = vmul.f32 1.442695, %v707_v11  ;;  %v771_v44 = vmul.f32 1.442695, %v708_v43  ;;  %v753_v30 = vmul.f32 1.442695, %v699_v0 }
 0x1e6   :  { %v661_v46 = vpop.xlane.xlu0 %660  ;;  %v658_v37 = vpop.xlane.xlu1 %657  ;;  %v755_v29 = vmul.f32 1.442695, %v700_v52  ;;  %v6954_v11 = vld [vmem:[#allocation31_spill] sm:$0xff]  ;;  %v6961_v24 = vld [vmem:[#allocation78_spill] sm:$0xff] }
 0x1e7   :  { %4627 = vpow2.f32 %v769_v59  ;;  %v697_v45 = vsub.f32 %v6947_v55, %v661_v46  ;;  %v698_v42 = vsub.f32 %v6948_v53, %v661_v46  ;;  %v695_v23 = vsub.f32 %v6953_v19, %v658_v37  ;;  %v6958_v55 = vld [vmem:[#allocation84_spill] sm:$0xff]  ;;  %v6960_v53 = vld [vmem:[#allocation74_spill] sm:$0xff] }
 0x1e8   :  { %4629 = vpow2.f32 %v771_v44  ;;  %v1797_v43 = vmax.f32 %v6955_v6, %v6954_v11  ;;  %v6956_v44 = vld [vmem:[#allocation92_spill] sm:$0xff] }
 0x1e9   :  { %4631 = vpow2.f32 %v757_v51  ;;  %v749_v14 = vmul.f32 1.442695, %v697_v45  ;;  %v751_v27 = vmul.f32 1.442695, %v698_v42  ;;  %v696_v51 = vsub.f32 %v6956_v44, %v658_v37  ;;  %v6959_v45 = vld [vmem:[#allocation81_spill] sm:$0xff] }
 0x1ea   :  { %v655_v12 = vpop.xlane.xlu0 %654  ;;  %4633 = vpow2.f32 %v759_v13  ;;  %v6024_v58 = vpop.xlane.xlu1 %651  ;;  %v745_v28 = vmul.f32 1.442695, %v695_v23 }
 0x1eb   :  { %4635 = vpow2.f32 %v761_v3  ;;  %v693_v48 = vsub.f32 %v6951_v41, %v655_v12  ;;  %v694_v31 = vsub.f32 %v6952_v39, %v655_v12  ;;  %v1800_v12 = vmax.f32 %v6959_v45, %v6958_v55  ;;  %v6965_v39 = vld [vmem:[#allocation62_spill] sm:$0xff] }
 0x1ec   :  { %4637 = vpow2.f32 %v763_v57  ;;  %v747_v37 = vmul.f32 1.442695, %v696_v51  ;;  %v691_v52 = vsub.f32 %v6961_v24, %v6024_v58 }
 0x1ed   :  { %4639 = vpow2.f32 %v749_v14  ;;  %v741_v38 = vmul.f32 1.442695, %v693_v48  ;;  %v743_v2 = vmul.f32 1.442695, %v694_v31  ;;  %v6963_v48 = vld [vmem:[#allocation56_spill] sm:$0xff] }
 0x1ee   :  { %4641 = vpow2.f32 %v751_v27  ;;  %v6033_v7 = vpop.xlane.xlu1 %645  ;;  %v6962_v27 = vld [vmem:[#allocation80_spill] sm:$0xff]  ;;  %v737_v51 = vmul.f32 1.442695, %v691_v52 }
 0x1ef   :  { %4643 = vpow2.f32 %v753_v30  ;;  %v692_v30 = vsub.f32 %v6962_v27, %v6024_v58  ;;  %v6972_v27 = vld [vmem:[#allocation48_spill] sm:$0xff] }
 0x1f0   :  { %v6028_v63 = vpop.eup %4623  ;;  %4645 = vpow2.f32 %v755_v29 }
 0x1f1   :  { %v649_v8 = vpop.xlane.xlu0 %648  ;;  %v6030_v62 = vpop.eup %4625  ;;  %4647 = vpow2.f32 %v741_v38  ;;  %v6966_v38 = vld [vmem:[#allocation60_spill] sm:$0xff] }
 0x1f2   :  { %v815_v50 = vadd.f32 %v6030_v62, %v6028_v63  ;;  %v689_v3 = vsub.f32 %v6957_v1, %v649_v8  ;;  %4649 = vpow2.f32 %v743_v2  ;;  %v690_v42 = vsub.f32 %v6960_v53, %v649_v8  ;;  %v6964_v8 = vld [vmem:[#allocation66_spill] sm:$0xff]  ;;  %v6967_v2 = vld [vmem:[#allocation64_spill] sm:$0xff]  ;;  %v6968_v1 = vld [vmem:[#allocation67_spill] sm:$0xff] }
 0x1f3   :  { %4651 = vpow2.f32 %v745_v28  ;;  %v1791_v31 = vmax.f32 %v6965_v39, %v6964_v8  ;;  %v739_v28 = vmul.f32 1.442695, %v692_v30  ;;  %v6969_v53 = vld [vmem:[#allocation72_spill] sm:$0xff] }
 0x1f4   :  { %v6038_v25 = vpop.eup %4627  ;;  %816 = vadd.xlane.f32.xlu0 %v815_v50  ;;  %v6054_v13 = vpop.xlane.xlu1 %639  ;;  %v733_v41 = vmul.f32 1.442695, %v689_v3  ;;  %4653 = vpow2.f32 %v747_v37  ;;  %v735_v19 = vmul.f32 1.442695, %v690_v42  ;;  %v688_v3 = vsub.f32 %v6968_v1, %v6033_v7  ;;  %v6970_v42 = vld [vmem:[#allocation69_spill] sm:$0xff] }
 0x1f5   :  { %v643_v61 = vpop.xlane.xlu0 %642  ;;  %v6040_v33 = vpop.eup %4629  ;;  %v6976_v1 = vld [vmem:[#allocation49_spill] sm:$0xff] }
 0x1f6   :  { %v6047_v59 = vpop.eup %4631  ;;  %v818_v26 = vadd.f32 %v6040_v33, %v6038_v25  ;;  %v685_v29 = vsub.f32 %v6963_v48, %v643_v61  ;;  %4655 = vpow2.f32 %v733_v41 }
 0x1f7   :  { %v6052_v46 = vpop.eup %4633  ;;  %4657 = vpow2.f32 %v735_v19 }
 0x1f8   :  { %1798 = vmax.xlane.f32.xlu0 %v1797_v43  ;;  %819 = vadd.xlane.f32.xlu1 %v818_v26  ;;  %v6059_v57 = vpop.eup %4635  ;;  %v809_v0 = vadd.f32 %v6052_v46, %v6047_v59  ;;  %v686_v43 = vsub.f32 %v6966_v38, %v643_v61  ;;  %v687_v26 = vsub.f32 %v6967_v2, %v6033_v7  ;;  %v725_v37 = vmul.f32 1.442695, %v685_v29  ;;  %v6973_v29 = vld [vmem:[#allocation51_spill] sm:$0xff]  ;;  %v6974_v38 = vld [vmem:[#allocation53_spill] sm:$0xff]  ;;  %v6975_v2 = vld [vmem:[#allocation52_spill] sm:$0xff] }
 0x1f9   :  { %v6043_v17 = vpop.xlane.xlu0 %636  ;;  %v6066_v14 = vpop.eup %4637  ;;  %4659 = vpow2.f32 %v737_v51  ;;  %v1785_v51 = vmax.f32 %v6976_v1, %v6975_v2 }
 0x1fa   :  { %v6075_v50 = vpop.eup %4639  ;;  %v6077_v23 = vpop.xlane.xlu1 %633  ;;  %v812_v58 = vadd.f32 %v6066_v14, %v6059_v57  ;;  %v681_v61 = vsub.f32 %v5342_v32, %v6043_v17  ;;  %v727_v52 = vmul.f32 1.442695, %v686_v43  ;;  %v682_v30 = vsub.f32 %v6972_v27, %v6043_v17 }
 0x1fb   :  { %v6082_v44 = vpop.eup %4641  ;;  %v729_v41 = vmul.f32 1.442695, %v687_v26  ;;  %v683_v32 = vsub.f32 %v6973_v29, %v6054_v13  ;;  %4661 = vpow2.f32 %v739_v28  ;;  %v6979_v29 = vld [vmem:[#allocation58_spill] sm:$0xff] }
 0x1fc   :  { %810 = vadd.xlane.f32.xlu0 %v809_v0  ;;  %1801 = vmax.xlane.f32.xlu1 %v1800_v12  ;;  %v1794_v0 = vmax.f32 %v6970_v42, %v6969_v53  ;;  %v6094_v24 = vpop.eup %4643  ;;  %v803_v7 = vadd.f32 %v6082_v44, %v6075_v50  ;;  %4663 = vpow2.f32 %v725_v37  ;;  %v717_v17 = vmul.f32 1.442695, %v681_v61 }
 0x1fd   :  { %6971 = vst [vmem:[#allocation47_spill] sm:$0xff] %v6094_v24  ;;  %v6100_v48 = vpop.eup %4645  ;;  %4665 = vpow2.f32 %v727_v52  ;;  %v719_v27 = vmul.f32 1.442695, %v682_v30  ;;  %v721_v61 = vmul.f32 1.442695, %v683_v32  ;;  %v6978_v52 = vld [vmem:[#allocation44_spill] sm:$0xff] }
 0x1fe   :  { %v6062_v60 = vpop.xlane.xlu0 %630  ;;  %v1826_v19 = vpop.xlane.xlu1 %1825  ;;  %4667 = vpow2.f32 %v729_v41  ;;  %v680_v30 = vsub.f32 %v6978_v52, %v6077_v23 }
 0x1ff   :  { %v677_v43 = vsub.f32 %v6851_v34, %v6062_v60  ;;  %v6110_v26 = vpop.eup %4647  ;;  %v678_v28 = vsub.f32 %v6850_v47, %v6062_v60  ;;  %v6977_v34 = vld [vmem:[#allocation41_spill] sm:$0xff] }
 0x200   :  { %1792 = vmax.xlane.f32.xlu0 %v1791_v31  ;;  %813 = vadd.xlane.f32.xlu1 %v812_v58  ;;  %v731_v31 = vmul.f32 1.442695, %v688_v3  ;;  %v684_v58 = vsub.f32 %v6974_v38, %v6054_v13  ;;  %v806_v13 = vadd.f32 %v6100_v48, %v6094_v24  ;;  %v6118_v37 = vpop.eup %4649  ;;  %v6980_v38 = vld [vmem:[#allocation54_spill] sm:$0xff] }
 0x201   :  { %v709_v47 = vmul.f32 1.442695, %v677_v43  ;;  %v1788_v24 = vmax.f32 %v6980_v38, %v6979_v29  ;;  %v6128_v41 = vpop.eup %4651  ;;  %v4455_v43 = vld [vmem:[%s6598_s1 + $0x80] sm:$0xff]  }
 0x202   :  { %v6088_v12 = vpop.xlane.xlu0 %1822  ;;  %4669 = vpow2.f32 %v731_v31  ;;  %6981 = vst [vmem:[#allocation26_spill] sm:$0xff] %v6128_v41  ;;  %v1820_v32 = vpop.xlane.xlu1 %1819  ;;  %3991 = vmatmul.mubr.msk.bf16.gmra.mxu0 %vm276_vm1, %v4455_v43  ;;  %4067 = vmatmul.mubr.msk.bf16.gmra.mxu1 %vm276_vm1, %v4455_v43  ;;  %v6985_v43 = vld [vmem:[#allocation46_spill] sm:$0xff] }
 0x203   :  { %4671 = vpow2.f32 %v717_v17  ;;  %v1855_v60 = vsub.f32 %v5639_v36, %v6088_v12  ;;  %v1856_v31 = vsub.f32 %v5650_v54, %v6088_v12  ;;  %v1857_v36 = vsub.f32 %v5666_v21, %v1826_v19 }
 0x204   :  { %1795 = vmax.xlane.f32.xlu1 %v1794_v0  ;;  %804 = vadd.xlane.f32.xlu0 %v803_v7  ;;  %v679_v0 = vsub.f32 %v6977_v34, %v6077_v23  ;;  %v723_v7 = vmul.f32 1.442695, %v684_v58  ;;  %4673 = vpow2.f32 %v719_v27  ;;  %v711_v34 = vmul.f32 1.442695, %v678_v28  ;;  %v6134_v58 = vpop.eup %4653 }
 0x205   :  { %v797_v23 = vadd.f32 %v6118_v37, %v6110_v26  ;;  %4675 = vpow2.f32 %v721_v61  ;;  %v1858_v27 = vsub.f32 %v5679_v40, %v1826_v19  ;;  %v1915_v54 = vmul.f32 1.442695, %v1855_v60  ;;  %v6983_v61 = vld [vmem:[#allocation38_spill] sm:$0xff]  ;;  %v6147_v21 = vpop.eup %4655 }
 0x206   :  { %v6114_v3 = vpop.xlane.xlu0 %1816  ;;  %v713_v17 = vmul.f32 1.442695, %v679_v0  ;;  %4677 = vpow2.f32 %v723_v7  ;;  %v1917_v7 = vmul.f32 1.442695, %v1856_v31  ;;  %v6984_v19 = vmov 0  }
 0x207   :  { %4679 = vpow2.f32 %v709_v47  ;;  %v1851_v12 = vsub.f32 %v5600_v16, %v6114_v3  ;;  %v1852_v40 = vsub.f32 %v5612_v15, %v6114_v3  ;;  %558 = vmatprep.mubr.bf16.mxu0 %v6984_v19  ;;  %1708 = vmatprep.mubr.bf16.mxu1 %v6984_v19  ;;  %v6155_v16 = vpop.eup %4657  ;;  %v1919_v52 = vmul.f32 1.442695, %v1857_v36  ;;  %v1814_v15 = vpop.xlane.xlu1 %1813 }
 0x208   :  { %807 = vadd.xlane.f32.xlu1 %v806_v13  ;;  %1786 = vmax.xlane.f32.xlu0 %v1785_v51  ;;  %v715_v51 = vmul.f32 1.442695, %v680_v30  ;;  %v6982_v13 = vld [vmem:[#allocation43_spill] sm:$0xff]  ;;  %4681 = vpow2.f32 %v711_v34  ;;  %v1853_v30 = vsub.f32 %v5626_v4, %v1820_v32  ;;  %v6158_v47 = vpop.eup %4659  ;;  %v1921_v60 = vmul.f32 1.442695, %v1858_v27 }
 0x209   :  { %v1779_v0 = vmax.f32 %v6983_v61, %v6982_v13  ;;  %4683 = vpow2.f32 %v713_v17  ;;  %v1854_v34 = vsub.f32 %v5632_v20, %v1820_v32  ;;  %v6161_v3 = vpop.eup %4661  ;;  %v1907_v31 = vmul.f32 1.442695, %v1851_v12  ;;  %v6986_v17 = vld [vmem:[#allocation45_spill] sm:$0xff] }
 0x20a   :  { %v1811_v28 = vpop.xlane.xlu0 %1810  ;;  %4685 = vpow2.f32 %v715_v51  ;;  %v1782_v36 = vmax.f32 %v6986_v17, %v6985_v43  ;;  %v1909_v4 = vmul.f32 1.442695, %v1852_v40  ;;  %v791_v20 = vadd.f32 %v6155_v16, %v6147_v21 }
 0x20b   :  { %4687 = vpow2.f32 %v1915_v54  ;;  %v1848_v51 = vsub.f32 %v5553_v49, %v1811_v28  ;;  %v1911_v54 = vmul.f32 1.442695, %v1853_v30  ;;  %v1849_v12 = vsub.f32 %v5567_v10, %v1814_v15  ;;  %v1808_v30 = vpop.xlane.xlu1 %1807 }
 0x20c   :  { %1789 = vmax.xlane.f32.xlu1 %v1788_v24  ;;  %798 = vadd.xlane.f32.xlu0 %v797_v23  ;;  %v800_v24 = vadd.f32 %v6134_v58, %v6128_v41  ;;  %v1847_v23 = vsub.f32 %v5539_v35, %v1811_v28  ;;  %v6166_v41 = vpop.eup %4663  ;;  %4689 = vpow2.f32 %v1917_v7  ;;  %v4456_v35 = vld [vmem:[%s6598_s1 + $0x88] sm:$0xff]   ;;  %v1913_v7 = vmul.f32 1.442695, %v1854_v34 }
 0x20d   :  { %v6171_v32 = vpop.eup %4665  ;;  %4691 = vpow2.f32 %v1919_v52  ;;  %v1850_v49 = vsub.f32 %v5581_v22, %v1814_v15  ;;  %v794_v10 = vadd.f32 %v6161_v3, %v6158_v47  ;;  %3992 = vmatmul.mubr.msk.bf16.gmra.mxu0 %vm276_vm1, %v4456_v35  ;;  %4068 = vmatmul.mubr.msk.bf16.gmra.mxu1 %vm276_vm1, %v4456_v35  ;;  %v1901_v22 = vmul.f32 1.442695, %v1848_v51 }
 0x20e   :  { %v1805_v27 = vpop.xlane.xlu0 %1804  ;;  %4693 = vpow2.f32 %v1921_v60  ;;  %v1899_v40 = vmul.f32 1.442695, %v1847_v23  ;;  %v785_v34 = vadd.f32 %v6171_v32, %v6166_v41  ;;  %568 = vmatprep.mubr.bf16.mxu0 %v6984_v19  ;;  %1718 = vmatprep.mubr.bf16.mxu1 %v6984_v19  ;;  %v1903_v15 = vmul.f32 1.442695, %v1849_v12 }
 0x20f   :  { %4695 = vpow2.f32 %v1907_v31  ;;  %v1844_v60 = vsub.f32 %v6916_v9, %v1805_v27  ;;  %v1905_v23 = vmul.f32 1.442695, %v1850_v49  ;;  %v1845_v9 = vsub.f32 %v5522_v56, %v1808_v30  ;;  %v4457_v56 = vld [vmem:[%s6598_s1 + $0x90] sm:$0xff]  }
 0x210   :  { %801 = vadd.xlane.f32.xlu1 %v800_v24  ;;  %1780 = vmax.xlane.f32.xlu0 %v1779_v0  ;;  %v6177_v0 = vpop.eup %4667  ;;  %v1843_v24 = vsub.f32 %v6917_v5, %v1805_v27  ;;  %4697 = vpow2.f32 %v1909_v4 }
 0x211   :  { %v6180_v28 = vpop.eup %4669  ;;  %4699 = vpow2.f32 %v1911_v54  ;;  %v1893_v54 = vmul.f32 1.442695, %v1844_v60 }
 0x212   :  { %v6187_v52 = vpop.eup %4671  ;;  %4701 = vpow2.f32 %v1913_v7  ;;  %v1891_v4 = vmul.f32 1.442695, %v1843_v24  ;;  %v788_v51 = vadd.f32 %v6180_v28, %v6177_v0 }
 0x213   :  { %v6194_v5 = vpop.eup %4673  ;;  %4703 = vpow2.f32 %v1899_v40 }
 0x214   :  { %1783 = vmax.xlane.f32.xlu1 %v1782_v36  ;;  %792 = vadd.xlane.f32.xlu0 %v791_v20  ;;  %v6196_v31 = vpop.eup %4675  ;;  %v1846_v20 = vsub.f32 %v5530_v18, %v1808_v30  ;;  %4705 = vpow2.f32 %v1901_v22  ;;  %v779_v12 = vadd.f32 %v6194_v5, %v6187_v52  ;;  %v1895_v18 = vmul.f32 1.442695, %v1845_v9 }
 0x215   :  { %v6198_v36 = vpop.eup %4677  ;;  %4707 = vpow2.f32 %v1903_v15  ;;  %3993 = vmatmul.mubr.msk.bf16.gmra.mxu0 %vm276_vm1, %v4457_v56  ;;  %4069 = vmatmul.mubr.msk.bf16.gmra.mxu1 %vm276_vm1, %v4457_v56 }
 0x216   :  { %v6203_v27 = vpop.eup %4679  ;;  %4709 = vpow2.f32 %v1905_v23  ;;  %v1897_v24 = vmul.f32 1.442695, %v1846_v20  ;;  %578 = vmatprep.mubr.bf16.mxu0 %v6984_v19  ;;  %1728 = vmatprep.mubr.bf16.mxu1 %v6984_v19 }
 0x217   :  { %v6208_v35 = vpop.eup %4681  ;;  %4711 = vpow2.f32 %v1891_v4 }
 0x218   :  { %795 = vadd.xlane.f32.xlu1 %v794_v10  ;;  %786 = vadd.xlane.f32.xlu0 %v785_v34  ;;  %v6213_v7 = vpop.eup %4683  ;;  %4713 = vpow2.f32 %v1893_v54  ;;  %v782_v10 = vadd.f32 %v6198_v36, %v6196_v31  ;;  %v773_v30 = vadd.f32 %v6208_v35, %v6203_v27 }
 0x219   :  { %v6215_v49 = vpop.eup %4685  ;;  %4715 = vpow2.f32 %v1895_v18 }
 0x21a   :  { %v6219_v40 = vpop.eup %4687  ;;  %4717 = vpow2.f32 %v1897_v24  ;;  %v776_v23 = vadd.f32 %v6215_v49, %v6213_v7 }
 0x21b   :  { %6987 = vst [vmem:[#allocation36_spill] sm:$0xff] %v6219_v40  ;;  %v6227_v22 = vpop.eup %4689 }
 0x21c   :  { %789 = vadd.xlane.f32.xlu1 %v788_v51  ;;  %780 = vadd.xlane.f32.xlu0 %v779_v12  ;;  %v6229_v60 = vpop.eup %4691  ;;  %v1965_v9 = vadd.f32 %v6227_v22, %v6219_v40  ;;  %v4458_v51 = vld [vmem:[%s6598_s1 + $0x98] sm:$0xff]  }
 0x21d   :  { %v6231_v34 = vpop.eup %4693  ;;  %3994 = vmatmul.mubr.msk.bf16.gmra.mxu0 %vm276_vm1, %v4458_v51  ;;  %4070 = vmatmul.mubr.msk.bf16.gmra.mxu1 %vm276_vm1, %v4458_v51 }
 0x21e   :  { %v6233_v15 = vpop.eup %4695  ;;  %v1968_v56 = vadd.f32 %v6231_v34, %v6229_v60  ;;  %588 = vmatprep.mubr.bf16.mxu0 %v6984_v19  ;;  %1738 = vmatprep.mubr.bf16.mxu1 %v6984_v19 }
 0x21f   :  { %6988 = vst [vmem:[#allocation33_spill] sm:$0xff] %v6233_v15  ;;  %v6239_v4 = vpop.eup %4697 }
 0x220   :  { %783 = vadd.xlane.f32.xlu1 %v782_v10  ;;  %774 = vadd.xlane.f32.xlu0 %v773_v30  ;;  %6989 = vst [vmem:[#allocation25_spill] sm:$0xff] %v6239_v4  ;;  %v6244_v20 = vpop.eup %4699  ;;  %v1959_v18 = vadd.f32 %v6239_v4, %v6233_v15 }
 0x221   :  { %6990 = vst [vmem:[#allocation50_spill] sm:$0xff] %v6244_v20  ;;  %v6246_v54 = vpop.eup %4701 }
 0x222   :  { %v6250_v12 = vpop.eup %4703  ;;  %v1962_v51 = vadd.f32 %v6246_v54, %v6244_v20 }
 0x223   :  { %6991 = vst [vmem:[#allocation40_spill] sm:$0xff] %v6250_v12  ;;  %v6258_v24 = vpop.eup %4705 }
 0x224   :  { %777 = vadd.xlane.f32.xlu1 %v776_v23  ;;  %1966 = vadd.xlane.f32.xlu0 %v1965_v9  ;;  %6992 = vst [vmem:[#allocation99_spill] sm:$0xff] %v6258_v24  ;;  %v6260_v10 = vpop.eup %4707  ;;  %v4459_v23 = vld [vmem:[%s6598_s1 + $0xa0] sm:$0xff]   ;;  %v1953_v15 = vadd.f32 %v6258_v24, %v6250_v12 }
 0x225   :  { %6993 = vst [vmem:[#allocation95_spill] sm:$0xff] %v6260_v10  ;;  %v6262_v30 = vpop.eup %4709  ;;  %3995 = vmatmul.mubr.msk.bf16.gmra.mxu0 %vm276_vm1, %v4459_v23  ;;  %4071 = vmatmul.mubr.msk.bf16.gmra.mxu1 %vm276_vm1, %v4459_v23 }
 0x226   :  { %6994 = vst [vmem:[#allocation97_spill] sm:$0xff] %v6262_v30  ;;  %v6267_v9 = vpop.eup %4711  ;;  %598 = vmatprep.mubr.bf16.mxu0 %v6984_v19  ;;  %1748 = vmatprep.mubr.bf16.mxu1 %v6984_v19 }
 0x227   :  { %6995 = vst [vmem:[#allocation68_spill] sm:$0xff] %v6267_v9  ;;  %v6273_v4 = vpop.eup %4713 }
 0x228   :  { %1969 = vadd.xlane.f32.xlu1 %v1968_v56  ;;  %1960 = vadd.xlane.f32.xlu0 %v1959_v18  ;;  %6996 = vst [vmem:[#allocation70_spill] sm:$0xff] %v6273_v4  ;;  %v6277_v56 = vpop.eup %4715  ;;  %v1956_v18 = vadd.f32 %v6262_v30, %v6260_v10  ;;  %v1947_v40 = vadd.f32 %v6273_v4, %v6267_v9 }
 0x229   :  { %6997 = vst [vmem:[#allocation63_spill] sm:$0xff] %v6277_v56  ;;  %v6285_v12 = vpop.eup %4717 }
 0x22a   :  { %6998 = vst [vmem:[#allocation59_spill] sm:$0xff] %v6285_v12  ;;  %v1950_v23 = vadd.f32 %v6285_v12, %v6277_v56 }
 0x22c   :  { %1963 = vadd.xlane.f32.xlu1 %v1962_v51  ;;  %1954 = vadd.xlane.f32.xlu0 %v1953_v15  ;;  %v4460_v15 = vld [vmem:[%s6598_s1 + $0xa8] sm:$0xff]   ;;  %v4462_v51 = vld [vmem:[%s6598_s1 + $0xb8] sm:$0xff]  }
 0x22d   :  { %3996 = vmatmul.mubr.msk.bf16.gmra.mxu0 %vm276_vm1, %v4460_v15  ;;  %4072 = vmatmul.mubr.msk.bf16.gmra.mxu1 %vm276_vm1, %v4460_v15 }
 0x22e   :  { %608 = vmatprep.mubr.bf16.mxu0 %v6984_v19  ;;  %1758 = vmatprep.mubr.bf16.mxu1 %v6984_v19 }
 0x230   :  { %1957 = vadd.xlane.f32.xlu1 %v1956_v18  ;;  %1948 = vadd.xlane.f32.xlu0 %v1947_v40  ;;  %v4461_v40 = vld [vmem:[%s6598_s1 + $0xb0] sm:$0xff]  }
 0x234   :  { %1951 = vadd.xlane.f32.xlu1 %v1950_v23 }
 0x235   :  { %3997 = vmatmul.mubr.msk.bf16.gmra.mxu0 %vm276_vm1, %v4461_v40  ;;  %4073 = vmatmul.mubr.msk.bf16.gmra.mxu1 %vm276_vm1, %v4461_v40 }
 0x236   :  { %618 = vmatprep.mubr.bf16.mxu0 %v6984_v19  ;;  %1768 = vmatprep.mubr.bf16.mxu1 %v6984_v19 }
 0x23d   :  { %3998 = vmatmul.mubr.msk.bf16.gmra.mxu0 %vm276_vm1, %v4462_v51  ;;  %4074 = vmatmul.mubr.msk.bf16.gmra.mxu1 %vm276_vm1, %v4462_v51 }
 0x27d   :  { %v817_v18 = vpop.xlane.xlu0 %816 }
 0x27e   :  { %4719 = vrcp.f32 %v817_v18 }
 0x281   :  { %v820_v15 = vpop.xlane.xlu1 %819  ;;  %v1799_v23 = vpop.xlane.xlu0 %1798 }
 0x282   :  { %4721 = vrcp.f32 %v820_v15  ;;  %v1839_v9 = vsub.f32 %v6955_v6, %v1799_v23  ;;  %v1840_v40 = vsub.f32 %v6954_v11, %v1799_v23 }
 0x284   :  { %v1883_v56 = vmul.f32 1.442695, %v1839_v9  ;;  %v1885_v4 = vmul.f32 1.442695, %v1840_v40 }
 0x285   :  { %v1802_v19 = vpop.xlane.xlu1 %1801  ;;  %v811_v12 = vpop.xlane.xlu0 %810 }
 0x286   :  { %4723 = vpow2.f32 %v1883_v56  ;;  %v1841_v10 = vsub.f32 %v6959_v45, %v1802_v19  ;;  %v1842_v24 = vsub.f32 %v6958_v55, %v1802_v19 }
 0x287   :  { %4725 = vpow2.f32 %v1885_v4 }
 0x288   :  { %v1887_v51 = vmul.f32 1.442695, %v1841_v10  ;;  %v1889_v30 = vmul.f32 1.442695, %v1842_v24  ;;  %4727 = vrcp.f32 %v811_v12 }
 0x289   :  { %v814_v18 = vpop.xlane.xlu1 %813  ;;  %v1793_v20 = vpop.xlane.xlu0 %1792 }
 0x28a   :  { %4729 = vpow2.f32 %v1887_v51  ;;  %v1835_v6 = vsub.f32 %v6965_v39, %v1793_v20  ;;  %v1836_v11 = vsub.f32 %v6964_v8, %v1793_v20 }
 0x28b   :  { %4731 = vpow2.f32 %v1889_v30  ;;  %v4720_v56 = vpop.eup %4719 }
 0x28c   :  { %4733 = vrcp.f32 %v814_v18  ;;  %v1875_v9 = vmul.f32 1.442695, %v1835_v6  ;;  %v1877_v15 = vmul.f32 1.442695, %v1836_v11  ;;  %v866_v39 = vmul.f32 %v4720_v56, %v6030_v62 }
 0x28d   :  { %v1796_v23 = vpop.xlane.xlu1 %1795  ;;  %v805_v45 = vpop.xlane.xlu0 %804  ;;  %v865_v30 = vmul.f32 %v4720_v56, %v6028_v63 }
 0x28e   :  { %4735 = vpow2.f32 %v1875_v9  ;;  %v1837_v55 = vsub.f32 %v6970_v42, %v1796_v23  ;;  %v1838_v19 = vsub.f32 %v6969_v53, %v1796_v23 }
 0x28f   :  { %v4722_v4 = vpop.eup %4721  ;;  %4737 = vpow2.f32 %v1877_v15 }
 0x290   :  { %v1879_v12 = vmul.f32 1.442695, %v1837_v55  ;;  %v1881_v24 = vmul.f32 1.442695, %v1838_v19  ;;  %v868_v8 = vmul.f32 %v4722_v4, %v6040_v33  ;;  %4739 = vrcp.f32 %v805_v45 }
 0x291   :  { %v808_v20 = vpop.xlane.xlu1 %807  ;;  %v1787_v10 = vpop.xlane.xlu0 %1786  ;;  %v867_v40 = vmul.f32 %v4722_v4, %v6038_v25 }
 0x292   :  { %4741 = vpow2.f32 %v1879_v12  ;;  %v1831_v42 = vsub.f32 %v6976_v1, %v1787_v10  ;;  %v1832_v53 = vsub.f32 %v6975_v2, %v1787_v10  ;;  %v4362_v51 = vpack.c.bf16 %v868_v8, %v866_v39 }
 0x293   :  { %v6322_v18 = vpop.eup %4723  ;;  %4743 = vpow2.f32 %v1881_v24  ;;  %v4361_v6 = vpack.c.bf16 %v867_v40, %v865_v30 }
 0x294   :  { %v6324_v62 = vpop.eup %4725  ;;  %4745 = vrcp.f32 %v808_v20  ;;  %v1867_v33 = vmul.f32 1.442695, %v1831_v42  ;;  %v1869_v11 = vmul.f32 1.442695, %v1832_v53  ;;  %3027 = vmatprep.subr.bf16.mxu0 %v4362_v51 }
 0x295   :  { %v1790_v9 = vpop.xlane.xlu1 %1789  ;;  %3028 = vmatpush1.bf16.xpose.msra.mxu0 %v4361_v6  ;;  %v799_v63 = vpop.xlane.xlu0 %798  ;;  %v1941_v25 = vadd.f32 %v6324_v62, %v6322_v18 }
 0x296   :  { %v4728_v1 = vpop.eup %4727  ;;  %4747 = vpow2.f32 %v1867_v33  ;;  %v1833_v2 = vsub.f32 %v6980_v38, %v1790_v9  ;;  %v1834_v15 = vsub.f32 %v6979_v29, %v1790_v9 }
 0x297   :  { %v6330_v56 = vpop.eup %4729  ;;  %4749 = vpow2.f32 %v1869_v11  ;;  %1942 = vadd.xlane.f32.xlu0 %v1941_v25  ;;  %v862_v39 = vmul.f32 %v4728_v1, %v6052_v46  ;;  %v861_v10 = vmul.f32 %v4728_v1, %v6047_v59 }
 0x298   :  { %v6332_v23 = vpop.eup %4731  ;;  %v1871_v45 = vmul.f32 1.442695, %v1833_v2  ;;  %v1873_v55 = vmul.f32 1.442695, %v1834_v15  ;;  %4751 = vrcp.f32 %v799_v63 }
 0x299   :  { %v4734_v19 = vpop.eup %4733  ;;  %v802_v4 = vpop.xlane.xlu1 %801  ;;  %v1944_v24 = vadd.f32 %v6332_v23, %v6330_v56 }
 0x29a   :  { %v1781_v12 = vpop.xlane.xlu0 %1780  ;;  %4753 = vpow2.f32 %v1871_v45  ;;  %v864_v8 = vmul.f32 %v4734_v19, %v6066_v14  ;;  %v863_v30 = vmul.f32 %v4734_v19, %v6059_v57 }
 0x29b   :  { %v1827_v29 = vsub.f32 %v6983_v61, %v1781_v12  ;;  %v1828_v38 = vsub.f32 %v6982_v13, %v1781_v12  ;;  %v6340_v20 = vpop.eup %4735  ;;  %4755 = vpow2.f32 %v1873_v55  ;;  %1945 = vadd.xlane.f32.xlu1 %v1944_v24  ;;  %v6999_v55 = vld [vmem:[#allocation47_spill] sm:$0xff] }
 0x29c   :  { %v6344_v40 = vpop.eup %4737  ;;  %4757 = vrcp.f32 %v802_v4  ;;  %v4360_v53 = vpack.c.bf16 %v864_v8, %v862_v39  ;;  %v4359_v61 = vpack.c.bf16 %v863_v30, %v861_v10 }
 0x29d   :  { %v1859_v42 = vmul.f32 1.442695, %v1827_v29  ;;  %v1861_v46 = vmul.f32 1.442695, %v1828_v38  ;;  %v1784_v51 = vpop.xlane.xlu1 %1783  ;;  %v1935_v14 = vadd.f32 %v6344_v40, %v6340_v20  ;;  %v4740_v13 = vpop.eup %4739 }
 0x29e   :  { %v793_v6 = vpop.xlane.xlu0 %792  ;;  %3029 = vmatprep.subr.bf16.mxu0 %v4360_v53  ;;  %v1829_v33 = vsub.f32 %v6986_v17, %v1784_v51  ;;  %v1830_v59 = vsub.f32 %v6985_v43, %v1784_v51  ;;  %v858_v15 = vmul.f32 %v4740_v13, %v6082_v44  ;;  %v857_v45 = vmul.f32 %v4740_v13, %v6075_v50 }
 0x29f   :  { %4759 = vpow2.f32 %v1859_v42  ;;  %v6350_v57 = vpop.eup %4741  ;;  %3030 = vmatpush1.bf16.xpose.msra.mxu0 %v4359_v61  ;;  %1936 = vadd.xlane.f32.xlu0 %v1935_v14  ;;  %v7000_v61 = vld [vmem:[#allocation26_spill] sm:$0xff] }
 0x2a0   :  { %4761 = vpow2.f32 %v1861_v46  ;;  %v6352_v11 = vpop.eup %4743  ;;  %v1863_v9 = vmul.f32 1.442695, %v1829_v33  ;;  %v1865_v63 = vmul.f32 1.442695, %v1830_v59 }
 0x2a1   :  { %v4746_v25 = vpop.eup %4745  ;;  %4763 = vrcp.f32 %v793_v6  ;;  %v796_v1 = vpop.xlane.xlu1 %795  ;;  %v1938_v2 = vadd.f32 %v6352_v11, %v6350_v57 }
 0x2a2   :  { %4765 = vpow2.f32 %v1863_v9  ;;  %v787_v17 = vpop.xlane.xlu0 %786  ;;  %v860_v43 = vmul.f32 %v4746_v25, %v6100_v48  ;;  %v859_v19 = vmul.f32 %v4746_v25, %v6999_v55 }
 0x2a3   :  { %v6360_v4 = vpop.eup %4747  ;;  %4767 = vpow2.f32 %v1865_v63  ;;  %1939 = vadd.xlane.f32.xlu1 %v1938_v2 }
 0x2a4   :  { %v6362_v12 = vpop.eup %4749  ;;  %4769 = vrcp.f32 %v796_v1  ;;  %v4358_v24 = vpack.c.bf16 %v860_v43, %v858_v15  ;;  %v4357_v39 = vpack.c.bf16 %v859_v19, %v857_v45 }
 0x2a5   :  { %4771 = vrcp.f32 %v787_v17  ;;  %v790_v29 = vpop.xlane.xlu1 %789  ;;  %v1929_v44 = vadd.f32 %v6362_v12, %v6360_v4  ;;  %v4752_v38 = vpop.eup %4751 }
 0x2a6   :  { %3031 = vmatprep.subr.bf16.mxu0 %v4358_v24  ;;  %4773 = vrcp.f32 %v790_v29  ;;  %v781_v10 = vpop.xlane.xlu0 %780  ;;  %v854_v46 = vmul.f32 %v4752_v38, %v6118_v37  ;;  %v853_v51 = vmul.f32 %v4752_v38, %v6110_v26 }
 0x2a7   :  { %v6366_v50 = vpop.eup %4753  ;;  %3032 = vmatpush1.bf16.xpose.msra.mxu0 %v4357_v39  ;;  %1930 = vadd.xlane.f32.xlu0 %v1929_v44 }
 0x2a8   :  { %v6368_v48 = vpop.eup %4755 }
 0x2a9   :  { %v4758_v8 = vpop.eup %4757  ;;  %v784_v30 = vpop.xlane.xlu1 %783  ;;  %v1932_v42 = vadd.f32 %v6368_v48, %v6366_v50 }
 0x2aa   :  { %4775 = vrcp.f32 %v784_v30  ;;  %v856_v53 = vmul.f32 %v4758_v8, %v6134_v58  ;;  %v855_v6 = vmul.f32 %v4758_v8, %v7000_v61  ;;  %v775_v58 = vpop.xlane.xlu0 %774 }
 0x2ab   :  { %1933 = vadd.xlane.f32.xlu1 %v1932_v42  ;;  %4777 = vrcp.f32 %v781_v10 }
 0x2ac   :  { %v6376_v14 = vpop.eup %4759  ;;  %v4356_v33 = vpack.c.bf16 %v856_v53, %v854_v46  ;;  %v4355_v59 = vpack.c.bf16 %v855_v6, %v853_v51 }
 0x2ad   :  { %v6378_v13 = vpop.eup %4761  ;;  %v778_v37 = vpop.xlane.xlu1 %777 }
 0x2ae   :  { %v1923_v9 = vadd.f32 %v6378_v13, %v6376_v14  ;;  %v4764_v63 = vpop.eup %4763  ;;  %3033 = vmatprep.subr.bf16.mxu0 %v4356_v33  ;;  %4779 = vrcp.f32 %v778_v37 }
 0x2af   :  { %v6382_v25 = vpop.eup %4765  ;;  %3034 = vmatpush1.bf16.xpose.msra.mxu0 %v4355_v59  ;;  %v850_v17 = vmul.f32 %v4764_v63, %v6155_v16  ;;  %v849_v45 = vmul.f32 %v4764_v63, %v6147_v21  ;;  %4781 = vrcp.f32 %v775_v58 }
 0x2b0   :  { %1924 = vadd.xlane.f32.xlu0 %v1923_v9  ;;  %v6384_v26 = vpop.eup %4767 }
 0x2b1   :  { %v4770_v1 = vpop.eup %4769  ;;  %v1926_v2 = vadd.f32 %v6384_v26, %v6382_v25  ;;  %v1970_v10 = vpop.xlane.xlu1 %1969 }
 0x2b2   :  { %v4772_v15 = vpop.eup %4771  ;;  %v852_v43 = vmul.f32 %v4770_v1, %v6161_v3  ;;  %v851_v55 = vmul.f32 %v4770_v1, %v6158_v47  ;;  %v1967_v3 = vpop.xlane.xlu0 %1966  ;;  %4783 = vrcp.f32 %v1970_v10 }
 0x2b3   :  { %v4774_v19 = vpop.eup %4773  ;;  %1927 = vadd.xlane.f32.xlu1 %v1926_v2  ;;  %v846_v29 = vmul.f32 %v4772_v15, %v6171_v32  ;;  %v845_v30 = vmul.f32 %v4772_v15, %v6166_v41  ;;  %4785 = vrcp.f32 %v1967_v3  ;;  %v7003_v3 = vld [vmem:[#allocation50_spill] sm:$0xff] }
 0x2b4   :  { %v4354_v24 = vpack.c.bf16 %v852_v43, %v850_v17  ;;  %v4353_v39 = vpack.c.bf16 %v851_v55, %v849_v45  ;;  %v848_v44 = vmul.f32 %v4774_v19, %v6180_v28  ;;  %v847_v21 = vmul.f32 %v4774_v19, %v6177_v0 }
 0x2b5   :  { %v1964_v53 = vpop.xlane.xlu1 %1963 }
 0x2b6   :  { %3035 = vmatprep.subr.bf16.mxu0 %v4354_v24  ;;  %v4352_v38 = vpack.c.bf16 %v848_v44, %v846_v29  ;;  %v4351_v42 = vpack.c.bf16 %v847_v21, %v845_v30  ;;  %v1961_v61 = vpop.xlane.xlu0 %1960  ;;  %4787 = vrcp.f32 %v1964_v53  ;;  %v7002_v29 = vld [vmem:[#allocation25_spill] sm:$0xff] }
 0x2b7   :  { %v4776_v8 = vpop.eup %4775  ;;  %3036 = vmatpush1.bf16.xpose.msra.mxu0 %v4353_v39  ;;  %4789 = vrcp.f32 %v1961_v61  ;;  %v7005_v30 = vld [vmem:[#allocation33_spill] sm:$0xff] }
 0x2b8   :  { %3037 = vmatprep.subr.bf16.mxu0 %v4352_v38  ;;  %v4778_v16 = vpop.eup %4777  ;;  %v844_v47 = vmul.f32 %v4776_v8, %v6198_v36  ;;  %v843_v6 = vmul.f32 %v4776_v8, %v6196_v31 }
 0x2b9   :  { %v842_v32 = vmul.f32 %v4778_v16, %v6194_v5  ;;  %v841_v36 = vmul.f32 %v4778_v16, %v6187_v52  ;;  %v1958_v9 = vpop.xlane.xlu1 %1957 }
 0x2ba   :  { %v1955_v37 = vpop.xlane.xlu0 %1954  ;;  %4791 = vrcp.f32 %v1958_v9 }
 0x2bb   :  { %v4780_v28 = vpop.eup %4779  ;;  %v4350_v46 = vpack.c.bf16 %v844_v47, %v842_v32  ;;  %v4349_v33 = vpack.c.bf16 %v843_v6, %v841_v36  ;;  %4793 = vrcp.f32 %v1955_v37  ;;  %v7007_v6 = vld [vmem:[#allocation95_spill] sm:$0xff] }
 0x2bc   :  { %v4782_v51 = vpop.eup %4781  ;;  %v840_v0 = vmul.f32 %v4780_v28, %v6215_v49  ;;  %v839_v58 = vmul.f32 %v4780_v28, %v6213_v7  ;;  %v7008_v36 = vld [vmem:[#allocation59_spill] sm:$0xff] }
 0x2bd   :  { %v838_v41 = vmul.f32 %v4782_v51, %v6208_v35  ;;  %v837_v49 = vmul.f32 %v4782_v51, %v6203_v27  ;;  %v1952_v17 = vpop.xlane.xlu1 %1951 }
 0x2be   :  { %v1949_v55 = vpop.xlane.xlu0 %1948  ;;  %4795 = vrcp.f32 %v1952_v17 }
 0x2bf   :  { %3038 = vmatpush1.bf16.xpose.msra.mxu0 %v4351_v42  ;;  %v4348_v5 = vpack.c.bf16 %v840_v0, %v838_v41  ;;  %v4784_v59 = vpop.eup %4783  ;;  %v4347_v1 = vpack.c.bf16 %v839_v58, %v837_v49  ;;  %4797 = vrcp.f32 %v1949_v55  ;;  %v7006_v42 = vld [vmem:[#allocation99_spill] sm:$0xff]  ;;  %v7012_v49 = vld [vmem:[#allocation68_spill] sm:$0xff] }
 0x2c0   :  { %3039 = vmatprep.subr.bf16.mxu0 %v4350_v46  ;;  %v4786_v63 = vpop.eup %4785  ;;  %v2018_v31 = vmul.f32 %v4784_v59, %v6231_v34  ;;  %v2017_v7 = vmul.f32 %v4784_v59, %v6229_v60  ;;  %v7001_v34 = vld [vmem:[#allocation36_spill] sm:$0xff]  ;;  %v7010_v59 = vld [vmem:[#allocation70_spill] sm:$0xff]  ;;  %v7011_v58 = vld [vmem:[#allocation63_spill] sm:$0xff] }
 0x2c1   :  { %v2016_v52 = vmul.f32 %v4786_v63, %v6227_v22  ;;  %v2015_v24 = vmul.f32 %v4786_v63, %v7001_v34 }
 0x2c2   :  { %v6406_v35 = vpop.f32.mrf.mxu0 }
 0x2c3   :  { %v4378_v2 = vpack.c.bf16 %v2018_v31, %v2016_v52  ;;  %v4788_v15 = vpop.eup %4787  ;;  %v4377_v8 = vpack.c.bf16 %v2017_v7, %v2015_v24 }
 0x2c4   :  { %v552_v43 = vpop.f32.mrf.mxu0  ;;  %v4790_v45 = vpop.eup %4789  ;;  %v2014_v27 = vmul.f32 %v4788_v15, %v6246_v54  ;;  %v2013_v21 = vmul.f32 %v4788_v15, %v7003_v3  ;;  %v7004_v54 = vld [vmem:[#allocation97_spill] sm:$0xff] }
 0x2c5   :  { %v2012_v44 = vmul.f32 %v4790_v45, %v7002_v29  ;;  %v2011_v32 = vmul.f32 %v4790_v45, %v7005_v30 }
 0x2c6   :  { %v6409_v19 = vpop.f32.mrf.mxu0 }
 0x2c7   :  { %3040 = vmatpush1.bf16.xpose.msra.mxu0 %v4349_v33  ;;  %v4315_v22 = vpack.c.bf16 %v6409_v19, %v6406_v35  ;;  %v4376_v10 = vpack.c.bf16 %v2014_v27, %v2012_v44  ;;  %v4792_v16 = vpop.eup %4791  ;;  %v4375_v46 = vpack.c.bf16 %v2013_v21, %v2011_v32  ;;  %v7009_v33 = vld [vmem:[#allocation40_spill] sm:$0xff] }
 0x2c8   :  { %3041 = vmatprep.subr.bf16.mxu0 %v4348_v5  ;;  %v556_v39 = vpop.f32.mrf.mxu0  ;;  %v4794_v60 = vpop.eup %4793  ;;  %v2010_v47 = vmul.f32 %v4792_v16, %v7004_v54  ;;  %v2009_v0 = vmul.f32 %v4792_v16, %v7007_v6 }
 0x2c9   :  { %v4316_v38 = vpack.c.bf16 %v556_v39, %v552_v43  ;;  %v2008_v28 = vmul.f32 %v4794_v60, %v7006_v42  ;;  %v2007_v5 = vmul.f32 %v4794_v60, %v7009_v33 }
 0x2cb   :  { %3059 = vmatprep.mubr.bf16.mxu0 %v4316_v38  ;;  %v4374_v53 = vpack.c.bf16 %v2010_v47, %v2008_v28  ;;  %v4796_v51 = vpop.eup %4795  ;;  %v4373_v63 = vpack.c.bf16 %v2009_v0, %v2007_v5 }
 0x2cc   :  { %v4798_v61 = vpop.eup %4797  ;;  %v2006_v41 = vmul.f32 %v4796_v51, %v7008_v36  ;;  %v2005_v31 = vmul.f32 %v4796_v51, %v7011_v58 }
 0x2cd   :  { %v2004_v9 = vmul.f32 %v4798_v61, %v7010_v59  ;;  %v2003_v52 = vmul.f32 %v4798_v61, %v7012_v49 }
 0x2cf   :  { %3042 = vmatpush1.bf16.xpose.msra.mxu0 %v4347_v1  ;;  %v4372_v37 = vpack.c.bf16 %v2006_v41, %v2004_v9  ;;  %v4371_v1 = vpack.c.bf16 %v2005_v31, %v2003_v52  ;;  %v6458_v9 = vpop.f32.mrf.mxu1 }
 0x2d0   :  { %3043 = vmatprep.subr.bf16.mxu0 %v4378_v2  ;;  %v6426_v2 = vpop.f32.mrf.mxu0 }
 0x2d1   :  { %v6460_v58 = vpop.f32.mrf.mxu1 }
 0x2d2   :  { %v6428_v15 = vpop.f32.mrf.mxu0 }
 0x2d4   :  { %v6430_v17 = vpop.f32.mrf.mxu0 }
 0x2d6   :  { %v6432_v45 = vpop.f32.mrf.mxu0 }
 0x2d7   :  { %3044 = vmatpush2.bf16.xpose.msra.mxu0 %v4377_v8 }
 0x2d8   :  { %3045 = vmatprep.subr.bf16.mxu0 %v4376_v10  ;;  %v6434_v7 = vpop.f32.mrf.mxu0 }
 0x2da   :  { %v6436_v34 = vpop.f32.mrf.mxu0 }
 0x2dc   :  { %v6438_v39 = vpop.f32.mrf.mxu0 }
 0x2dd   :  { %v4319_v35 = vpack.c.bf16 %v6438_v39, %v6434_v7 }
 0x2de   :  { %v6440_v38 = vpop.f32.mrf.mxu0 }
 0x2df   :  { %3046 = vmatpush2.bf16.xpose.msra.mxu0 %v4375_v46 }
 0x2e0   :  { %3047 = vmatprep.subr.bf16.mxu0 %v4374_v53  ;;  %v6446_v30 = vpop.f32.mrf.mxu0 }
 0x2e2   :  { %v6448_v28 = vpop.f32.mrf.mxu0 }
 0x2e4   :  { %v584_v6 = vpop.f32.mrf.mxu0 }
 0x2e6   :  { %v586_v36 = vpop.f32.mrf.mxu0 }
 0x2e7   :  { %3048 = vmatpush2.bf16.xpose.msra.mxu0 %v4373_v63 }
 0x2e8   :  { %3049 = vmatprep.subr.bf16.mxu0 %v4372_v37  ;;  %v590_v59 = vpop.f32.mrf.mxu0 }
 0x2ea   :  { %v592_v37 = vpop.f32.mrf.mxu0 }
 0x2ef   :  { %3050 = vmatpush2.bf16.xpose.msra.mxu0 %v4371_v1  ;;  %v594_v1 = vpop.f32.mrf.mxu0 }
 0x320   :  { %v1943_v43 = vpop.xlane.xlu0 %1942 }
 0x321   :  { %4799 = vrcp.f32 %v1943_v43  ;;  %v6466_v43 = vpop.f32.mrf.mxu1 }
 0x324   :  { %v1946_v55 = vpop.xlane.xlu1 %1945 }
 0x325   :  { %4801 = vrcp.f32 %v1946_v55  ;;  %v596_v55 = vpop.f32.mrf.mxu0 }
 0x328   :  { %v1937_v27 = vpop.xlane.xlu0 %1936 }
 0x329   :  { %4803 = vrcp.f32 %v1937_v27  ;;  %v1706_v27 = vpop.f32.mrf.mxu1 }
 0x32c   :  { %v1940_v24 = vpop.xlane.xlu1 %1939 }
 0x32d   :  { %4805 = vrcp.f32 %v1940_v24  ;;  %v4318_v24 = vpack.c.bf16 %v6432_v45, %v6428_v15 }
 0x32e   :  { %v4800_v29 = vpop.eup %4799 }
 0x32f   :  { %v2000_v10 = vmul.f32 %v4800_v29, %v6324_v62  ;;  %v1999_v60 = vmul.f32 %v4800_v29, %v6322_v18  ;;  %v600_v29 = vpop.f32.mrf.mxu0 }
 0x330   :  { %v1931_v44 = vpop.xlane.xlu0 %1930 }
 0x331   :  { %4807 = vrcp.f32 %v1931_v44  ;;  %v4317_v44 = vpack.c.bf16 %v6430_v17, %v6426_v2  ;;  %v4321_v2 = vpack.c.bf16 %v584_v6, %v6446_v30 }
 0x332   :  { %v4802_v8 = vpop.eup %4801 }
 0x333   :  { %v2002_v16 = vmul.f32 %v4802_v8, %v6332_v23  ;;  %v2001_v3 = vmul.f32 %v4802_v8, %v6330_v56 }
 0x334   :  { %v1934_v21 = vpop.xlane.xlu1 %1933 }
 0x335   :  { %4809 = vrcp.f32 %v1934_v21  ;;  %v4370_v54 = vpack.c.bf16 %v2002_v16, %v2000_v10  ;;  %v4369_v47 = vpack.c.bf16 %v2001_v3, %v1999_v60  ;;  %v4322_v16 = vpack.c.bf16 %v586_v36, %v6448_v28 }
 0x336   :  { %v4804_v32 = vpop.eup %4803 }
 0x337   :  { %3051 = vmatprep.subr.bf16.mxu0 %v4370_v54  ;;  %v1996_v46 = vmul.f32 %v4804_v32, %v6344_v40  ;;  %v1995_v56 = vmul.f32 %v4804_v32, %v6340_v20  ;;  %v4323_v32 = vpack.c.bf16 %v594_v1, %v590_v59 }
 0x338   :  { %3052 = vmatpush2.bf16.xpose.msra.mxu0 %v4369_v47 }
 0x339   :  { %v1925_v42 = vpop.xlane.xlu0 %1924 }
 0x33a   :  { %v4806_v62 = vpop.eup %4805  ;;  %4811 = vrcp.f32 %v1925_v42 }
 0x33b   :  { %v1998_v18 = vmul.f32 %v4806_v62, %v6352_v11  ;;  %v1997_v23 = vmul.f32 %v4806_v62, %v6350_v57 }
 0x33c   :  { %v1928_v53 = vpop.xlane.xlu1 %1927 }
 0x33d   :  { %4813 = vrcp.f32 %v1928_v53  ;;  %v4368_v51 = vpack.c.bf16 %v1998_v18, %v1996_v46  ;;  %v4367_v61 = vpack.c.bf16 %v1997_v23, %v1995_v56 }
 0x33e   :  { %v4808_v0 = vpop.eup %4807 }
 0x33f   :  { %3053 = vmatprep.subr.bf16.mxu0 %v4368_v51  ;;  %v1992_v33 = vmul.f32 %v4808_v0, %v6362_v12  ;;  %v1991_v11 = vmul.f32 %v4808_v0, %v6360_v4  ;;  %v4332_v0 = vpack.c.bf16 %v1706_v27, %v6460_v58 }
 0x340   :  { %3054 = vmatpush2.bf16.xpose.msra.mxu0 %v4367_v61 }
 0x342   :  { %v4810_v41 = vpop.eup %4809 }
 0x343   :  { %v1994_v40 = vmul.f32 %v4810_v41, %v6368_v48  ;;  %v1993_v20 = vmul.f32 %v4810_v41, %v6366_v50 }
 0x345   :  { %v4366_v5 = vpack.c.bf16 %v1994_v40, %v1992_v33  ;;  %v4365_v57 = vpack.c.bf16 %v1993_v20, %v1991_v11  ;;  %v4331_v40 = vpack.c.bf16 %v6466_v43, %v6458_v9 }
 0x347   :  { %3055 = vmatprep.subr.bf16.mxu0 %v4366_v5  ;;  %v4812_v63 = vpop.eup %4811 }
 0x348   :  { %3056 = vmatpush2.bf16.xpose.msra.mxu0 %v4365_v57  ;;  %v1988_v12 = vmul.f32 %v4812_v63, %v6378_v13  ;;  %v1987_v4 = vmul.f32 %v4812_v63, %v6376_v14  ;;  %v6470_v13 = vpop.f32.mrf.mxu1  ;;  %v602_v14 = vpop.f32.mrf.mxu0 }
 0x34a   :  { %v4814_v31 = vpop.eup %4813  ;;  %v604_v8 = vpop.f32.mrf.mxu0 }
 0x34b   :  { %v1990_v48 = vmul.f32 %v4814_v31, %v6384_v26  ;;  %v1989_v50 = vmul.f32 %v4814_v31, %v6382_v25  ;;  %v1712_v25 = vpop.f32.mrf.mxu1  ;;  %v4320_v26 = vpack.c.bf16 %v6440_v38, %v6436_v34  ;;  %v4324_v38 = vpack.c.bf16 %v596_v55, %v592_v37 }
 0x34c   :  { %v606_v15 = vpop.f32.mrf.mxu0  ;;  %v4325_v46 = vpack.c.bf16 %v604_v8, %v600_v29 }
 0x34d   :  { %v4364_v49 = vpack.c.bf16 %v1990_v48, %v1988_v12  ;;  %v4363_v52 = vpack.c.bf16 %v1989_v50, %v1987_v4  ;;  %v1714_v10 = vpop.f32.mrf.mxu1  ;;  %v4326_v47 = vpack.c.bf16 %v606_v15, %v602_v14  ;;  %v87_v15 = vld [vmem:[#allocation5 + $0x10] sm:$0xff] }
 0x34e   :  { %v610_v19 = vpop.f32.mrf.mxu0  ;;  %v4333_v57 = vpack.c.bf16 %v1714_v10, %v6470_v13 }
 0x34f   :  { %3057 = vmatprep.subr.bf16.mxu0 %v4364_v49  ;;  %v1716_v45 = vpop.f32.mrf.mxu1 }
 0x350   :  { %3058 = vmatpush2.bf16.xpose.msra.mxu0 %v4363_v52  ;;  %v612_v60 = vpop.f32.mrf.mxu0  ;;  %v4334_v11 = vpack.c.bf16 %v1716_v45, %v1712_v25  ;;  %v86_v45 = vld [vmem:[#allocation5 + $0x8] sm:$0xff] }
 0x352   :  { %v614_v17 = vpop.f32.mrf.mxu0 }
 0x353   :  { %v4327_v51 = vpack.c.bf16 %v614_v17, %v610_v19  ;;  %v85_v19 = vld [vmem:[#allocation5] sm:$0xff] }
 0x354   :  { %v616_v21 = vpop.f32.mrf.mxu0 }
 0x355   :  { %v4328_v62 = vpack.c.bf16 %v616_v21, %v612_v60 }
 0x356   :  { %v620_v42 = vpop.f32.mrf.mxu0 }
 0x357   :  { %3060 = vmatmul.mubr.bf16.vlgmr.msra.gmra.mxu0 %v4315_v22  ;;  %v1720_v22 = vpop.f32.mrf.mxu1 }
 0x358   :  { %3069 = vmatprep.mubr.bf16.mxu0 %v4318_v24  ;;  %v622_v7 = vpop.f32.mrf.mxu0 }
 0x359   :  { %v1722_v34 = vpop.f32.mrf.mxu1 }
 0x35a   :  { %v624_v18 = vpop.f32.mrf.mxu0 }
 0x35b   :  { %v1724_v3 = vpop.f32.mrf.mxu1  ;;  %v4329_v36 = vpack.c.bf16 %v624_v18, %v620_v42 }
 0x35c   :  { %v626_v30 = vpop.f32.mrf.mxu0  ;;  %v4335_v58 = vpack.c.bf16 %v1724_v3, %v1720_v22 }
 0x35d   :  { %v1726_v54 = vpop.f32.mrf.mxu1  ;;  %v4330_v53 = vpack.c.bf16 %v626_v30, %v622_v7  ;;  %v89_v7 = vld [vmem:[#allocation5 + $0x20] sm:$0xff] }
 0x35e   :  { %v4336_v59 = vpack.c.bf16 %v1726_v54, %v1722_v34 }
 0x35f   :  { %3070 = vmatmul.mubr.bf16.gmra.mxu0 %v4317_v44  ;;  %v1730_v28 = vpop.f32.mrf.mxu1  ;;  %v7013_v44 = vmov 0  }
 0x360   :  { %3079 = vmatprep.mubr.bf16.mxu0 %v4320_v26 }
 0x361   :  { %v1732_v39 = vpop.f32.mrf.mxu1 }
 0x363   :  { %v1734_v56 = vpop.f32.mrf.mxu1 }
 0x364   :  { %v4337_v4 = vpack.c.bf16 %v1734_v56, %v1730_v28  ;;  %v92_v28 = vld [vmem:[#allocation5 + $0x38] sm:$0xff] }
 0x365   :  { %v1736_v23 = vpop.f32.mrf.mxu1 }
 0x366   :  { %v4338_v31 = vpack.c.bf16 %v1736_v23, %v1732_v39 }
 0x367   :  { %3080 = vmatmul.mubr.bf16.gmra.mxu0 %v4319_v35  ;;  %v1740_v61 = vpop.f32.mrf.mxu1  ;;  %v88_v35 = vld [vmem:[#allocation5 + $0x18] sm:$0xff] }
 0x368   :  { %3089 = vmatprep.mubr.bf16.mxu0 %v4322_v16 }
 0x369   :  { %v1742_v6 = vpop.f32.mrf.mxu1 }
 0x36b   :  { %v1744_v41 = vpop.f32.mrf.mxu1 }
 0x36c   :  { %v4339_v52 = vpack.c.bf16 %v1744_v41, %v1740_v61  ;;  %v95_v61 = vld [vmem:[#allocation5 + $0x50] sm:$0xff]  ;;  %v93_v41 = vld [vmem:[#allocation5 + $0x40] sm:$0xff] }
 0x36d   :  { %v1746_v33 = vpop.f32.mrf.mxu1 }
 0x36e   :  { %v4340_v9 = vpack.c.bf16 %v1746_v33, %v1742_v6  ;;  %v94_v6 = vld [vmem:[#allocation5 + $0x48] sm:$0xff] }
 0x36f   :  { %3090 = vmatmul.mubr.bf16.gmra.mxu0 %v4321_v2  ;;  %v1750_v20 = vpop.f32.mrf.mxu1 }
 0x370   :  { %3099 = vmatprep.mubr.bf16.mxu0 %v4324_v38 }
 0x371   :  { %v1752_v5 = vpop.f32.mrf.mxu1 }
 0x373   :  { %v1754_v63 = vpop.f32.mrf.mxu1 }
 0x374   :  { %v4341_v27 = vpack.c.bf16 %v1754_v63, %v1750_v20 }
 0x375   :  { %v1756_v37 = vpop.f32.mrf.mxu1 }
 0x376   :  { %v4342_v1 = vpack.c.bf16 %v1756_v37, %v1752_v5 }
 0x377   :  { %3100 = vmatmul.mubr.bf16.gmra.mxu0 %v4323_v32  ;;  %v1760_v12 = vpop.f32.mrf.mxu1  ;;  %v90_v32 = vld [vmem:[#allocation5 + $0x28] sm:$0xff] }
 0x378   :  { %3109 = vmatprep.mubr.bf16.mxu0 %v4326_v47  ;;  %v91_v47 = vld [vmem:[#allocation5 + $0x30] sm:$0xff] }
 0x379   :  { %v1762_v48 = vpop.f32.mrf.mxu1 }
 0x37b   :  { %v1764_v50 = vpop.f32.mrf.mxu1 }
 0x37c   :  { %v4343_v14 = vpack.c.bf16 %v1764_v50, %v1760_v12 }
 0x37d   :  { %v1766_v49 = vpop.f32.mrf.mxu1 }
 0x37e   :  { %v4344_v24 = vpack.c.bf16 %v1766_v49, %v1762_v48  ;;  %v100_v48 = vld [vmem:[#allocation5 + $0x78] sm:$0xff] }
 0x37f   :  { %3110 = vmatmul.mubr.bf16.gmra.mxu0 %v4325_v46  ;;  %v1770_v43 = vpop.f32.mrf.mxu1 }
 0x380   :  { %3119 = vmatprep.mubr.bf16.mxu0 %v4328_v62 }
 0x381   :  { %v1772_v55 = vpop.f32.mrf.mxu1 }
 0x383   :  { %v1774_v29 = vpop.f32.mrf.mxu1 }
 0x384   :  { %v4345_v26 = vpack.c.bf16 %v1774_v29, %v1770_v43  ;;  %v103_v29 = vld [vmem:[#allocation5 + $0x90] sm:$0xff] }
 0x385   :  { %v1776_v13 = vpop.f32.mrf.mxu1 }
 0x386   :  { %v4346_v25 = vpack.c.bf16 %v1776_v13, %v1772_v55  ;;  %v102_v13 = vld [vmem:[#allocation5 + $0x88] sm:$0xff] }
 0x387   :  { %3120 = vmatmul.mubr.bf16.gmra.mxu0 %v4327_v51 }
 0x388   :  { %3129 = vmatprep.mubr.bf16.mxu0 %v4330_v53 }
 0x38f   :  { %3130 = vmatmul.mubr.bf16.gmra.mxu0 %v4329_v36  ;;  %v96_v36 = vld [vmem:[#allocation5 + $0x58] sm:$0xff] }
 0x390   :  { %3139 = vmatprep.mubr.bf16.mxu0 %v4332_v0 }
 0x397   :  { %3140 = vmatmul.mubr.bf16.gmra.mxu0 %v4331_v40 }
 0x398   :  { %3149 = vmatprep.mubr.bf16.mxu0 %v4334_v11 }
 0x39f   :  { %3150 = vmatmul.mubr.bf16.gmra.mxu0 %v4333_v57 }
 0x3a0   :  { %3159 = vmatprep.mubr.bf16.mxu0 %v4336_v59 }
 0x3a7   :  { %3160 = vmatmul.mubr.bf16.gmra.mxu0 %v4335_v58  ;;  %v99_v58 = vld [vmem:[#allocation5 + $0x70] sm:$0xff] }
 0x3a8   :  { %3169 = vmatprep.mubr.bf16.mxu0 %v4338_v31  ;;  %v98_v31 = vld [vmem:[#allocation5 + $0x68] sm:$0xff] }
 0x3af   :  { %3170 = vmatmul.mubr.bf16.gmra.mxu0 %v4337_v4  ;;  %v97_v4 = vld [vmem:[#allocation5 + $0x60] sm:$0xff] }
 0x3b0   :  { %3179 = vmatprep.mubr.bf16.mxu0 %v4340_v9 }
 0x3b7   :  { %3180 = vmatmul.mubr.bf16.gmra.mxu0 %v4339_v52 }
 0x3b8   :  { %3189 = vmatprep.mubr.bf16.mxu0 %v4342_v1 }
 0x3bf   :  { %3190 = vmatmul.mubr.bf16.gmra.mxu0 %v4341_v27 }
 0x3c0   :  { %3199 = vmatprep.mubr.bf16.mxu0 %v4344_v24 }
 0x3c7   :  { %3200 = vmatmul.mubr.bf16.gmra.mxu0 %v4343_v14 }
 0x3c8   :  { %3209 = vmatprep.mubr.bf16.mxu0 %v4346_v25  ;;  %v104_v25 = vld [vmem:[#allocation5 + $0x98] sm:$0xff] }
 0x3cf   :  { %3210 = vmatmul.mubr.bf16.gmra.mxu0 %v4345_v26  ;;  %v101_v26 = vld [vmem:[#allocation5 + $0x80] sm:$0xff] }
 0x3d0   :  { %3754 = vmatprep.mubr.bf16.mxu0 %v7013_v44 }
 0x417   :  { %v3061_v8 = vpop.f32.mrf.mxu0 }
 0x418   :  { %v3220_v2 = vmul.f32 %v3061_v8, %v85_v19 }
 0x419   :  { %v3063_v10 = vpop.f32.mrf.mxu0 }
 0x41a   :  { %v3221_v34 = vmul.f32 %v3063_v10, %v86_v45 }
 0x41b   :  { %v3065_v16 = vpop.f32.mrf.mxu0 }
 0x41c   :  { %v3222_v22 = vmul.f32 %v3065_v16, %v87_v15 }
 0x41d   :  { %v3067_v60 = vpop.f32.mrf.mxu0 }
 0x41e   :  { %v3223_v38 = vmul.f32 %v3067_v60, %v88_v35  ;;  %v3284_v21 = vpack.c.bf16 %v3222_v22, %v3220_v2 }
 0x41f   :  { %v3071_v17 = vpop.f32.mrf.mxu0 }
 0x420   :  { %v3285_v3 = vpack.c.bf16 %v3223_v38, %v3221_v34  ;;  %v3224_v56 = vmul.f32 %v3071_v17, %v89_v7  ;;  %v107_v34 = vld [vmem:[#allocation5 + $0xb0] sm:$0xff]  ;;  %v106_v38 = vld [vmem:[#allocation5 + $0xa8] sm:$0xff]  ;;  %v108_v17 = vld [vmem:[#allocation5 + $0xb8] sm:$0xff] }
 0x421   :  { %v3073_v54 = vpop.f32.mrf.mxu0 }
 0x422   :  { %3540 = vmatprep.mubr.bf16.mxu1 %v3285_v3  ;;  %v3225_v46 = vmul.f32 %v3073_v54, %v90_v32  ;;  %v105_v3 = vld [vmem:[#allocation5 + $0xa0] sm:$0xff] }
 0x423   :  { %v3075_v42 = vpop.f32.mrf.mxu0  ;;  %3541 = vmatmul.mubr.bf16.vlgmr.msra.gmra.mxu1 %v3284_v21 }
 0x424   :  { %v3226_v39 = vmul.f32 %v3075_v42, %v91_v47 }
 0x425   :  { %v3077_v62 = vpop.f32.mrf.mxu0 }
 0x426   :  { %v3227_v18 = vmul.f32 %v3077_v62, %v92_v28  ;;  %v3286_v53 = vpack.c.bf16 %v3226_v39, %v3224_v56 }
 0x427   :  { %v3081_v30 = vpop.f32.mrf.mxu0 }
 0x428   :  { %v3287_v23 = vpack.c.bf16 %v3227_v18, %v3225_v46  ;;  %v3228_v5 = vmul.f32 %v3081_v30, %v93_v41  ;;  %v111_v46 = vld [vmem:[#allocation5 + $0xd0] sm:$0xff]  ;;  %v110_v18 = vld [vmem:[#allocation5 + $0xc8] sm:$0xff]  ;;  %v112_v30 = vld [vmem:[#allocation5 + $0xd8] sm:$0xff] }
 0x429   :  { %v3083_v51 = vpop.f32.mrf.mxu0 }
 0x42a   :  { %3550 = vmatprep.mubr.bf16.mxu1 %v3287_v23  ;;  %v3229_v11 = vmul.f32 %v3083_v51, %v94_v6  ;;  %v109_v23 = vld [vmem:[#allocation5 + $0xc0] sm:$0xff] }
 0x42b   :  { %v3085_v0 = vpop.f32.mrf.mxu0  ;;  %3551 = vmatmul.mubr.bf16.gmra.mxu1 %v3286_v53 }
 0x42c   :  { %v3230_v33 = vmul.f32 %v3085_v0, %v95_v61 }
 0x42d   :  { %v3087_v40 = vpop.f32.mrf.mxu0 }
 0x42e   :  { %v3231_v20 = vmul.f32 %v3087_v40, %v96_v36  ;;  %v3288_v63 = vpack.c.bf16 %v3230_v33, %v3228_v5 }
 0x42f   :  { %v3091_v57 = vpop.f32.mrf.mxu0 }
 0x430   :  { %v3289_v59 = vpack.c.bf16 %v3231_v20, %v3229_v11  ;;  %v3232_v1 = vmul.f32 %v3091_v57, %v97_v4  ;;  %v115_v11 = vld [vmem:[#allocation5 + $0xf0] sm:$0xff]  ;;  %v114_v20 = vld [vmem:[#allocation5 + $0xe8] sm:$0xff]  ;;  %v116_v57 = vld [vmem:[#allocation5 + $0xf8] sm:$0xff] }
 0x431   :  { %v3093_v37 = vpop.f32.mrf.mxu0 }
 0x432   :  { %3560 = vmatprep.mubr.bf16.mxu1 %v3289_v59  ;;  %v3233_v49 = vmul.f32 %v3093_v37, %v98_v31  ;;  %v113_v59 = vld [vmem:[#allocation5 + $0xe0] sm:$0xff] }
 0x433   :  { %v3095_v12 = vpop.f32.mrf.mxu0  ;;  %3561 = vmatmul.mubr.bf16.gmra.mxu1 %v3288_v63 }
 0x434   :  { %v3234_v9 = vmul.f32 %v3095_v12, %v99_v58 }
 0x435   :  { %v3097_v50 = vpop.f32.mrf.mxu0 }
 0x436   :  { %v3235_v52 = vmul.f32 %v3097_v50, %v100_v48  ;;  %v3290_v27 = vpack.c.bf16 %v3234_v9, %v3232_v1  ;;  %v117_v9 = vld [vmem:[#allocation5 + $0x100] sm:$0xff]  ;;  %v119_v1 = vld [vmem:[#allocation5 + $0x110] sm:$0xff] }
 0x437   :  { %v3101_v43 = vpop.f32.mrf.mxu0 }
 0x438   :  { %v3291_v55 = vpack.c.bf16 %v3235_v52, %v3233_v49  ;;  %v3236_v16 = vmul.f32 %v3101_v43, %v101_v26  ;;  %v118_v49 = vld [vmem:[#allocation5 + $0x108] sm:$0xff] }
 0x439   :  { %v3103_v24 = vpop.f32.mrf.mxu0 }
 0x43a   :  { %3570 = vmatprep.mubr.bf16.mxu1 %v3291_v55  ;;  %v3237_v15 = vmul.f32 %v3103_v24, %v102_v13 }
 0x43b   :  { %v3105_v14 = vpop.f32.mrf.mxu0  ;;  %3571 = vmatmul.mubr.bf16.gmra.mxu1 %v3290_v27  ;;  %v120_v27 = vld [vmem:[#allocation5 + $0x118] sm:$0xff] }
 0x43c   :  { %v3238_v8 = vmul.f32 %v3105_v14, %v103_v29 }
 0x43d   :  { %v3107_v10 = vpop.f32.mrf.mxu0 }
 0x43e   :  { %v3239_v45 = vmul.f32 %v3107_v10, %v104_v25  ;;  %v3292_v22 = vpack.c.bf16 %v3238_v8, %v3236_v16  ;;  %v121_v10 = vld [vmem:[#allocation5 + $0x120] sm:$0xff]  ;;  %v123_v16 = vld [vmem:[#allocation5 + $0x130] sm:$0xff] }
 0x43f   :  { %v3111_v35 = vpop.f32.mrf.mxu0 }
 0x440   :  { %v3293_v19 = vpack.c.bf16 %v3239_v45, %v3237_v15  ;;  %v3240_v42 = vmul.f32 %v3111_v35, %v105_v3  ;;  %v122_v15 = vld [vmem:[#allocation5 + $0x128] sm:$0xff] }
 0x441   :  { %v3113_v60 = vpop.f32.mrf.mxu0 }
 0x442   :  { %3580 = vmatprep.mubr.bf16.mxu1 %v3293_v19  ;;  %v3241_v47 = vmul.f32 %v3113_v60, %v106_v38 }
 0x443   :  { %v3115_v2 = vpop.f32.mrf.mxu0  ;;  %3581 = vmatmul.mubr.bf16.gmra.mxu1 %v3292_v22  ;;  %v124_v22 = vld [vmem:[#allocation5 + $0x138] sm:$0xff] }
 0x444   :  { %v3242_v21 = vmul.f32 %v3115_v2, %v107_v34 }
 0x445   :  { %v3117_v54 = vpop.f32.mrf.mxu0 }
 0x446   :  { %v3243_v32 = vmul.f32 %v3117_v54, %v108_v17  ;;  %v3294_v39 = vpack.c.bf16 %v3242_v21, %v3240_v42  ;;  %v125_v54 = vld [vmem:[#allocation5 + $0x140] sm:$0xff]  ;;  %v127_v42 = vld [vmem:[#allocation5 + $0x150] sm:$0xff] }
 0x447   :  { %v3121_v28 = vpop.f32.mrf.mxu0 }
 0x448   :  { %v3295_v7 = vpack.c.bf16 %v3243_v32, %v3241_v47  ;;  %v3244_v0 = vmul.f32 %v3121_v28, %v109_v23  ;;  %v126_v47 = vld [vmem:[#allocation5 + $0x148] sm:$0xff] }
 0x449   :  { %v3123_v62 = vpop.f32.mrf.mxu0 }
 0x44a   :  { %3590 = vmatprep.mubr.bf16.mxu1 %v3295_v7  ;;  %v3245_v61 = vmul.f32 %v3123_v62, %v110_v18 }
 0x44b   :  { %v3125_v56 = vpop.f32.mrf.mxu0  ;;  %3591 = vmatmul.mubr.bf16.gmra.mxu1 %v3294_v39  ;;  %v128_v39 = vld [vmem:[#allocation5 + $0x158] sm:$0xff] }
 0x44c   :  { %v3246_v53 = vmul.f32 %v3125_v56, %v111_v46 }
 0x44d   :  { %v3127_v51 = vpop.f32.mrf.mxu0 }
 0x44e   :  { %v3247_v6 = vmul.f32 %v3127_v51, %v112_v30  ;;  %v3296_v33 = vpack.c.bf16 %v3246_v53, %v3244_v0  ;;  %v129_v51 = vld [vmem:[#allocation5 + $0x160] sm:$0xff]  ;;  %v131_v0 = vld [vmem:[#allocation5 + $0x170] sm:$0xff] }
 0x44f   :  { %v3131_v36 = vpop.f32.mrf.mxu0 }
 0x450   :  { %v3297_v41 = vpack.c.bf16 %v3247_v6, %v3245_v61  ;;  %v3248_v12 = vmul.f32 %v3131_v36, %v113_v59  ;;  %v130_v61 = vld [vmem:[#allocation5 + $0x168] sm:$0xff] }
 0x451   :  { %v3133_v40 = vpop.f32.mrf.mxu0 }
 0x452   :  { %3600 = vmatprep.mubr.bf16.mxu1 %v3297_v41  ;;  %v3249_v58 = vmul.f32 %v3133_v40, %v114_v20 }
 0x453   :  { %v3135_v5 = vpop.f32.mrf.mxu0  ;;  %3601 = vmatmul.mubr.bf16.gmra.mxu1 %v3296_v33  ;;  %v132_v33 = vld [vmem:[#allocation5 + $0x178] sm:$0xff] }
 0x454   :  { %v3250_v63 = vmul.f32 %v3135_v5, %v115_v11 }
 0x455   :  { %v3137_v37 = vpop.f32.mrf.mxu0 }
 0x456   :  { %v3251_v31 = vmul.f32 %v3137_v37, %v116_v57  ;;  %v3298_v50 = vpack.c.bf16 %v3250_v63, %v3248_v12  ;;  %v133_v37 = vld [vmem:[#allocation5 + $0x180] sm:$0xff]  ;;  %v135_v12 = vld [vmem:[#allocation5 + $0x190] sm:$0xff] }
 0x457   :  { %v3141_v48 = vpop.f32.mrf.mxu0 }
 0x458   :  { %v3299_v4 = vpack.c.bf16 %v3251_v31, %v3249_v58  ;;  %v3252_v43 = vmul.f32 %v3141_v48, %v117_v9  ;;  %v134_v58 = vld [vmem:[#allocation5 + $0x188] sm:$0xff]  ;;  %v136_v9 = vld [vmem:[#allocation5 + $0x198] sm:$0xff] }
 0x459   :  { %v3143_v52 = vpop.f32.mrf.mxu0 }
 0x45a   :  { %3610 = vmatprep.mubr.bf16.mxu1 %v3299_v4  ;;  %v3253_v24 = vmul.f32 %v3143_v52, %v118_v49 }
 0x45b   :  { %3611 = vmatmul.mubr.bf16.gmra.mxu1 %v3298_v50  ;;  %v3145_v55 = vpop.f32.mrf.mxu0 }
 0x45c   :  { %v3254_v29 = vmul.f32 %v3145_v55, %v119_v1 }
 0x45d   :  { %v3147_v13 = vpop.f32.mrf.mxu0 }
 0x45e   :  { %v3255_v14 = vmul.f32 %v3147_v13, %v120_v27  ;;  %v3300_v25 = vpack.c.bf16 %v3254_v29, %v3252_v43  ;;  %v138_v29 = vld [vmem:[#allocation5 + $0x1a8] sm:$0xff] }
 0x45f   :  { %v3151_v26 = vpop.f32.mrf.mxu0 }
 0x460   :  { %v3301_v8 = vpack.c.bf16 %v3255_v14, %v3253_v24  ;;  %v3256_v35 = vmul.f32 %v3151_v26, %v121_v10  ;;  %v137_v24 = vld [vmem:[#allocation5 + $0x1a0] sm:$0xff]  ;;  %v139_v14 = vld [vmem:[#allocation5 + $0x1b0] sm:$0xff] }
 0x461   :  { %v3153_v45 = vpop.f32.mrf.mxu0 }
 0x462   :  { %3620 = vmatprep.mubr.bf16.mxu1 %v3301_v8  ;;  %v3257_v60 = vmul.f32 %v3153_v45, %v122_v15  ;;  %v140_v8 = vld [vmem:[#allocation5 + $0x1b8] sm:$0xff] }
 0x463   :  { %v3155_v19 = vpop.f32.mrf.mxu0  ;;  %3621 = vmatmul.mubr.bf16.gmra.mxu1 %v3300_v25 }
 0x464   :  { %v3258_v34 = vmul.f32 %v3155_v19, %v123_v16 }
 0x465   :  { %v3157_v38 = vpop.f32.mrf.mxu0 }
 0x466   :  { %v3259_v2 = vmul.f32 %v3157_v38, %v124_v22  ;;  %v3302_v17 = vpack.c.bf16 %v3258_v34, %v3256_v35  ;;  %v142_v34 = vld [vmem:[#allocation5 + $0x1c8] sm:$0xff] }
 0x467   :  { %v3161_v3 = vpop.f32.mrf.mxu0 }
 0x468   :  { %v3303_v21 = vpack.c.bf16 %v3259_v2, %v3257_v60  ;;  %v3260_v28 = vmul.f32 %v3161_v3, %v125_v54  ;;  %v141_v60 = vld [vmem:[#allocation5 + $0x1c0] sm:$0xff]  ;;  %v143_v2 = vld [vmem:[#allocation5 + $0x1d0] sm:$0xff] }
 0x469   :  { %v3163_v32 = vpop.f32.mrf.mxu0 }
 0x46a   :  { %3630 = vmatprep.mubr.bf16.mxu1 %v3303_v21  ;;  %v3261_v62 = vmul.f32 %v3163_v32, %v126_v47  ;;  %v144_v21 = vld [vmem:[#allocation5 + $0x1d8] sm:$0xff] }
 0x46b   :  { %v3165_v7 = vpop.f32.mrf.mxu0  ;;  %3631 = vmatmul.mubr.bf16.gmra.mxu1 %v3302_v17 }
 0x46c   :  { %v3262_v46 = vmul.f32 %v3165_v7, %v127_v42 }
 0x46d   :  { %v3167_v18 = vpop.f32.mrf.mxu0 }
 0x46e   :  { %v3263_v56 = vmul.f32 %v3167_v18, %v128_v39  ;;  %v3304_v30 = vpack.c.bf16 %v3262_v46, %v3260_v28  ;;  %v146_v46 = vld [vmem:[#allocation5 + $0x1e8] sm:$0xff] }
 0x46f   :  { %v3171_v23 = vpop.f32.mrf.mxu0 }
 0x470   :  { %v3305_v53 = vpack.c.bf16 %v3263_v56, %v3261_v62  ;;  %v3264_v36 = vmul.f32 %v3171_v23, %v129_v51  ;;  %v145_v62 = vld [vmem:[#allocation5 + $0x1e0] sm:$0xff]  ;;  %v147_v56 = vld [vmem:[#allocation5 + $0x1f0] sm:$0xff] }
 0x471   :  { %v3173_v6 = vpop.f32.mrf.mxu0 }
 0x472   :  { %3640 = vmatprep.mubr.bf16.mxu1 %v3305_v53  ;;  %v3265_v40 = vmul.f32 %v3173_v6, %v130_v61  ;;  %v148_v53 = vld [vmem:[#allocation5 + $0x1f8] sm:$0xff] }
 0x473   :  { %v3175_v41 = vpop.f32.mrf.mxu0  ;;  %3641 = vmatmul.mubr.bf16.gmra.mxu1 %v3304_v30 }
 0x474   :  { %v3266_v11 = vmul.f32 %v3175_v41, %v131_v0 }
 0x475   :  { %v3177_v20 = vpop.f32.mrf.mxu0 }
 0x476   :  { %v3267_v5 = vmul.f32 %v3177_v20, %v132_v33  ;;  %v3306_v57 = vpack.c.bf16 %v3266_v11, %v3264_v36 }
 0x477   :  { %v3181_v59 = vpop.f32.mrf.mxu0 }
 0x478   :  { %v3307_v63 = vpack.c.bf16 %v3267_v5, %v3265_v40  ;;  %v3268_v48 = vmul.f32 %v3181_v59, %v133_v37 }
 0x479   :  { %v3183_v31 = vpop.f32.mrf.mxu0 }
 0x47a   :  { %3650 = vmatprep.mubr.bf16.mxu1 %v3307_v63  ;;  %v3269_v50 = vmul.f32 %v3183_v31, %v134_v58 }
 0x47b   :  { %v3185_v4 = vpop.f32.mrf.mxu0  ;;  %3651 = vmatmul.mubr.bf16.gmra.mxu1 %v3306_v57  ;;  %v6502_v57 = vld [vmem:[%s6600_s3] sm:$0xff] }
 0x47c   :  { %v3270_v49 = vmul.f32 %v3185_v4, %v135_v12  ;;  %3719 = vperm.xlu0 %4431, %v6502_v57  }
 0x47d   :  { %v3187_v52 = vpop.f32.mrf.mxu0 }
 0x47e   :  { %v3271_v1 = vmul.f32 %v3187_v52, %v136_v9  ;;  %v3308_v43 = vpack.c.bf16 %v3270_v49, %v3268_v48 }
 0x47f   :  { %v3191_v55 = vpop.f32.mrf.mxu0 }
 0x480   :  { %v3309_v27 = vpack.c.bf16 %v3271_v1, %v3269_v50  ;;  %v3272_v25 = vmul.f32 %v3191_v55, %v137_v24 }
 0x481   :  { %v3193_v13 = vpop.f32.mrf.mxu0 }
 0x482   :  { %3660 = vmatprep.mubr.bf16.mxu1 %v3309_v27  ;;  %v3273_v10 = vmul.f32 %v3193_v13, %v138_v29 }
 0x483   :  { %v3195_v26 = vpop.f32.mrf.mxu0  ;;  %3661 = vmatmul.mubr.bf16.gmra.mxu1 %v3308_v43 }
 0x484   :  { %v3274_v15 = vmul.f32 %v3195_v26, %v139_v14 }
 0x485   :  { %v3197_v45 = vpop.f32.mrf.mxu0 }
 0x486   :  { %v3275_v16 = vmul.f32 %v3197_v45, %v140_v8  ;;  %v3310_v35 = vpack.c.bf16 %v3274_v15, %v3272_v25 }
 0x487   :  { %v3201_v19 = vpop.f32.mrf.mxu0 }
 0x488   :  { %v3311_v22 = vpack.c.bf16 %v3275_v16, %v3273_v10  ;;  %v3276_v17 = vmul.f32 %v3201_v19, %v141_v60 }
 0x489   :  { %v3203_v38 = vpop.f32.mrf.mxu0 }
 0x48a   :  { %3670 = vmatprep.mubr.bf16.mxu1 %v3311_v22  ;;  %v3277_v54 = vmul.f32 %v3203_v38, %v142_v34 }
 0x48b   :  { %v3205_v3 = vpop.f32.mrf.mxu0  ;;  %3671 = vmatmul.mubr.bf16.gmra.mxu1 %v3310_v35 }
 0x48c   :  { %v3278_v47 = vmul.f32 %v3205_v3, %v143_v2 }
 0x48d   :  { %v3207_v32 = vpop.f32.mrf.mxu0 }
 0x48e   :  { %v3279_v42 = vmul.f32 %v3207_v32, %v144_v21  ;;  %v3312_v28 = vpack.c.bf16 %v3278_v47, %v3276_v17 }
 0x48f   :  { %v3211_v7 = vpop.f32.mrf.mxu0 }
 0x490   :  { %v3313_v39 = vpack.c.bf16 %v3279_v42, %v3277_v54  ;;  %v3280_v30 = vmul.f32 %v3211_v7, %v145_v62 }
 0x491   :  { %v3213_v18 = vpop.f32.mrf.mxu0 }
 0x492   :  { %3680 = vmatprep.mubr.bf16.mxu1 %v3313_v39  ;;  %v3281_v51 = vmul.f32 %v3213_v18, %v146_v46 }
 0x493   :  { %v3215_v23 = vpop.f32.mrf.mxu0  ;;  %3681 = vmatmul.mubr.bf16.gmra.mxu1 %v3312_v28 }
 0x494   :  { %v3282_v61 = vmul.f32 %v3215_v23, %v147_v56 }
 0x495   :  { %v3217_v6 = vpop.f32.mrf.mxu0 }
 0x496   :  { %v3283_v0 = vmul.f32 %v3217_v6, %v148_v53  ;;  %v3314_v36 = vpack.c.bf16 %v3282_v61, %v3280_v30 }
 0x498   :  { %v3315_v41 = vpack.c.bf16 %v3283_v0, %v3281_v51 }
 0x49a   :  { %3690 = vmatprep.mubr.bf16.mxu1 %v3315_v41 }
 0x49b   :  { %3691 = vmatmul.mubr.bf16.gmra.mxu1 %v3314_v36 }
 0x49c   :  { %3866 = vmatprep.mubr.bf16.mxu1 %v7013_v44 }
 0x4e3   :  { %v6489_v33 = vpop.f32.mrf.mxu1 }
 0x4e5   :  { %v6491_v40 = vpop.f32.mrf.mxu1 }
 0x4e7   :  { %v6493_v11 = vpop.f32.mrf.mxu1 }
 0x4e8   :  { %v3701_v20 = vpack.c.bf16 %v6493_v11, %v6489_v33 }
 0x4e9   :  { %v6497_v5 = vpop.f32.mrf.mxu1 }
 0x4ea   :  { %v3702_v59 = vpack.c.bf16 %v6497_v5, %v6491_v40 }
 0x4eb   :  { %v6507_v44 = vpop.f32.mrf.mxu1 }
 0x4ed   :  { %v6509_v63 = vpop.f32.mrf.mxu1 }
 0x4ef   :  { %v6511_v37 = vpop.f32.mrf.mxu1 }
 0x4f0   :  { %v3703_v58 = vpack.c.bf16 %v6511_v37, %v6507_v44 }
 0x4f1   :  { %v6515_v31 = vpop.f32.mrf.mxu1 }
 0x4f2   :  { %v3704_v12 = vpack.c.bf16 %v6515_v31, %v6509_v63  ;;  %v84_v63 = vld [vmem:[%s6599_s2] sm:$0xf] }
 0x4f3   :  { %v3562_v48 = vpop.f32.mrf.mxu1 }
 0x4f5   :  { %v3564_v4 = vpop.f32.mrf.mxu1 }
 0x4f7   :  { %v3566_v9 = vpop.f32.mrf.mxu1 }
 0x4f8   :  { %v3705_v36 = vpack.c.bf16 %v3566_v9, %v3562_v48 }
 0x4f9   :  { %v3568_v50 = vpop.f32.mrf.mxu1 }
 0x4fa   :  { %v3706_v6 = vpack.c.bf16 %v3568_v50, %v3564_v4 }
 0x4fb   :  { %v3572_v49 = vpop.f32.mrf.mxu1 }
 0x4fd   :  { %v3574_v52 = vpop.f32.mrf.mxu1 }
 0x4ff   :  { %v3576_v1 = vpop.f32.mrf.mxu1 }
 0x500   :  { %v3707_v51 = vpack.c.bf16 %v3576_v1, %v3572_v49 }
 0x501   :  { %v3578_v43 = vpop.f32.mrf.mxu1 }
 0x502   :  { %v3708_v56 = vpack.c.bf16 %v3578_v43, %v3574_v52 }
 0x503   :  { %v3582_v55 = vpop.f32.mrf.mxu1 }
 0x505   :  { %v3584_v27 = vpop.f32.mrf.mxu1 }
 0x507   :  { %v3586_v24 = vpop.f32.mrf.mxu1 }
 0x508   :  { %v3709_v46 = vpack.c.bf16 %v3586_v24, %v3582_v55 }
 0x509   :  { %v3588_v29 = vpop.f32.mrf.mxu1 }
 0x50a   :  { %v3710_v39 = vpack.c.bf16 %v3588_v29, %v3584_v27 }
 0x50b   :  { %v3592_v13 = vpop.f32.mrf.mxu1 }
 0x50d   :  { %v3594_v14 = vpop.f32.mrf.mxu1 }
 0x50f   :  { %v3596_v25 = vpop.f32.mrf.mxu1 }
 0x510   :  { %v3711_v28 = vpack.c.bf16 %v3596_v25, %v3592_v13 }
 0x511   :  { %v3598_v26 = vpop.f32.mrf.mxu1 }
 0x512   :  { %v3712_v54 = vpack.c.bf16 %v3598_v26, %v3594_v14 }
 0x513   :  { %v3602_v8 = vpop.f32.mrf.mxu1 }
 0x515   :  { %v3604_v10 = vpop.f32.mrf.mxu1 }
 0x517   :  { %v3606_v15 = vpop.f32.mrf.mxu1 }
 0x518   :  { %v3713_v3 = vpack.c.bf16 %v3606_v15, %v3602_v8 }
 0x519   :  { %v3608_v45 = vpop.f32.mrf.mxu1 }
 0x51a   :  { %v3714_v2 = vpack.c.bf16 %v3608_v45, %v3604_v10 }
 0x51b   :  { %v3612_v16 = vpop.f32.mrf.mxu1 }
 0x51d   :  { %v3614_v35 = vpop.f32.mrf.mxu1 }
 0x51f   :  { %v3616_v19 = vpop.f32.mrf.mxu1 }
 0x520   :  { %v3715_v34 = vpack.c.bf16 %v3616_v19, %v3612_v16 }
 0x521   :  { %v3618_v22 = vpop.f32.mrf.mxu1 }
 0x522   :  { %v3716_v60 = vpack.c.bf16 %v3618_v22, %v3614_v35  ;;  %v3720_v22 = vpop.permute.xlu0 %3719 }
 0x523   :  { %v6519_v38 = vpop.f32.mrf.mxu1 }
 0x524   :  { %3722 = vmatprep.subr.bf16.mxu0 %v3716_v60 }
 0x525   :  { %3723 = vmatpush1.bf16.msra.mxu0 %v3715_v34  ;;  %v6521_v17 = vpop.f32.mrf.mxu1 }
 0x526   :  { %3724 = vmatprep.subr.bf16.mxu0 %v3714_v2 }
 0x527   :  { %v6523_v21 = vpop.f32.mrf.mxu1 }
 0x528   :  { %v3818_v47 = vpack.c.bf16 %v6523_v21, %v6519_v38 }
 0x529   :  { %3725 = vmatpush1.bf16.msra.mxu0 %v3713_v3  ;;  %v6527_v32 = vpop.f32.mrf.mxu1 }
 0x52a   :  { %3726 = vmatprep.subr.bf16.mxu0 %v3712_v54  ;;  %v3819_v42 = vpack.c.bf16 %v6527_v32, %v6521_v17 }
 0x52b   :  { %v6531_v7 = vpop.f32.mrf.mxu1 }
 0x52d   :  { %3727 = vmatpush1.bf16.msra.mxu0 %v3711_v28  ;;  %v6533_v62 = vpop.f32.mrf.mxu1 }
 0x52e   :  { %3728 = vmatprep.subr.bf16.mxu0 %v3710_v39 }
 0x52f   :  { %v6535_v18 = vpop.f32.mrf.mxu1 }
 0x530   :  { %v3820_v30 = vpack.c.bf16 %v6535_v18, %v6531_v7 }
 0x531   :  { %3729 = vmatpush1.bf16.msra.mxu0 %v3709_v46  ;;  %v6539_v23 = vpop.f32.mrf.mxu1 }
 0x532   :  { %3730 = vmatprep.subr.bf16.mxu0 %v3708_v56  ;;  %v3821_v53 = vpack.c.bf16 %v6539_v23, %v6533_v62 }
 0x533   :  { %v3642_v61 = vpop.f32.mrf.mxu1 }
 0x535   :  { %3731 = vmatpush1.bf16.msra.mxu0 %v3707_v51  ;;  %v3644_v0 = vpop.f32.mrf.mxu1 }
 0x536   :  { %3732 = vmatprep.subr.bf16.mxu0 %v3706_v6 }
 0x537   :  { %v3646_v41 = vpop.f32.mrf.mxu1 }
 0x538   :  { %v3822_v35 = vpack.c.bf16 %v3646_v41, %v3642_v61 }
 0x539   :  { %3733 = vmatpush1.bf16.msra.mxu0 %v3705_v36  ;;  %v3648_v52 = vpop.f32.mrf.mxu1 }
 0x53a   :  { %3734 = vmatprep.subr.bf16.mxu0 %v3704_v12  ;;  %v3823_v16 = vpack.c.bf16 %v3648_v52, %v3644_v0 }
 0x53b   :  { %v3652_v43 = vpop.f32.mrf.mxu1 }
 0x53d   :  { %3735 = vmatpush1.bf16.msra.mxu0 %v3703_v58  ;;  %v3654_v55 = vpop.f32.mrf.mxu1 }
 0x53e   :  { %3736 = vmatprep.subr.bf16.mxu0 %v3702_v59 }
 0x53f   :  { %v3656_v4 = vpop.f32.mrf.mxu1 }
 0x540   :  { %v3824_v45 = vpack.c.bf16 %v3656_v4, %v3652_v43 }
 0x541   :  { %3737 = vmatpush1.bf16.msra.mxu0 %v3701_v20  ;;  %v3658_v31 = vpop.f32.mrf.mxu1 }
 0x542   :  { %v3825_v15 = vpack.c.bf16 %v3658_v31, %v3654_v55 }
 0x543   :  { %v3662_v12 = vpop.f32.mrf.mxu1 }
 0x544   :  { %3755 = vmatmul.mubr.bf16.vlgmr.msra.gmra.mxu0 %v84_v63 }
 0x545   :  { %v3664_v48 = vpop.f32.mrf.mxu1 }
 0x547   :  { %v3666_v44 = vpop.f32.mrf.mxu1 }
 0x548   :  { %v3826_v10 = vpack.c.bf16 %v3666_v44, %v3662_v12 }
 0x549   :  { %v3668_v37 = vpop.f32.mrf.mxu1 }
 0x54a   :  { %v3827_v8 = vpack.c.bf16 %v3668_v37, %v3664_v48 }
 0x54b   :  { %v3672_v58 = vpop.f32.mrf.mxu1 }
 0x54d   :  { %v3674_v9 = vpop.f32.mrf.mxu1 }
 0x54f   :  { %v3676_v50 = vpop.f32.mrf.mxu1 }
 0x550   :  { %v3828_v26 = vpack.c.bf16 %v3676_v50, %v3672_v58 }
 0x551   :  { %v3678_v40 = vpop.f32.mrf.mxu1 }
 0x552   :  { %v3829_v25 = vpack.c.bf16 %v3678_v40, %v3674_v9 }
 0x553   :  { %v3682_v5 = vpop.f32.mrf.mxu1 }
 0x555   :  { %v3684_v59 = vpop.f32.mrf.mxu1 }
 0x557   :  { %v3686_v49 = vpop.f32.mrf.mxu1 }
 0x558   :  { %v3830_v14 = vpack.c.bf16 %v3686_v49, %v3682_v5 }
 0x559   :  { %v3688_v1 = vpop.f32.mrf.mxu1 }
 0x55a   :  { %v3831_v29 = vpack.c.bf16 %v3688_v1, %v3684_v59 }
 0x55b   :  { %v3692_v33 = vpop.f32.mrf.mxu1 }
 0x55d   :  { %v3694_v11 = vpop.f32.mrf.mxu1 }
 0x55f   :  { %v3696_v20 = vpop.f32.mrf.mxu1 }
 0x560   :  { %v3832_v27 = vpack.c.bf16 %v3696_v20, %v3692_v33 }
 0x561   :  { %v3698_v24 = vpop.f32.mrf.mxu1 }
 0x562   :  { %v3833_v13 = vpack.c.bf16 %v3698_v24, %v3694_v11 }
 0x564   :  { %3834 = vmatprep.subr.bf16.mxu1 %v3833_v13  ;;  %v4867_v13 = vmov 2  }
 0x565   :  { %3835 = vmatpush1.bf16.msra.mxu1 %v3832_v27  ;;  %4433 = vset.pattern.permute.xlu0 %v4867_v13 }
 0x566   :  { %3836 = vmatprep.subr.bf16.mxu1 %v3831_v29 }
 0x569   :  { %3837 = vmatpush1.bf16.msra.mxu1 %v3830_v14 }
 0x56a   :  { %3838 = vmatprep.subr.bf16.mxu1 %v3829_v25 }
 0x56d   :  { %3839 = vmatpush1.bf16.msra.mxu1 %v3828_v26 }
 0x56e   :  { %3840 = vmatprep.subr.bf16.mxu1 %v3827_v8 }
 0x571   :  { %3841 = vmatpush1.bf16.msra.mxu1 %v3826_v10 }
 0x572   :  { %3842 = vmatprep.subr.bf16.mxu1 %v3825_v15 }
 0x575   :  { %3843 = vmatpush1.bf16.msra.mxu1 %v3824_v45 }
 0x576   :  { %3844 = vmatprep.subr.bf16.mxu1 %v3823_v16 }
 0x579   :  { %3845 = vmatpush1.bf16.msra.mxu1 %v3822_v35  ;;  %v4869_v35 = vmov 1  }
 0x57a   :  { %3846 = vmatprep.subr.bf16.mxu1 %v3821_v53  ;;  %4432 = vset.pattern.permute.xlu1 %v4869_v35 }
 0x57d   :  { %3847 = vmatpush1.bf16.msra.mxu1 %v3820_v30 }
 0x57e   :  { %3848 = vmatprep.subr.bf16.mxu1 %v3819_v42 }
 0x581   :  { %3849 = vmatpush1.bf16.msra.mxu1 %v3818_v47 }
 0x584   :  { %3867 = vmatmul.mubr.bf16.vlgmr.msra.gmra.mxu1 %v84_v63 }
 0x604   :  { %v3756_v19 = vpop.f32.mrf.mxu0 }
 0x605   :  { %v6567_v34 = vadd.f32 %v3756_v19, %v3720_v22 }
 0x606   :  { %v3758_v60 = vpop.f32.mrf.mxu0 }
 0x607   :  { %v6569_v2 = vadd.f32 %v3758_v60, %v3720_v22 }
 0x608   :  { %v3760_v3 = vpop.f32.mrf.mxu0 }
 0x609   :  { %v3763_v54 = vadd.f32 %v6569_v2, %v6567_v34 }
 0x60a   :  { %v3761_v28 = vpop.f32.mrf.mxu0 }
 0x60b   :  { %3764 = vadd.xlane.f32.xlu1 %v3763_v54 }
 0x644   :  { %v3868_v17 = vpop.f32.mrf.mxu1 }
 0x645   :  { %v6577_v0 = vadd.f32 %v3868_v17, %v3720_v22 }
 0x646   :  { %v3870_v32 = vpop.f32.mrf.mxu1 }
 0x647   :  { %v6575_v61 = vadd.f32 %v3870_v32, %v3720_v22 }
 0x648   :  { %v3872_v42 = vpop.f32.mrf.mxu1 }
 0x649   :  { %v3875_v36 = vadd.f32 %v6575_v61, %v6577_v0 }
 0x64a   :  { %v3873_v7 = vpop.f32.mrf.mxu1 }
 0x694   :  { %v3765_v38 = vpop.xlane.xlu1 %3764 }
 0x695   :  { %v3766_v21 = vrot.slane %v3765_v38, 4 }
 0x697   :  { %v3767_v47 = vadd.f32 %v3766_v21, %v3765_v38 }
 0x699   :  { %v3768_v39 = vrot.slane %v3767_v47, 2 }
 0x69b   :  { %v3769_v62 = vadd.f32 %v3768_v39, %v3767_v47 }
 0x69d   :  { %v3770_v46 = vrot.slane %v3769_v62, 1 }
 0x69f   :  { %v3771_v18 = vadd.f32 %v3770_v46, %v3769_v62 }
 0x6a1   :  { %4411 = vpush %v3771_v18 }
 0x6d2   :  { %s4412_s2 = spop %4411 }
 0x6d3   :  { %s3773_s28 = smul.f32 0.00048828125, %s4412_s2 }
 0x6d5   :  { %v3774_v56 = vstv %s3773_s28 }
 0x6d6   :  { %v3775_v30 = vsub.f32 %v6567_v34, %v3774_v56  ;;  %v3776_v23 = vsub.f32 %v6569_v2, %v3774_v56 }
 0x6d8   :  { %v3777_v53 = vmul.f32 %v3775_v30, %v3775_v30  ;;  %v3778_v51 = vmul.f32 %v3776_v23, %v3776_v23 }
 0x6da   :  { %v3779_v6 = vadd.f32 %v3778_v51, %v3777_v53 }
 0x6dc   :  { %3780 = vadd.xlane.f32.xlu1 %v3779_v6 }
 0x6e0   :  { %3876 = vadd.xlane.f32.xlu1 %v3875_v36 }
 0x765   :  { %v3781_v41 = vpop.xlane.xlu1 %3780 }
 0x766   :  { %v3782_v52 = vrot.slane %v3781_v41, 4 }
 0x768   :  { %v3783_v43 = vadd.f32 %v3782_v52, %v3781_v41 }
 0x769   :  { %v3877_v12 = vpop.xlane.xlu1 %3876 }
 0x76a   :  { %v3784_v55 = vrot.slane %v3783_v43, 2  ;;  %v3878_v48 = vrot.slane %v3877_v12, 4 }
 0x76c   :  { %v3785_v4 = vadd.f32 %v3784_v55, %v3783_v43  ;;  %v3879_v44 = vadd.f32 %v3878_v48, %v3877_v12 }
 0x76e   :  { %v3786_v63 = vrot.slane %v3785_v4, 1  ;;  %v3880_v58 = vrot.slane %v3879_v44, 2 }
 0x770   :  { %v3787_v31 = vadd.f32 %v3786_v63, %v3785_v4  ;;  %v3881_v9 = vadd.f32 %v3880_v58, %v3879_v44 }
 0x772   :  { %4413 = vpush %v3787_v31  ;;  %v3882_v50 = vrot.slane %v3881_v9, 1 }
 0x774   :  { %v3883_v5 = vadd.f32 %v3882_v50, %v3881_v9 }
 0x7a3   :  { %s4414_s29 = spop %4413 }
 0x7a4   :  { %s3789_s30 = smul.f32 0.00048828125, %s4414_s29 }
 0x7a6   :  { %s3790_s6 = sadd.f32 1e-05, %s3789_s30 }
 0x7a8   :  { %v3791_v37 = vstv %s3790_s6 }
 0x7a9   :  { %4815 = vrsqrt.f32 %v3791_v37 }
 0x7b6   :  { %v4816_v40 = vpop.eup %4815 }
 0x7b7   :  { %4415 = vpush %v4816_v40 }
 0x7b8   :  { %4417 = vpush %v3883_v5 }
 0x7e8   :  { %s4416_s0 = spop %4415 }
 0x7e9   :  { %s4418_s7 = spop %4417  ;;  %v3794_v27 = vstv %s4416_s0 }
 0x7ea   :  { %s3885_s8 = smul.f32 0.00048828125, %s4418_s7  ;;  %v3795_v24 = vmul.f32 %v3794_v27, %v6502_v57 }
 0x7ec   :  { %v3886_v59 = vstv %s3885_s8  ;;  %v3796_v29 = vmul.f32 %v3795_v24, %v3774_v56 }
 0x7ed   :  { %v3887_v49 = vsub.f32 %v6577_v0, %v3886_v59  ;;  %v3888_v1 = vsub.f32 %v6575_v61, %v3886_v59 }
 0x7ef   :  { %v3889_v33 = vmul.f32 %v3887_v49, %v3887_v49  ;;  %v3890_v11 = vmul.f32 %v3888_v1, %v3888_v1 }
 0x7f1   :  { %v3891_v20 = vadd.f32 %v3890_v11, %v3889_v33 }
 0x7f3   :  { %3892 = vadd.xlane.f32.xlu1 %v3891_v20 }
 0x804   :  { %3798 = vrot.lane.b32.xlu1 %v3796_v29, %s4868_s9 }
 0x87c   :  { %v3893_v14 = vpop.xlane.xlu1 %3892 }
 0x87d   :  { %v3894_v25 = vrot.slane %v3893_v14, 4 }
 0x87f   :  { %v3895_v26 = vadd.f32 %v3894_v25, %v3893_v14 }
 0x880   :  { %v3799_v8 = vpop.permute.xlu1 %3798 }
 0x881   :  { %v3896_v10 = vrot.slane %v3895_v26, 2  ;;  %v3801_v15 = vsub.f32 %v6502_v57, %v3799_v8 }
 0x883   :  { %3811 = vperm.xlu0 %4433, %v3801_v15   ;;  %v3897_v45 = vadd.f32 %v3896_v10, %v3895_v26 }
 0x885   :  { %v3898_v16 = vrot.slane %v3897_v45, 1 }
 0x887   :  { %v3899_v19 = vadd.f32 %v3898_v16, %v3897_v45 }
 0x889   :  { %4419 = vpush %v3899_v19 }
 0x8ba   :  { %s4420_s10 = spop %4419 }
 0x8bb   :  { %s3901_s11 = smul.f32 0.00048828125, %s4420_s10 }
 0x8bd   :  { %s3902_s12 = sadd.f32 1e-05, %s3901_s11 }
 0x8bf   :  { %v3903_v22 = vstv %s3902_s12 }
 0x8c0   :  { %4817 = vrsqrt.f32 %v3903_v22 }
 0x8cd   :  { %v4818_v60 = vpop.eup %4817 }
 0x8ce   :  { %4421 = vpush %v4818_v60 }
 0x8fe   :  { %v3812_v21 = vpop.permute.xlu0 %3811 }
 0x8ff   :  { %s4422_s13 = spop %4421 }
 0x900   :  { %v3906_v3 = vstv %s4422_s13 }
 0x901   :  { %v3907_v54 = vmul.f32 %v3906_v3, %v6502_v57 }
 0x903   :  { %v3908_v28 = vmul.f32 %v3907_v54, %v3886_v59 }
 0x905   :  { %3910 = vrot.lane.b32.xlu1 %v3908_v28, %s4868_s9 }
 0x909   :  { %3804 = vperm.xlu1 %4432, %v3795_v24  }
 0x90d   :  { %3916 = vperm.xlu1 %4432, %v3907_v54  }
 0x911   :  { %4434 = vset.pattern.permute.xlu1 %v4867_v13 }
 0x977   :  { %v3911_v17 = vpop.permute.xlu1 %3910 }
 0x978   :  { %v3913_v32 = vsub.f32 %v6502_v57, %v3911_v17 }
 0x97a   :  { %3923 = vperm.xlu1 %4434, %v3913_v32  }
 0x984   :  { %v3805_v42 = vpop.permute.xlu1 %3804 }
 0x985   :  { %v3807_v7 = vmul.f32 %v3805_v42, %v6567_v34  ;;  %v3808_v38 = vmul.f32 %v3805_v42, %v6569_v2 }
 0x987   :  { %v3814_v47 = vadd.f32 %v3812_v21, %v3807_v7  ;;  %v3815_v39 = vadd.f32 %v3812_v21, %v3808_v38 }
 0x988   :  { %v3917_v62 = vpop.permute.xlu1 %3916 }
 0x989   :  { %3816 = vst [vmem:[#allocation8] sm:$0xff] %v3814_v47  ;;  %3817 = vst [vmem:[#allocation8 + $0x8] sm:$0xff] %v3815_v39  ;;  %v3919_v46 = vmul.f32 %v3917_v62, %v6577_v0  ;;  %v3920_v18 = vmul.f32 %v3917_v62, %v6575_v61 }
 0x9f5   :  { %v3924_v56 = vpop.permute.xlu1 %3923 }
 0x9f6   :  { %v3926_v57 = vadd.f32 %v3924_v56, %v3919_v46  ;;  %v3927_v30 = vadd.f32 %v3924_v56, %v3920_v18 }
 0x9f8   :  { %3929 = vst [vmem:[#allocation8 + $0x10] sm:$0xff] %v3926_v57  ;;  %3930 = vst [vmem:[#allocation8 + $0x18] sm:$0xff] %v3927_v30 }
 0x9f9   :  { %4850 = shalt.err (!%p4847_p9)
}
 0x9fa   :  { %3942 = dma.vmem_to_hbm [thread:$0]  %s3937_s15, 512, %s6602_s5, [#allocation7], %s4864_s21, %s4864_s21, %s4865_s22  }
 0x9fb   :  { %4861 = dma.done.wait [#allocation7], 512  }
 0x9fc   :  { %4862 = vsyncadd [#allocation7], 4294966784 }
 0x9fd   :  { %3946 = vsyncpa [#allocation6], 1 }
 0x9fe   :  { %3947 = vsyncpa [#allocation7], 1 }

</bundles_post_ra>
